<compile_context>
chip_gen: v7x
topology: tpu7x:2x2x1
jax: 0.10.0
libtpu: 0.0.40
codegen_flags: <defaults>
</compile_context>

<pallas_src>
import functools

import jax
import jax.numpy as jnp
from jax.experimental import pallas as pl
from jax.experimental.pallas import tpu as pltpu


def _round_up(n, m):
    return ((n + m - 1) // m) * m


# ------------------------------ fused kernel --------------------------------

def _tiny_vgg_kernel(x_ref, w1_ref, b1_ref, w2_ref, b2_ref, cs1_ref,
                     w3_ref, b3_ref, w4_ref, b4_ref, cs2_ref, wl_ref, bl_ref,
                     o_ref, a1_ref, t1_ref, a2_ref, a3_ref, p2_ref, *, img):
    """IMG images per grid step; all intermediates live in VMEM scratch."""
    f32, bf16 = jnp.float32, jnp.bfloat16
    S1, S2 = 34, 18                      # per-image row strides (32+2, 16+2 pad)
    M1 = img * S1 - 2                    # conv1 / conv2 output rows (stacked)
    M3 = img * S2 - 2                    # conv3 output rows
    M4 = img * S2 - 4                    # conv4 (valid) output rows

    def conv_relu(src_ref, w_ref, b_ref, m):
        # src_ref: (rows, K) f32, row-padded per image; w_ref: (3, K, N) bf16
        # block-Toeplitz slabs (W-padding folded in); b_ref: (1, N) f32.
        acc = jnp.dot(src_ref[pl.ds(0, m), :].astype(bf16), w_ref[0],
                      preferred_element_type=f32)
        for dy in range(1, 3):                       # static unroll: 3 matmuls
            acc = acc + jnp.dot(src_ref[pl.ds(dy, m), :].astype(bf16),
                                w_ref[dy], preferred_element_type=f32)
        return jnp.maximum(acc + b_ref[...], 0.0)     # bias + relu in f32

    def colpool(y, cs_ref):
        # lane-compacting half of the 2x2 max-pool: exact 0/1 selectors (MXU).
        yb = y.astype(bf16)
        return jnp.maximum(
            jnp.dot(yb, cs_ref[0], preferred_element_type=f32),
            jnp.dot(yb, cs_ref[1], preferred_element_type=f32))

    def zero_row(ref, r):
        ref[pl.ds(r, 1), :] = jnp.zeros((1, ref.shape[1]), ref.dtype)

    # ---- block 1: conv1 + relu, conv2 + relu, 2x2 max-pool ------------------
    y = conv_relu(x_ref, w1_ref, b1_ref, M1)          # (M1, 32*h) f32
    a1_ref[pl.ds(1, M1), :] = y                       # shift +1 into padded rows
    for k in range(img):                              # re-zero only the pad rows
        zero_row(a1_ref, k * S1)
        zero_row(a1_ref, k * S1 + 33)

    y = conv_relu(a1_ref, w2_ref, b2_ref, M1)         # (M1, 32*h) f32
    t1_ref[pl.ds(0, M1), :] = colpool(y, cs1_ref)     # W-pooled: (M1, 16*h)
    for k in range(img):                              # H-pool: strided sublane max
        rk = jnp.maximum(t1_ref[pl.ds(k * S1, 16, stride=2), :],
                         t1_ref[pl.ds(k * S1 + 1, 16, stride=2), :])
        a2_ref[pl.ds(k * S2 + 1, 16), :] = rk
        zero_row(a2_ref, k * S2)
        zero_row(a2_ref, k * S2 + 17)

    # ---- block 2: conv3 (pad 1) + relu, conv4 (valid) + relu, 2x2 max-pool ---
    y = conv_relu(a2_ref, w3_ref, b3_ref, M3)         # (M3, 32*h) f32
    a3_ref[pl.ds(0, M3), :] = y
    y = conv_relu(a3_ref, w4_ref, b4_ref, M4)         # (M4, pad(28*h)) f32
    t1_ref[pl.ds(0, M4), :] = colpool(y, cs2_ref)     # W-pooled: (M4, 16*h)
    for k in range(img):                              # H-pool -> (7, 16*h) per img
        pk = jnp.maximum(t1_ref[pl.ds(k * S2, 7, stride=2), :],
                         t1_ref[pl.ds(k * S2 + 1, 7, stride=2), :])
        p2_ref[pl.ds(k * 8, 7), :] = pk               # image k at 8-row stride

    # ---- classifier: M = IMG rows per dot (weights pre-permuted & padded) ----
    acc = jnp.zeros((img, o_ref.shape[2]), f32)
    for i in range(7):                                # static unroll
        zi = p2_ref[pl.ds(i, img, stride=8), :].astype(bf16)   # row i of each img
        acc = acc + jnp.dot(zi, wl_ref[i], preferred_element_type=f32)
    o_ref[0] = acc + bl_ref[...]


# --------------------------- init-time preprocessing ------------------------

def _toeplitz_slabs(w_hwio, w_in, w_out, pad):
    """(3, W_in*Cin, W_out*Cout) slabs; W zero-padding folded into the slab."""
    kh, kw, cin, cout = w_hwio.shape
    slabs = []
    for dy in range(kh):
        s = jnp.zeros((w_in, cin, w_out, cout), w_hwio.dtype)
        for dx in range(kw):
            sel = jnp.eye(w_in, w_out, k=pad - dx, dtype=w_hwio.dtype)
            s = s + jnp.einsum("xw,io->xiwo", sel, w_hwio[dy, dx])
        slabs.append(s.reshape(w_in * cin, w_out * cout))
    return jnp.stack(slabs, axis=0)


def _pad_to(a, shape):
    return jnp.pad(a, [(0, t - s) for s, t in zip(a.shape, shape)])


def _col_pool_selectors(w, c, k_pad, n_pad):
    """0/1 column-selection matrices for the W direction of a 2x2 max pool."""
    eye_c = jnp.eye(c, dtype=jnp.float32)
    sel = []
    for delta in range(2):
        m = jnp.einsum("wj,cd->wcjd", jnp.eye(w, dtype=jnp.float32)[:, delta::2],
                       eye_c).reshape(w * c, (w // 2) * c)
        sel.append(_pad_to(m, (k_pad, n_pad)))
    return jnp.stack(sel).astype(jnp.bfloat16)          # exact in bf16 (0/1)


def prepare_kernel_params(p, cin, hidden, out_dim):
    """All weight preprocessing hoisted out of the forward pass (init time)."""
    assert (16 * hidden) % 128 == 0, "hidden must be a multiple of 8"
    h2 = 2 * hidden
    WB, WP = 32 * hidden, 16 * hidden                  # main lane widths (mult 128)
    N0 = _round_up(32 * cin, 128)                      # padded input lane width
    N6 = _round_up(out_dim, 128)                       # padded logits width
    bf = jnp.bfloat16

    def hwio(w_oihw):
        return jnp.transpose(w_oihw, (2, 3, 1, 0))

    kp = {
        "w1": _pad_to(_toeplitz_slabs(hwio(p["w1_oihw"]), 32, 32, 1),
                      (3, N0, WB)).astype(bf),
        "w2": _toeplitz_slabs(hwio(p["w2_oihw"]), 32, 32, 1).astype(bf),
        "w3": _toeplitz_slabs(hwio(p["w3_oihw"]), 16, 16, 1).astype(bf),
        "w4": _pad_to(_toeplitz_slabs(hwio(p["w4_oihw"]), 16, 14, 0),
                      (3, WB, WB)).astype(bf),
        "b1": jnp.tile(p["b1"], 32).reshape(1, WB),
        "b2": jnp.tile(p["b2"], 32).reshape(1, WB),
        "b3": jnp.tile(p["b3"], 16).reshape(1, WB),
        "b4": _pad_to(jnp.tile(p["b4"], 14).reshape(1, 14 * h2), (1, WB)),
        "cs1": _col_pool_selectors(32, hidden, WB, WP),
        "cs2": _col_pool_selectors(14, h2, WB, WP),
        "bl": _pad_to(p["bl"].reshape(1, out_dim), (1, N6)),
    }
    # classifier: permute torch's NCHW flatten order (c*49 + i*7 + j) into the
    # kernel's pooled row layout (row i, lane j*h2 + c); one slab per row.
    wl = p["wl"].reshape(out_dim, h2, 7, 7)
    wl = jnp.transpose(wl, (2, 3, 1, 0)).reshape(7, 7 * h2, out_dim)
    kp["wl"] = _pad_to(wl, (7, WP, N6)).astype(bf)
    return kp


# ---------------------------------- wrapper ---------------------------------

def tiny_vgg_forward(x_nchw, kp, *, cin, hidden, out_dim, img=4):
    b, c, s, _ = x_nchw.shape
    assert s == 32 and c == cin and b % img == 0
    WB, WP = 32 * hidden, 16 * hidden
    N0 = _round_up(32 * cin, 128)
    N6 = _round_up(out_dim, 128)
    nsteps = b // img

    # NCHW -> NHWC, flatten (W, C) into lanes, add H pad rows + zero lane pad,
    # then stack all padded images along the row dimension (layout glue only).
    x = jnp.transpose(x_nchw, (0, 2, 3, 1)).reshape(b, s, s * cin)
    x = jnp.pad(x, ((0, 0), (1, 1), (0, N0 - s * cin))).reshape(b * 34, N0)

    def full(a):
        return pl.BlockSpec(a.shape, lambda i, nd=a.ndim: (0,) * nd)

    kernel = functools.partial(_tiny_vgg_kernel, img=img)
    out = pl.pallas_call(
        kernel,
        out_shape=jax.ShapeDtypeStruct((nsteps, img, N6), jnp.float32),
        grid=(nsteps,),
        in_specs=[
            pl.BlockSpec((img * 34, N0), lambda i: (i, 0)),
            full(kp["w1"]), full(kp["b1"]),
            full(kp["w2"]), full(kp["b2"]), full(kp["cs1"]),
            full(kp["w3"]), full(kp["b3"]),
            full(kp["w4"]), full(kp["b4"]), full(kp["cs2"]),
            full(kp["wl"]), full(kp["bl"]),
        ],
        out_specs=pl.BlockSpec((1, img, N6), lambda i: (i, 0, 0)),
        scratch_shapes=[
            pltpu.VMEM((img * 34, WB), jnp.float32),   # a1: row-padded conv1 out
            pltpu.VMEM((img * 34, WP), jnp.float32),   # t1: W-pooled staging
            pltpu.VMEM((img * 18, WP), jnp.float32),   # a2: row-padded pool1 out
            pltpu.VMEM((img * 18, WB), jnp.float32),   # a3: conv3 out
            pltpu.VMEM((img * 8, WP), jnp.float32),    # p2: pooled features
        ],
        compiler_params=pltpu.CompilerParams(
            dimension_semantics=("parallel",)),        # image groups across TCs
    )(x, kp["w1"], kp["b1"], kp["w2"], kp["b2"], kp["cs1"],
      kp["w3"], kp["b3"], kp["w4"], kp["b4"], kp["cs2"], kp["wl"], kp["bl"])
    return out.reshape(b, N6)[:, :out_dim]


# ------------------------- params & pure-JAX reference ----------------------

def init_params(key, in_ch, hidden, out_dim):
    ks = jax.random.split(key, 10)

    def conv_w(k, cin, cout):                          # PyTorch OIHW convention
        return 0.1 * jax.random.normal(k, (cout, cin, 3, 3), jnp.float32)

    def vec(k, n):
        return 0.01 * jax.random.normal(k, (n,), jnp.float32)

    return {
        "w1_oihw": conv_w(ks[0], in_ch, hidden),          "b1": vec(ks[1], hidden),
        "w2_oihw": conv_w(ks[2], hidden, hidden),         "b2": vec(ks[3], hidden),
        "w3_oihw": conv_w(ks[4], hidden, 2 * hidden),     "b3": vec(ks[5], 2 * hidden),
        "w4_oihw": conv_w(ks[6], 2 * hidden, 2 * hidden), "b4": vec(ks[7], 2 * hidden),
        "wl": 0.1 * jax.random.normal(ks[8], (out_dim, 2 * hidden * 7 * 7),
                                      jnp.float32),
        "bl": vec(ks[9], out_dim),
    }


def ref_forward(x_nchw, p):
    def conv(x, w_oihw, b, pad):
        y = jax.lax.conv_general_dilated(
            x, w_oihw, window_strides=(1, 1),
            padding=[(pad, pad), (pad, pad)],
            dimension_numbers=("NCHW", "OIHW", "NCHW"))
        return y + b[None, :, None, None]

    def pool(x):
        n, c, h, w = x.shape
        return jnp.max(x.reshape(n, c, h // 2, 2, w // 2, 2), axis=(3, 5))

    y = jax.nn.relu(conv(x_nchw, p["w1_oihw"], p["b1"], 1))
    y = jax.nn.relu(conv(y, p["w2_oihw"], p["b2"], 1))
    y = pool(y)
    y = jax.nn.relu(conv(y, p["w3_oihw"], p["b3"], 1))
    y = jax.nn.relu(conv(y, p["w4_oihw"], p["b4"], 0))
    y = pool(y)
    feat = y.reshape(y.shape[0], -1)
    return feat @ p["wl"].T + p["bl"]


# ------------------------------------ main -----------------------------------

if __name__ == "__main__":
    # 32x32 spatial is required by the module: 32 -> pool -> 16 -> valid conv
    # -> 14 -> pool -> 7, matching the hidden*2*7*7 classifier input.
    B, C_IN, HIDDEN, OUT, S, IMG = 8, 3, 8, 10, 32, 4
    key = jax.random.PRNGKey(0)
    k_in, k_par = jax.random.split(key)
    x = jax.random.normal(k_in, (B, C_IN, S, S), jnp.float32)

    params = init_params(k_par, C_IN, HIDDEN, OUT)
    kparams = prepare_kernel_params(params, C_IN, HIDDEN, OUT)   # hoisted to init

    fwd = jax.jit(functools.partial(tiny_vgg_forward, cin=C_IN, hidden=HIDDEN,
                                    out_dim=OUT, img=IMG))
    out = jax.block_until_ready(fwd(x, kparams))
    assert out.shape == (B, OUT), out.shape

    with jax.default_matmul_precision("highest"):                # f32 reference
        ref = jax.block_until_ready(ref_forward(x, params))
    # bf16 matmul operands (f32 accumulation) -> expect ~1e-2 worst-case abs err.
    max_err = float(jnp.max(jnp.abs(out - ref)))
    assert max_err < 5e-2, f"mismatch vs reference: max abs err {max_err}"

    print("KERNEL_OK")
</pallas_src>

<mosaic_0001>
module attributes {stable_mosaic.version = 11 : i64} {
  func.func @_tiny_vgg_kernel(%arg0: i32, %arg1: memref<136x128xf32, #tpu.memory_space<vmem>>, %arg2: memref<3x128x256xbf16, #tpu.memory_space<vmem>>, %arg3: memref<1x256xf32, #tpu.memory_space<vmem>>, %arg4: memref<3x256x256xbf16, #tpu.memory_space<vmem>>, %arg5: memref<1x256xf32, #tpu.memory_space<vmem>>, %arg6: memref<2x256x128xbf16, #tpu.memory_space<vmem>>, %arg7: memref<3x128x256xbf16, #tpu.memory_space<vmem>>, %arg8: memref<1x256xf32, #tpu.memory_space<vmem>>, %arg9: memref<3x256x256xbf16, #tpu.memory_space<vmem>>, %arg10: memref<1x256xf32, #tpu.memory_space<vmem>>, %arg11: memref<2x256x128xbf16, #tpu.memory_space<vmem>>, %arg12: memref<7x128x128xbf16, #tpu.memory_space<vmem>>, %arg13: memref<1x128xf32, #tpu.memory_space<vmem>>, %arg14: memref<1x4x128xf32, #tpu.memory_space<vmem>>, %arg15: memref<136x256xf32, #tpu.memory_space<vmem>>, %arg16: memref<136x128xf32, #tpu.memory_space<vmem>>, %arg17: memref<72x128xf32, #tpu.memory_space<vmem>>, %arg18: memref<72x256xf32, #tpu.memory_space<vmem>>, %arg19: memref<32x128xf32, #tpu.memory_space<vmem>>) attributes {dimension_semantics = [#tpu.dimension_semantics<parallel>], iteration_bounds = array<i64: 2>, scalar_prefetch = 0 : i64, scratch_operands = 5 : i64, tpu.core_type = #tpu.core_type<tc>, window_params = [{transform_indices = @transform_0, window_bounds = array<i64: 136, 128>}, {pipeline_mode = #tpu.pipeline_mode<synchronous>, transform_indices = @transform_1, window_bounds = array<i64: 3, 128, 256>}, {pipeline_mode = #tpu.pipeline_mode<synchronous>, transform_indices = @transform_2, window_bounds = array<i64: 1, 256>}, {pipeline_mode = #tpu.pipeline_mode<synchronous>, transform_indices = @transform_3, window_bounds = array<i64: 3, 256, 256>}, {pipeline_mode = #tpu.pipeline_mode<synchronous>, transform_indices = @transform_4, window_bounds = array<i64: 1, 256>}, {pipeline_mode = #tpu.pipeline_mode<synchronous>, transform_indices = @transform_5, window_bounds = array<i64: 2, 256, 128>}, {pipeline_mode = #tpu.pipeline_mode<synchronous>, transform_indices = @transform_6, window_bounds = array<i64: 3, 128, 256>}, {pipeline_mode = #tpu.pipeline_mode<synchronous>, transform_indices = @transform_7, window_bounds = array<i64: 1, 256>}, {pipeline_mode = #tpu.pipeline_mode<synchronous>, transform_indices = @transform_8, window_bounds = array<i64: 3, 256, 256>}, {pipeline_mode = #tpu.pipeline_mode<synchronous>, transform_indices = @transform_9, window_bounds = array<i64: 1, 256>}, {pipeline_mode = #tpu.pipeline_mode<synchronous>, transform_indices = @transform_10, window_bounds = array<i64: 2, 256, 128>}, {pipeline_mode = #tpu.pipeline_mode<synchronous>, transform_indices = @transform_11, window_bounds = array<i64: 7, 128, 128>}, {pipeline_mode = #tpu.pipeline_mode<synchronous>, transform_indices = @transform_12, window_bounds = array<i64: 1, 128>}, {transform_indices = @transform_13, window_bounds = array<i64: 1, 4, 128>}]} {
    %c0 = arith.constant 0 : index
    %c0_0 = arith.constant 0 : index
    %0 = vector.load %arg1[%c0, %c0_0] : memref<136x128xf32, #tpu.memory_space<vmem>>, vector<134x128xf32>
    %1 = arith.truncf %0 : vector<134x128xf32> to vector<134x128xbf16>
    %c0_1 = arith.constant 0 : index
    %c0_2 = arith.constant 0 : index
    %c0_3 = arith.constant 0 : index
    %2 = vector.load %arg2[%c0_1, %c0_2, %c0_3] : memref<3x128x256xbf16, #tpu.memory_space<vmem>>, vector<1x128x256xbf16>
    %3 = vector.shape_cast %2 : vector<1x128x256xbf16> to vector<128x256xbf16>
    %cst = arith.constant dense<0.000000e+00> : vector<134x256xf32>
    %4 = tpu.matmul %1, %3, %cst {dimension_numbers = #tpu.dot_dimension_numbers<[1], [0], [0], [1], [0, 0, 1, 1], [], []>} : vector<134x128xbf16>, vector<128x256xbf16>, vector<134x256xf32> -> vector<134x256xf32>
    %c1 = arith.constant 1 : index
    %c0_4 = arith.constant 0 : index
    %5 = vector.load %arg1[%c1, %c0_4] : memref<136x128xf32, #tpu.memory_space<vmem>>, vector<134x128xf32>
    %6 = arith.truncf %5 : vector<134x128xf32> to vector<134x128xbf16>
    %c1_5 = arith.constant 1 : index
    %c0_6 = arith.constant 0 : index
    %c0_7 = arith.constant 0 : index
    %7 = vector.load %arg2[%c1_5, %c0_6, %c0_7] : memref<3x128x256xbf16, #tpu.memory_space<vmem>>, vector<1x128x256xbf16>
    %8 = vector.shape_cast %7 : vector<1x128x256xbf16> to vector<128x256xbf16>
    %cst_8 = arith.constant dense<0.000000e+00> : vector<134x256xf32>
    %9 = tpu.matmul %6, %8, %cst_8 {dimension_numbers = #tpu.dot_dimension_numbers<[1], [0], [0], [1], [0, 0, 1, 1], [], []>} : vector<134x128xbf16>, vector<128x256xbf16>, vector<134x256xf32> -> vector<134x256xf32>
    %10 = arith.addf %4, %9 : vector<134x256xf32>
    %c2 = arith.constant 2 : index
    %c0_9 = arith.constant 0 : index
    %11 = vector.load %arg1[%c2, %c0_9] : memref<136x128xf32, #tpu.memory_space<vmem>>, vector<134x128xf32>
    %12 = arith.truncf %11 : vector<134x128xf32> to vector<134x128xbf16>
    %c2_10 = arith.constant 2 : index
    %c0_11 = arith.constant 0 : index
    %c0_12 = arith.constant 0 : index
    %13 = vector.load %arg2[%c2_10, %c0_11, %c0_12] : memref<3x128x256xbf16, #tpu.memory_space<vmem>>, vector<1x128x256xbf16>
    %14 = vector.shape_cast %13 : vector<1x128x256xbf16> to vector<128x256xbf16>
    %cst_13 = arith.constant dense<0.000000e+00> : vector<134x256xf32>
    %15 = tpu.matmul %12, %14, %cst_13 {dimension_numbers = #tpu.dot_dimension_numbers<[1], [0], [0], [1], [0, 0, 1, 1], [], []>} : vector<134x128xbf16>, vector<128x256xbf16>, vector<134x256xf32> -> vector<134x256xf32>
    %16 = arith.addf %10, %15 : vector<134x256xf32>
    %c0_14 = arith.constant 0 : index
    %c0_15 = arith.constant 0 : index
    %17 = vector.load %arg3[%c0_14, %c0_15] : memref<1x256xf32, #tpu.memory_space<vmem>>, vector<1x256xf32>
    %18 = vector.broadcast %17 : vector<1x256xf32> to vector<134x256xf32>
    %19 = arith.addf %16, %18 : vector<134x256xf32>
    %cst_16 = arith.constant 0.000000e+00 : f32
    %20 = vector.broadcast %cst_16 : f32 to vector<134x256xf32>
    %21 = arith.maximumf %19, %20 : vector<134x256xf32>
    %c1_17 = arith.constant 1 : index
    %c0_18 = arith.constant 0 : index
    %22 = vector.load %arg15[%c1_17, %c0_18] : memref<136x256xf32, #tpu.memory_space<vmem>>, vector<134x256xf32>
    tpu.vector_store %arg15[%c1_17, %c0_18], %21 {strides = array<i32>} : memref<136x256xf32, #tpu.memory_space<vmem>>, vector<134x256xf32>,
    %cst_19 = arith.constant 0.000000e+00 : f32
    %23 = vector.broadcast %cst_19 : f32 to vector<1x256xf32>
    %c0_20 = arith.constant 0 : index
    %c0_21 = arith.constant 0 : index
    %24 = vector.load %arg15[%c0_20, %c0_21] : memref<136x256xf32, #tpu.memory_space<vmem>>, vector<1x256xf32>
    tpu.vector_store %arg15[%c0_20, %c0_21], %23 {strides = array<i32>} : memref<136x256xf32, #tpu.memory_space<vmem>>, vector<1x256xf32>,
    %cst_22 = arith.constant 0.000000e+00 : f32
    %25 = vector.broadcast %cst_22 : f32 to vector<1x256xf32>
    %c33 = arith.constant 33 : index
    %c0_23 = arith.constant 0 : index
    %26 = vector.load %arg15[%c33, %c0_23] : memref<136x256xf32, #tpu.memory_space<vmem>>, vector<1x256xf32>
    tpu.vector_store %arg15[%c33, %c0_23], %25 {strides = array<i32>} : memref<136x256xf32, #tpu.memory_space<vmem>>, vector<1x256xf32>,
    %cst_24 = arith.constant 0.000000e+00 : f32
    %27 = vector.broadcast %cst_24 : f32 to vector<1x256xf32>
    %c34 = arith.constant 34 : index
    %c0_25 = arith.constant 0 : index
    %28 = vector.load %arg15[%c34, %c0_25] : memref<136x256xf32, #tpu.memory_space<vmem>>, vector<1x256xf32>
    tpu.vector_store %arg15[%c34, %c0_25], %27 {strides = array<i32>} : memref<136x256xf32, #tpu.memory_space<vmem>>, vector<1x256xf32>,
    %cst_26 = arith.constant 0.000000e+00 : f32
    %29 = vector.broadcast %cst_26 : f32 to vector<1x256xf32>
    %c67 = arith.constant 67 : index
    %c0_27 = arith.constant 0 : index
    %30 = vector.load %arg15[%c67, %c0_27] : memref<136x256xf32, #tpu.memory_space<vmem>>, vector<1x256xf32>
    tpu.vector_store %arg15[%c67, %c0_27], %29 {strides = array<i32>} : memref<136x256xf32, #tpu.memory_space<vmem>>, vector<1x256xf32>,
    %cst_28 = arith.constant 0.000000e+00 : f32
    %31 = vector.broadcast %cst_28 : f32 to vector<1x256xf32>
    %c68 = arith.constant 68 : index
    %c0_29 = arith.constant 0 : index
    %32 = vector.load %arg15[%c68, %c0_29] : memref<136x256xf32, #tpu.memory_space<vmem>>, vector<1x256xf32>
    tpu.vector_store %arg15[%c68, %c0_29], %31 {strides = array<i32>} : memref<136x256xf32, #tpu.memory_space<vmem>>, vector<1x256xf32>,
    %cst_30 = arith.constant 0.000000e+00 : f32
    %33 = vector.broadcast %cst_30 : f32 to vector<1x256xf32>
    %c101 = arith.constant 101 : index
    %c0_31 = arith.constant 0 : index
    %34 = vector.load %arg15[%c101, %c0_31] : memref<136x256xf32, #tpu.memory_space<vmem>>, vector<1x256xf32>
    tpu.vector_store %arg15[%c101, %c0_31], %33 {strides = array<i32>} : memref<136x256xf32, #tpu.memory_space<vmem>>, vector<1x256xf32>,
    %cst_32 = arith.constant 0.000000e+00 : f32
    %35 = vector.broadcast %cst_32 : f32 to vector<1x256xf32>
    %c102 = arith.constant 102 : index
    %c0_33 = arith.constant 0 : index
    %36 = vector.load %arg15[%c102, %c0_33] : memref<136x256xf32, #tpu.memory_space<vmem>>, vector<1x256xf32>
    tpu.vector_store %arg15[%c102, %c0_33], %35 {strides = array<i32>} : memref<136x256xf32, #tpu.memory_space<vmem>>, vector<1x256xf32>,
    %cst_34 = arith.constant 0.000000e+00 : f32
    %37 = vector.broadcast %cst_34 : f32 to vector<1x256xf32>
    %c135 = arith.constant 135 : index
    %c0_35 = arith.constant 0 : index
    %38 = vector.load %arg15[%c135, %c0_35] : memref<136x256xf32, #tpu.memory_space<vmem>>, vector<1x256xf32>
    tpu.vector_store %arg15[%c135, %c0_35], %37 {strides = array<i32>} : memref<136x256xf32, #tpu.memory_space<vmem>>, vector<1x256xf32>,
    %c0_36 = arith.constant 0 : index
    %c0_37 = arith.constant 0 : index
    %39 = vector.load %arg15[%c0_36, %c0_37] : memref<136x256xf32, #tpu.memory_space<vmem>>, vector<134x256xf32>
    %40 = arith.truncf %39 : vector<134x256xf32> to vector<134x256xbf16>
    %c0_38 = arith.constant 0 : index
    %c0_39 = arith.constant 0 : index
    %c0_40 = arith.constant 0 : index
    %41 = vector.load %arg4[%c0_38, %c0_39, %c0_40] : memref<3x256x256xbf16, #tpu.memory_space<vmem>>, vector<1x256x256xbf16>
    %42 = vector.shape_cast %41 : vector<1x256x256xbf16> to vector<256x256xbf16>
    %cst_41 = arith.constant dense<0.000000e+00> : vector<134x256xf32>
    %43 = tpu.matmul %40, %42, %cst_41 {dimension_numbers = #tpu.dot_dimension_numbers<[1], [0], [0], [1], [0, 0, 1, 1], [], []>} : vector<134x256xbf16>, vector<256x256xbf16>, vector<134x256xf32> -> vector<134x256xf32>
    %c1_42 = arith.constant 1 : index
    %c0_43 = arith.constant 0 : index
    %44 = vector.load %arg15[%c1_42, %c0_43] : memref<136x256xf32, #tpu.memory_space<vmem>>, vector<134x256xf32>
    %45 = arith.truncf %44 : vector<134x256xf32> to vector<134x256xbf16>
    %c1_44 = arith.constant 1 : index
    %c0_45 = arith.constant 0 : index
    %c0_46 = arith.constant 0 : index
    %46 = vector.load %arg4[%c1_44, %c0_45, %c0_46] : memref<3x256x256xbf16, #tpu.memory_space<vmem>>, vector<1x256x256xbf16>
    %47 = vector.shape_cast %46 : vector<1x256x256xbf16> to vector<256x256xbf16>
    %cst_47 = arith.constant dense<0.000000e+00> : vector<134x256xf32>
    %48 = tpu.matmul %45, %47, %cst_47 {dimension_numbers = #tpu.dot_dimension_numbers<[1], [0], [0], [1], [0, 0, 1, 1], [], []>} : vector<134x256xbf16>, vector<256x256xbf16>, vector<134x256xf32> -> vector<134x256xf32>
    %49 = arith.addf %43, %48 : vector<134x256xf32>
    %c2_48 = arith.constant 2 : index
    %c0_49 = arith.constant 0 : index
    %50 = vector.load %arg15[%c2_48, %c0_49] : memref<136x256xf32, #tpu.memory_space<vmem>>, vector<134x256xf32>
    %51 = arith.truncf %50 : vector<134x256xf32> to vector<134x256xbf16>
    %c2_50 = arith.constant 2 : index
    %c0_51 = arith.constant 0 : index
    %c0_52 = arith.constant 0 : index
    %52 = vector.load %arg4[%c2_50, %c0_51, %c0_52] : memref<3x256x256xbf16, #tpu.memory_space<vmem>>, vector<1x256x256xbf16>
    %53 = vector.shape_cast %52 : vector<1x256x256xbf16> to vector<256x256xbf16>
    %cst_53 = arith.constant dense<0.000000e+00> : vector<134x256xf32>
    %54 = tpu.matmul %51, %53, %cst_53 {dimension_numbers = #tpu.dot_dimension_numbers<[1], [0], [0], [1], [0, 0, 1, 1], [], []>} : vector<134x256xbf16>, vector<256x256xbf16>, vector<134x256xf32> -> vector<134x256xf32>
    %55 = arith.addf %49, %54 : vector<134x256xf32>
    %c0_54 = arith.constant 0 : index
    %c0_55 = arith.constant 0 : index
    %56 = vector.load %arg5[%c0_54, %c0_55] : memref<1x256xf32, #tpu.memory_space<vmem>>, vector<1x256xf32>
    %57 = vector.broadcast %56 : vector<1x256xf32> to vector<134x256xf32>
    %58 = arith.addf %55, %57 : vector<134x256xf32>
    %cst_56 = arith.constant 0.000000e+00 : f32
    %59 = vector.broadcast %cst_56 : f32 to vector<134x256xf32>
    %60 = arith.maximumf %58, %59 : vector<134x256xf32>
    %61 = arith.truncf %60 : vector<134x256xf32> to vector<134x256xbf16>
    %c0_57 = arith.constant 0 : index
    %c0_58 = arith.constant 0 : index
    %c0_59 = arith.constant 0 : index
    %62 = vector.load %arg6[%c0_57, %c0_58, %c0_59] : memref<2x256x128xbf16, #tpu.memory_space<vmem>>, vector<1x256x128xbf16>
    %63 = vector.shape_cast %62 : vector<1x256x128xbf16> to vector<256x128xbf16>
    %cst_60 = arith.constant dense<0.000000e+00> : vector<134x128xf32>
    %64 = tpu.matmul %61, %63, %cst_60 {dimension_numbers = #tpu.dot_dimension_numbers<[1], [0], [0], [1], [0, 0, 1, 1], [], []>} : vector<134x256xbf16>, vector<256x128xbf16>, vector<134x128xf32> -> vector<134x128xf32>
    %c1_61 = arith.constant 1 : index
    %c0_62 = arith.constant 0 : index
    %c0_63 = arith.constant 0 : index
    %65 = vector.load %arg6[%c1_61, %c0_62, %c0_63] : memref<2x256x128xbf16, #tpu.memory_space<vmem>>, vector<1x256x128xbf16>
    %66 = vector.shape_cast %65 : vector<1x256x128xbf16> to vector<256x128xbf16>
    %cst_64 = arith.constant dense<0.000000e+00> : vector<134x128xf32>
    %67 = tpu.matmul %61, %66, %cst_64 {dimension_numbers = #tpu.dot_dimension_numbers<[1], [0], [0], [1], [0, 0, 1, 1], [], []>} : vector<134x256xbf16>, vector<256x128xbf16>, vector<134x128xf32> -> vector<134x128xf32>
    %68 = arith.maximumf %64, %67 : vector<134x128xf32>
    %c0_65 = arith.constant 0 : index
    %c0_66 = arith.constant 0 : index
    %69 = vector.load %arg16[%c0_65, %c0_66] : memref<136x128xf32, #tpu.memory_space<vmem>>, vector<134x128xf32>
    tpu.vector_store %arg16[%c0_65, %c0_66], %68 {strides = array<i32>} : memref<136x128xf32, #tpu.memory_space<vmem>>, vector<134x128xf32>,
    %c0_67 = arith.constant 0 : index
    %c0_68 = arith.constant 0 : index
    %70 = tpu.strided_load %arg16[%c0_67, %c0_68] {strides = array<i32: 2, 1>} : memref<136x128xf32, #tpu.memory_space<vmem>>, vector<16x128xf32>
    %c1_69 = arith.constant 1 : index
    %c0_70 = arith.constant 0 : index
    %71 = tpu.strided_load %arg16[%c1_69, %c0_70] {strides = array<i32: 2, 1>} : memref<136x128xf32, #tpu.memory_space<vmem>>, vector<16x128xf32>
    %72 = arith.maximumf %70, %71 : vector<16x128xf32>
    %c1_71 = arith.constant 1 : index
    %c0_72 = arith.constant 0 : index
    %73 = vector.load %arg17[%c1_71, %c0_72] : memref<72x128xf32, #tpu.memory_space<vmem>>, vector<16x128xf32>
    tpu.vector_store %arg17[%c1_71, %c0_72], %72 {strides = array<i32>} : memref<72x128xf32, #tpu.memory_space<vmem>>, vector<16x128xf32>,
    %cst_73 = arith.constant 0.000000e+00 : f32
    %74 = vector.broadcast %cst_73 : f32 to vector<1x128xf32>
    %c0_74 = arith.constant 0 : index
    %c0_75 = arith.constant 0 : index
    %75 = vector.load %arg17[%c0_74, %c0_75] : memref<72x128xf32, #tpu.memory_space<vmem>>, vector<1x128xf32>
    tpu.vector_store %arg17[%c0_74, %c0_75], %74 {strides = array<i32>} : memref<72x128xf32, #tpu.memory_space<vmem>>, vector<1x128xf32>,
    %cst_76 = arith.constant 0.000000e+00 : f32
    %76 = vector.broadcast %cst_76 : f32 to vector<1x128xf32>
    %c17 = arith.constant 17 : index
    %c0_77 = arith.constant 0 : index
    %77 = vector.load %arg17[%c17, %c0_77] : memref<72x128xf32, #tpu.memory_space<vmem>>, vector<1x128xf32>
    tpu.vector_store %arg17[%c17, %c0_77], %76 {strides = array<i32>} : memref<72x128xf32, #tpu.memory_space<vmem>>, vector<1x128xf32>,
    %c34_78 = arith.constant 34 : index
    %c0_79 = arith.constant 0 : index
    %78 = tpu.strided_load %arg16[%c34_78, %c0_79] {strides = array<i32: 2, 1>} : memref<136x128xf32, #tpu.memory_space<vmem>>, vector<16x128xf32>
    %c35 = arith.constant 35 : index
    %c0_80 = arith.constant 0 : index
    %79 = tpu.strided_load %arg16[%c35, %c0_80] {strides = array<i32: 2, 1>} : memref<136x128xf32, #tpu.memory_space<vmem>>, vector<16x128xf32>
    %80 = arith.maximumf %78, %79 : vector<16x128xf32>
    %c19 = arith.constant 19 : index
    %c0_81 = arith.constant 0 : index
    %81 = vector.load %arg17[%c19, %c0_81] : memref<72x128xf32, #tpu.memory_space<vmem>>, vector<16x128xf32>
    tpu.vector_store %arg17[%c19, %c0_81], %80 {strides = array<i32>} : memref<72x128xf32, #tpu.memory_space<vmem>>, vector<16x128xf32>,
    %cst_82 = arith.constant 0.000000e+00 : f32
    %82 = vector.broadcast %cst_82 : f32 to vector<1x128xf32>
    %c18 = arith.constant 18 : index
    %c0_83 = arith.constant 0 : index
    %83 = vector.load %arg17[%c18, %c0_83] : memref<72x128xf32, #tpu.memory_space<vmem>>, vector<1x128xf32>
    tpu.vector_store %arg17[%c18, %c0_83], %82 {strides = array<i32>} : memref<72x128xf32, #tpu.memory_space<vmem>>, vector<1x128xf32>,
    %cst_84 = arith.constant 0.000000e+00 : f32
    %84 = vector.broadcast %cst_84 : f32 to vector<1x128xf32>
    %c35_85 = arith.constant 35 : index
    %c0_86 = arith.constant 0 : index
    %85 = vector.load %arg17[%c35_85, %c0_86] : memref<72x128xf32, #tpu.memory_space<vmem>>, vector<1x128xf32>
    tpu.vector_store %arg17[%c35_85, %c0_86], %84 {strides = array<i32>} : memref<72x128xf32, #tpu.memory_space<vmem>>, vector<1x128xf32>,
    %c68_87 = arith.constant 68 : index
    %c0_88 = arith.constant 0 : index
    %86 = tpu.strided_load %arg16[%c68_87, %c0_88] {strides = array<i32: 2, 1>} : memref<136x128xf32, #tpu.memory_space<vmem>>, vector<16x128xf32>
    %c69 = arith.constant 69 : index
    %c0_89 = arith.constant 0 : index
    %87 = tpu.strided_load %arg16[%c69, %c0_89] {strides = array<i32: 2, 1>} : memref<136x128xf32, #tpu.memory_space<vmem>>, vector<16x128xf32>
    %88 = arith.maximumf %86, %87 : vector<16x128xf32>
    %c37 = arith.constant 37 : index
    %c0_90 = arith.constant 0 : index
    %89 = vector.load %arg17[%c37, %c0_90] : memref<72x128xf32, #tpu.memory_space<vmem>>, vector<16x128xf32>
    tpu.vector_store %arg17[%c37, %c0_90], %88 {strides = array<i32>} : memref<72x128xf32, #tpu.memory_space<vmem>>, vector<16x128xf32>,
    %cst_91 = arith.constant 0.000000e+00 : f32
    %90 = vector.broadcast %cst_91 : f32 to vector<1x128xf32>
    %c36 = arith.constant 36 : index
    %c0_92 = arith.constant 0 : index
    %91 = vector.load %arg17[%c36, %c0_92] : memref<72x128xf32, #tpu.memory_space<vmem>>, vector<1x128xf32>
    tpu.vector_store %arg17[%c36, %c0_92], %90 {strides = array<i32>} : memref<72x128xf32, #tpu.memory_space<vmem>>, vector<1x128xf32>,
    %cst_93 = arith.constant 0.000000e+00 : f32
    %92 = vector.broadcast %cst_93 : f32 to vector<1x128xf32>
    %c53 = arith.constant 53 : index
    %c0_94 = arith.constant 0 : index
    %93 = vector.load %arg17[%c53, %c0_94] : memref<72x128xf32, #tpu.memory_space<vmem>>, vector<1x128xf32>
    tpu.vector_store %arg17[%c53, %c0_94], %92 {strides = array<i32>} : memref<72x128xf32, #tpu.memory_space<vmem>>, vector<1x128xf32>,
    %c102_95 = arith.constant 102 : index
    %c0_96 = arith.constant 0 : index
    %94 = tpu.strided_load %arg16[%c102_95, %c0_96] {strides = array<i32: 2, 1>} : memref<136x128xf32, #tpu.memory_space<vmem>>, vector<16x128xf32>
    %c103 = arith.constant 103 : index
    %c0_97 = arith.constant 0 : index
    %95 = tpu.strided_load %arg16[%c103, %c0_97] {strides = array<i32: 2, 1>} : memref<136x128xf32, #tpu.memory_space<vmem>>, vector<16x128xf32>
    %96 = arith.maximumf %94, %95 : vector<16x128xf32>
    %c55 = arith.constant 55 : index
    %c0_98 = arith.constant 0 : index
    %97 = vector.load %arg17[%c55, %c0_98] : memref<72x128xf32, #tpu.memory_space<vmem>>, vector<16x128xf32>
    tpu.vector_store %arg17[%c55, %c0_98], %96 {strides = array<i32>} : memref<72x128xf32, #tpu.memory_space<vmem>>, vector<16x128xf32>,
    %cst_99 = arith.constant 0.000000e+00 : f32
    %98 = vector.broadcast %cst_99 : f32 to vector<1x128xf32>
    %c54 = arith.constant 54 : index
    %c0_100 = arith.constant 0 : index
    %99 = vector.load %arg17[%c54, %c0_100] : memref<72x128xf32, #tpu.memory_space<vmem>>, vector<1x128xf32>
    tpu.vector_store %arg17[%c54, %c0_100], %98 {strides = array<i32>} : memref<72x128xf32, #tpu.memory_space<vmem>>, vector<1x128xf32>,
    %cst_101 = arith.constant 0.000000e+00 : f32
    %100 = vector.broadcast %cst_101 : f32 to vector<1x128xf32>
    %c71 = arith.constant 71 : index
    %c0_102 = arith.constant 0 : index
    %101 = vector.load %arg17[%c71, %c0_102] : memref<72x128xf32, #tpu.memory_space<vmem>>, vector<1x128xf32>
    tpu.vector_store %arg17[%c71, %c0_102], %100 {strides = array<i32>} : memref<72x128xf32, #tpu.memory_space<vmem>>, vector<1x128xf32>,
    %c0_103 = arith.constant 0 : index
    %c0_104 = arith.constant 0 : index
    %102 = vector.load %arg17[%c0_103, %c0_104] : memref<72x128xf32, #tpu.memory_space<vmem>>, vector<70x128xf32>
    %103 = arith.truncf %102 : vector<70x128xf32> to vector<70x128xbf16>
    %c0_105 = arith.constant 0 : index
    %c0_106 = arith.constant 0 : index
    %c0_107 = arith.constant 0 : index
    %104 = vector.load %arg7[%c0_105, %c0_106, %c0_107] : memref<3x128x256xbf16, #tpu.memory_space<vmem>>, vector<1x128x256xbf16>
    %105 = vector.shape_cast %104 : vector<1x128x256xbf16> to vector<128x256xbf16>
    %cst_108 = arith.constant dense<0.000000e+00> : vector<70x256xf32>
    %106 = tpu.matmul %103, %105, %cst_108 {dimension_numbers = #tpu.dot_dimension_numbers<[1], [0], [0], [1], [0, 0, 1, 1], [], []>} : vector<70x128xbf16>, vector<128x256xbf16>, vector<70x256xf32> -> vector<70x256xf32>
    %c1_109 = arith.constant 1 : index
    %c0_110 = arith.constant 0 : index
    %107 = vector.load %arg17[%c1_109, %c0_110] : memref<72x128xf32, #tpu.memory_space<vmem>>, vector<70x128xf32>
    %108 = arith.truncf %107 : vector<70x128xf32> to vector<70x128xbf16>
    %c1_111 = arith.constant 1 : index
    %c0_112 = arith.constant 0 : index
    %c0_113 = arith.constant 0 : index
    %109 = vector.load %arg7[%c1_111, %c0_112, %c0_113] : memref<3x128x256xbf16, #tpu.memory_space<vmem>>, vector<1x128x256xbf16>
    %110 = vector.shape_cast %109 : vector<1x128x256xbf16> to vector<128x256xbf16>
    %cst_114 = arith.constant dense<0.000000e+00> : vector<70x256xf32>
    %111 = tpu.matmul %108, %110, %cst_114 {dimension_numbers = #tpu.dot_dimension_numbers<[1], [0], [0], [1], [0, 0, 1, 1], [], []>} : vector<70x128xbf16>, vector<128x256xbf16>, vector<70x256xf32> -> vector<70x256xf32>
    %112 = arith.addf %106, %111 : vector<70x256xf32>
    %c2_115 = arith.constant 2 : index
    %c0_116 = arith.constant 0 : index
    %113 = vector.load %arg17[%c2_115, %c0_116] : memref<72x128xf32, #tpu.memory_space<vmem>>, vector<70x128xf32>
    %114 = arith.truncf %113 : vector<70x128xf32> to vector<70x128xbf16>
    %c2_117 = arith.constant 2 : index
    %c0_118 = arith.constant 0 : index
    %c0_119 = arith.constant 0 : index
    %115 = vector.load %arg7[%c2_117, %c0_118, %c0_119] : memref<3x128x256xbf16, #tpu.memory_space<vmem>>, vector<1x128x256xbf16>
    %116 = vector.shape_cast %115 : vector<1x128x256xbf16> to vector<128x256xbf16>
    %cst_120 = arith.constant dense<0.000000e+00> : vector<70x256xf32>
    %117 = tpu.matmul %114, %116, %cst_120 {dimension_numbers = #tpu.dot_dimension_numbers<[1], [0], [0], [1], [0, 0, 1, 1], [], []>} : vector<70x128xbf16>, vector<128x256xbf16>, vector<70x256xf32> -> vector<70x256xf32>
    %118 = arith.addf %112, %117 : vector<70x256xf32>
    %c0_121 = arith.constant 0 : index
    %c0_122 = arith.constant 0 : index
    %119 = vector.load %arg8[%c0_121, %c0_122] : memref<1x256xf32, #tpu.memory_space<vmem>>, vector<1x256xf32>
    %120 = vector.broadcast %119 : vector<1x256xf32> to vector<70x256xf32>
    %121 = arith.addf %118, %120 : vector<70x256xf32>
    %cst_123 = arith.constant 0.000000e+00 : f32
    %122 = vector.broadcast %cst_123 : f32 to vector<70x256xf32>
    %123 = arith.maximumf %121, %122 : vector<70x256xf32>
    %c0_124 = arith.constant 0 : index
    %c0_125 = arith.constant 0 : index
    %124 = vector.load %arg18[%c0_124, %c0_125] : memref<72x256xf32, #tpu.memory_space<vmem>>, vector<70x256xf32>
    tpu.vector_store %arg18[%c0_124, %c0_125], %123 {strides = array<i32>} : memref<72x256xf32, #tpu.memory_space<vmem>>, vector<70x256xf32>,
    %c0_126 = arith.constant 0 : index
    %c0_127 = arith.constant 0 : index
    %125 = vector.load %arg18[%c0_126, %c0_127] : memref<72x256xf32, #tpu.memory_space<vmem>>, vector<68x256xf32>
    %126 = arith.truncf %125 : vector<68x256xf32> to vector<68x256xbf16>
    %c0_128 = arith.constant 0 : index
    %c0_129 = arith.constant 0 : index
    %c0_130 = arith.constant 0 : index
    %127 = vector.load %arg9[%c0_128, %c0_129, %c0_130] : memref<3x256x256xbf16, #tpu.memory_space<vmem>>, vector<1x256x256xbf16>
    %128 = vector.shape_cast %127 : vector<1x256x256xbf16> to vector<256x256xbf16>
    %cst_131 = arith.constant dense<0.000000e+00> : vector<68x256xf32>
    %129 = tpu.matmul %126, %128, %cst_131 {dimension_numbers = #tpu.dot_dimension_numbers<[1], [0], [0], [1], [0, 0, 1, 1], [], []>} : vector<68x256xbf16>, vector<256x256xbf16>, vector<68x256xf32> -> vector<68x256xf32>
    %c1_132 = arith.constant 1 : index
    %c0_133 = arith.constant 0 : index
    %130 = vector.load %arg18[%c1_132, %c0_133] : memref<72x256xf32, #tpu.memory_space<vmem>>, vector<68x256xf32>
    %131 = arith.truncf %130 : vector<68x256xf32> to vector<68x256xbf16>
    %c1_134 = arith.constant 1 : index
    %c0_135 = arith.constant 0 : index
    %c0_136 = arith.constant 0 : index
    %132 = vector.load %arg9[%c1_134, %c0_135, %c0_136] : memref<3x256x256xbf16, #tpu.memory_space<vmem>>, vector<1x256x256xbf16>
    %133 = vector.shape_cast %132 : vector<1x256x256xbf16> to vector<256x256xbf16>
    %cst_137 = arith.constant dense<0.000000e+00> : vector<68x256xf32>
    %134 = tpu.matmul %131, %133, %cst_137 {dimension_numbers = #tpu.dot_dimension_numbers<[1], [0], [0], [1], [0, 0, 1, 1], [], []>} : vector<68x256xbf16>, vector<256x256xbf16>, vector<68x256xf32> -> vector<68x256xf32>
    %135 = arith.addf %129, %134 : vector<68x256xf32>
    %c2_138 = arith.constant 2 : index
    %c0_139 = arith.constant 0 : index
    %136 = vector.load %arg18[%c2_138, %c0_139] : memref<72x256xf32, #tpu.memory_space<vmem>>, vector<68x256xf32>
    %137 = arith.truncf %136 : vector<68x256xf32> to vector<68x256xbf16>
    %c2_140 = arith.constant 2 : index
    %c0_141 = arith.constant 0 : index
    %c0_142 = arith.constant 0 : index
    %138 = vector.load %arg9[%c2_140, %c0_141, %c0_142] : memref<3x256x256xbf16, #tpu.memory_space<vmem>>, vector<1x256x256xbf16>
    %139 = vector.shape_cast %138 : vector<1x256x256xbf16> to vector<256x256xbf16>
    %cst_143 = arith.constant dense<0.000000e+00> : vector<68x256xf32>
    %140 = tpu.matmul %137, %139, %cst_143 {dimension_numbers = #tpu.dot_dimension_numbers<[1], [0], [0], [1], [0, 0, 1, 1], [], []>} : vector<68x256xbf16>, vector<256x256xbf16>, vector<68x256xf32> -> vector<68x256xf32>
    %141 = arith.addf %135, %140 : vector<68x256xf32>
    %c0_144 = arith.constant 0 : index
    %c0_145 = arith.constant 0 : index
    %142 = vector.load %arg10[%c0_144, %c0_145] : memref<1x256xf32, #tpu.memory_space<vmem>>, vector<1x256xf32>
    %143 = vector.broadcast %142 : vector<1x256xf32> to vector<68x256xf32>
    %144 = arith.addf %141, %143 : vector<68x256xf32>
    %cst_146 = arith.constant 0.000000e+00 : f32
    %145 = vector.broadcast %cst_146 : f32 to vector<68x256xf32>
    %146 = arith.maximumf %144, %145 : vector<68x256xf32>
    %147 = arith.truncf %146 : vector<68x256xf32> to vector<68x256xbf16>
    %c0_147 = arith.constant 0 : index
    %c0_148 = arith.constant 0 : index
    %c0_149 = arith.constant 0 : index
    %148 = vector.load %arg11[%c0_147, %c0_148, %c0_149] : memref<2x256x128xbf16, #tpu.memory_space<vmem>>, vector<1x256x128xbf16>
    %149 = vector.shape_cast %148 : vector<1x256x128xbf16> to vector<256x128xbf16>
    %cst_150 = arith.constant dense<0.000000e+00> : vector<68x128xf32>
    %150 = tpu.matmul %147, %149, %cst_150 {dimension_numbers = #tpu.dot_dimension_numbers<[1], [0], [0], [1], [0, 0, 1, 1], [], []>} : vector<68x256xbf16>, vector<256x128xbf16>, vector<68x128xf32> -> vector<68x128xf32>
    %c1_151 = arith.constant 1 : index
    %c0_152 = arith.constant 0 : index
    %c0_153 = arith.constant 0 : index
    %151 = vector.load %arg11[%c1_151, %c0_152, %c0_153] : memref<2x256x128xbf16, #tpu.memory_space<vmem>>, vector<1x256x128xbf16>
    %152 = vector.shape_cast %151 : vector<1x256x128xbf16> to vector<256x128xbf16>
    %cst_154 = arith.constant dense<0.000000e+00> : vector<68x128xf32>
    %153 = tpu.matmul %147, %152, %cst_154 {dimension_numbers = #tpu.dot_dimension_numbers<[1], [0], [0], [1], [0, 0, 1, 1], [], []>} : vector<68x256xbf16>, vector<256x128xbf16>, vector<68x128xf32> -> vector<68x128xf32>
    %154 = arith.maximumf %150, %153 : vector<68x128xf32>
    %c0_155 = arith.constant 0 : index
    %c0_156 = arith.constant 0 : index
    %155 = vector.load %arg16[%c0_155, %c0_156] : memref<136x128xf32, #tpu.memory_space<vmem>>, vector<68x128xf32>
    tpu.vector_store %arg16[%c0_155, %c0_156], %154 {strides = array<i32>} : memref<136x128xf32, #tpu.memory_space<vmem>>, vector<68x128xf32>,
    %c0_157 = arith.constant 0 : index
    %c0_158 = arith.constant 0 : index
    %156 = tpu.strided_load %arg16[%c0_157, %c0_158] {strides = array<i32: 2, 1>} : memref<136x128xf32, #tpu.memory_space<vmem>>, vector<7x128xf32>
    %c1_159 = arith.constant 1 : index
    %c0_160 = arith.constant 0 : index
    %157 = tpu.strided_load %arg16[%c1_159, %c0_160] {strides = array<i32: 2, 1>} : memref<136x128xf32, #tpu.memory_space<vmem>>, vector<7x128xf32>
    %158 = arith.maximumf %156, %157 : vector<7x128xf32>
    %c0_161 = arith.constant 0 : index
    %c0_162 = arith.constant 0 : index
    %159 = vector.load %arg19[%c0_161, %c0_162] : memref<32x128xf32, #tpu.memory_space<vmem>>, vector<7x128xf32>
    tpu.vector_store %arg19[%c0_161, %c0_162], %158 {strides = array<i32>} : memref<32x128xf32, #tpu.memory_space<vmem>>, vector<7x128xf32>,
    %c18_163 = arith.constant 18 : index
    %c0_164 = arith.constant 0 : index
    %160 = tpu.strided_load %arg16[%c18_163, %c0_164] {strides = array<i32: 2, 1>} : memref<136x128xf32, #tpu.memory_space<vmem>>, vector<7x128xf32>
    %c19_165 = arith.constant 19 : index
    %c0_166 = arith.constant 0 : index
    %161 = tpu.strided_load %arg16[%c19_165, %c0_166] {strides = array<i32: 2, 1>} : memref<136x128xf32, #tpu.memory_space<vmem>>, vector<7x128xf32>
    %162 = arith.maximumf %160, %161 : vector<7x128xf32>
    %c8 = arith.constant 8 : index
    %c0_167 = arith.constant 0 : index
    %163 = vector.load %arg19[%c8, %c0_167] : memref<32x128xf32, #tpu.memory_space<vmem>>, vector<7x128xf32>
    tpu.vector_store %arg19[%c8, %c0_167], %162 {strides = array<i32>} : memref<32x128xf32, #tpu.memory_space<vmem>>, vector<7x128xf32>,
    %c36_168 = arith.constant 36 : index
    %c0_169 = arith.constant 0 : index
    %164 = tpu.strided_load %arg16[%c36_168, %c0_169] {strides = array<i32: 2, 1>} : memref<136x128xf32, #tpu.memory_space<vmem>>, vector<7x128xf32>
    %c37_170 = arith.constant 37 : index
    %c0_171 = arith.constant 0 : index
    %165 = tpu.strided_load %arg16[%c37_170, %c0_171] {strides = array<i32: 2, 1>} : memref<136x128xf32, #tpu.memory_space<vmem>>, vector<7x128xf32>
    %166 = arith.maximumf %164, %165 : vector<7x128xf32>
    %c16 = arith.constant 16 : index
    %c0_172 = arith.constant 0 : index
    %167 = vector.load %arg19[%c16, %c0_172] : memref<32x128xf32, #tpu.memory_space<vmem>>, vector<7x128xf32>
    tpu.vector_store %arg19[%c16, %c0_172], %166 {strides = array<i32>} : memref<32x128xf32, #tpu.memory_space<vmem>>, vector<7x128xf32>,
    %c54_173 = arith.constant 54 : index
    %c0_174 = arith.constant 0 : index
    %168 = tpu.strided_load %arg16[%c54_173, %c0_174] {strides = array<i32: 2, 1>} : memref<136x128xf32, #tpu.memory_space<vmem>>, vector<7x128xf32>
    %c55_175 = arith.constant 55 : index
    %c0_176 = arith.constant 0 : index
    %169 = tpu.strided_load %arg16[%c55_175, %c0_176] {strides = array<i32: 2, 1>} : memref<136x128xf32, #tpu.memory_space<vmem>>, vector<7x128xf32>
    %170 = arith.maximumf %168, %169 : vector<7x128xf32>
    %c24 = arith.constant 24 : index
    %c0_177 = arith.constant 0 : index
    %171 = vector.load %arg19[%c24, %c0_177] : memref<32x128xf32, #tpu.memory_space<vmem>>, vector<7x128xf32>
    tpu.vector_store %arg19[%c24, %c0_177], %170 {strides = array<i32>} : memref<32x128xf32, #tpu.memory_space<vmem>>, vector<7x128xf32>,
    %cst_178 = arith.constant 0.000000e+00 : f32
    %172 = vector.broadcast %cst_178 : f32 to vector<4x128xf32>
    %c0_179 = arith.constant 0 : index
    %c0_180 = arith.constant 0 : index
    %173 = tpu.strided_load %arg19[%c0_179, %c0_180] {strides = array<i32: 8, 1>} : memref<32x128xf32, #tpu.memory_space<vmem>>, vector<4x128xf32>
    %174 = arith.truncf %173 : vector<4x128xf32> to vector<4x128xbf16>
    %c0_181 = arith.constant 0 : index
    %c0_182 = arith.constant 0 : index
    %c0_183 = arith.constant 0 : index
    %175 = vector.load %arg12[%c0_181, %c0_182, %c0_183] : memref<7x128x128xbf16, #tpu.memory_space<vmem>>, vector<1x128x128xbf16>
    %176 = vector.shape_cast %175 : vector<1x128x128xbf16> to vector<128x128xbf16>
    %cst_184 = arith.constant dense<0.000000e+00> : vector<4x128xf32>
    %177 = tpu.matmul %174, %176, %cst_184 {dimension_numbers = #tpu.dot_dimension_numbers<[1], [0], [0], [1], [0, 0, 1, 1], [], []>} : vector<4x128xbf16>, vector<128x128xbf16>, vector<4x128xf32> -> vector<4x128xf32>
    %178 = arith.addf %172, %177 : vector<4x128xf32>
    %c1_185 = arith.constant 1 : index
    %c0_186 = arith.constant 0 : index
    %179 = tpu.strided_load %arg19[%c1_185, %c0_186] {strides = array<i32: 8, 1>} : memref<32x128xf32, #tpu.memory_space<vmem>>, vector<4x128xf32>
    %180 = arith.truncf %179 : vector<4x128xf32> to vector<4x128xbf16>
    %c1_187 = arith.constant 1 : index
    %c0_188 = arith.constant 0 : index
    %c0_189 = arith.constant 0 : index
    %181 = vector.load %arg12[%c1_187, %c0_188, %c0_189] : memref<7x128x128xbf16, #tpu.memory_space<vmem>>, vector<1x128x128xbf16>
    %182 = vector.shape_cast %181 : vector<1x128x128xbf16> to vector<128x128xbf16>
    %cst_190 = arith.constant dense<0.000000e+00> : vector<4x128xf32>
    %183 = tpu.matmul %180, %182, %cst_190 {dimension_numbers = #tpu.dot_dimension_numbers<[1], [0], [0], [1], [0, 0, 1, 1], [], []>} : vector<4x128xbf16>, vector<128x128xbf16>, vector<4x128xf32> -> vector<4x128xf32>
    %184 = arith.addf %178, %183 : vector<4x128xf32>
    %c2_191 = arith.constant 2 : index
    %c0_192 = arith.constant 0 : index
    %185 = tpu.strided_load %arg19[%c2_191, %c0_192] {strides = array<i32: 8, 1>} : memref<32x128xf32, #tpu.memory_space<vmem>>, vector<4x128xf32>
    %186 = arith.truncf %185 : vector<4x128xf32> to vector<4x128xbf16>
    %c2_193 = arith.constant 2 : index
    %c0_194 = arith.constant 0 : index
    %c0_195 = arith.constant 0 : index
    %187 = vector.load %arg12[%c2_193, %c0_194, %c0_195] : memref<7x128x128xbf16, #tpu.memory_space<vmem>>, vector<1x128x128xbf16>
    %188 = vector.shape_cast %187 : vector<1x128x128xbf16> to vector<128x128xbf16>
    %cst_196 = arith.constant dense<0.000000e+00> : vector<4x128xf32>
    %189 = tpu.matmul %186, %188, %cst_196 {dimension_numbers = #tpu.dot_dimension_numbers<[1], [0], [0], [1], [0, 0, 1, 1], [], []>} : vector<4x128xbf16>, vector<128x128xbf16>, vector<4x128xf32> -> vector<4x128xf32>
    %190 = arith.addf %184, %189 : vector<4x128xf32>
    %c3 = arith.constant 3 : index
    %c0_197 = arith.constant 0 : index
    %191 = tpu.strided_load %arg19[%c3, %c0_197] {strides = array<i32: 8, 1>} : memref<32x128xf32, #tpu.memory_space<vmem>>, vector<4x128xf32>
    %192 = arith.truncf %191 : vector<4x128xf32> to vector<4x128xbf16>
    %c3_198 = arith.constant 3 : index
    %c0_199 = arith.constant 0 : index
    %c0_200 = arith.constant 0 : index
    %193 = vector.load %arg12[%c3_198, %c0_199, %c0_200] : memref<7x128x128xbf16, #tpu.memory_space<vmem>>, vector<1x128x128xbf16>
    %194 = vector.shape_cast %193 : vector<1x128x128xbf16> to vector<128x128xbf16>
    %cst_201 = arith.constant dense<0.000000e+00> : vector<4x128xf32>
    %195 = tpu.matmul %192, %194, %cst_201 {dimension_numbers = #tpu.dot_dimension_numbers<[1], [0], [0], [1], [0, 0, 1, 1], [], []>} : vector<4x128xbf16>, vector<128x128xbf16>, vector<4x128xf32> -> vector<4x128xf32>
    %196 = arith.addf %190, %195 : vector<4x128xf32>
    %c4 = arith.constant 4 : index
    %c0_202 = arith.constant 0 : index
    %197 = tpu.strided_load %arg19[%c4, %c0_202] {strides = array<i32: 8, 1>} : memref<32x128xf32, #tpu.memory_space<vmem>>, vector<4x128xf32>
    %198 = arith.truncf %197 : vector<4x128xf32> to vector<4x128xbf16>
    %c4_203 = arith.constant 4 : index
    %c0_204 = arith.constant 0 : index
    %c0_205 = arith.constant 0 : index
    %199 = vector.load %arg12[%c4_203, %c0_204, %c0_205] : memref<7x128x128xbf16, #tpu.memory_space<vmem>>, vector<1x128x128xbf16>
    %200 = vector.shape_cast %199 : vector<1x128x128xbf16> to vector<128x128xbf16>
    %cst_206 = arith.constant dense<0.000000e+00> : vector<4x128xf32>
    %201 = tpu.matmul %198, %200, %cst_206 {dimension_numbers = #tpu.dot_dimension_numbers<[1], [0], [0], [1], [0, 0, 1, 1], [], []>} : vector<4x128xbf16>, vector<128x128xbf16>, vector<4x128xf32> -> vector<4x128xf32>
    %202 = arith.addf %196, %201 : vector<4x128xf32>
    %c5 = arith.constant 5 : index
    %c0_207 = arith.constant 0 : index
    %203 = tpu.strided_load %arg19[%c5, %c0_207] {strides = array<i32: 8, 1>} : memref<32x128xf32, #tpu.memory_space<vmem>>, vector<4x128xf32>
    %204 = arith.truncf %203 : vector<4x128xf32> to vector<4x128xbf16>
    %c5_208 = arith.constant 5 : index
    %c0_209 = arith.constant 0 : index
    %c0_210 = arith.constant 0 : index
    %205 = vector.load %arg12[%c5_208, %c0_209, %c0_210] : memref<7x128x128xbf16, #tpu.memory_space<vmem>>, vector<1x128x128xbf16>
    %206 = vector.shape_cast %205 : vector<1x128x128xbf16> to vector<128x128xbf16>
    %cst_211 = arith.constant dense<0.000000e+00> : vector<4x128xf32>
    %207 = tpu.matmul %204, %206, %cst_211 {dimension_numbers = #tpu.dot_dimension_numbers<[1], [0], [0], [1], [0, 0, 1, 1], [], []>} : vector<4x128xbf16>, vector<128x128xbf16>, vector<4x128xf32> -> vector<4x128xf32>
    %208 = arith.addf %202, %207 : vector<4x128xf32>
    %c6 = arith.constant 6 : index
    %c0_212 = arith.constant 0 : index
    %209 = tpu.strided_load %arg19[%c6, %c0_212] {strides = array<i32: 8, 1>} : memref<32x128xf32, #tpu.memory_space<vmem>>, vector<4x128xf32>
    %210 = arith.truncf %209 : vector<4x128xf32> to vector<4x128xbf16>
    %c6_213 = arith.constant 6 : index
    %c0_214 = arith.constant 0 : index
    %c0_215 = arith.constant 0 : index
    %211 = vector.load %arg12[%c6_213, %c0_214, %c0_215] : memref<7x128x128xbf16, #tpu.memory_space<vmem>>, vector<1x128x128xbf16>
    %212 = vector.shape_cast %211 : vector<1x128x128xbf16> to vector<128x128xbf16>
    %cst_216 = arith.constant dense<0.000000e+00> : vector<4x128xf32>
    %213 = tpu.matmul %210, %212, %cst_216 {dimension_numbers = #tpu.dot_dimension_numbers<[1], [0], [0], [1], [0, 0, 1, 1], [], []>} : vector<4x128xbf16>, vector<128x128xbf16>, vector<4x128xf32> -> vector<4x128xf32>
    %214 = arith.addf %208, %213 : vector<4x128xf32>
    %c0_217 = arith.constant 0 : index
    %c0_218 = arith.constant 0 : index
    %215 = vector.load %arg13[%c0_217, %c0_218] : memref<1x128xf32, #tpu.memory_space<vmem>>, vector<1x128xf32>
    %216 = vector.broadcast %215 : vector<1x128xf32> to vector<4x128xf32>
    %217 = arith.addf %214, %216 : vector<4x128xf32>
    %c0_219 = arith.constant 0 : index
    %c0_220 = arith.constant 0 : index
    %c0_221 = arith.constant 0 : index
    %218 = vector.load %arg14[%c0_219, %c0_220, %c0_221] : memref<1x4x128xf32, #tpu.memory_space<vmem>>, vector<1x4x128xf32>
    %219 = vector.shape_cast %218 : vector<1x4x128xf32> to vector<4x128xf32>
    %220 = vector.shape_cast %217 : vector<4x128xf32> to vector<1x4x128xf32>
    tpu.vector_store %arg14[%c0_219, %c0_220, %c0_221], %220 {strides = array<i32>} : memref<1x4x128xf32, #tpu.memory_space<vmem>>, vector<1x4x128xf32>,
    return
  }
  func.func @transform_0(%arg0: i32) -> (i32, i32) {
    %c0_i32 = arith.constant 0 : i32
    %c0_i32_0 = arith.constant 0 : i32
    return %arg0, %c0_i32 : i32, i32
  }
  func.func @transform_1(%arg0: i32) -> (i32, i32, i32) {
    %c0_i32 = arith.constant 0 : i32
    %c0_i32_0 = arith.constant 0 : i32
    %c0_i32_1 = arith.constant 0 : i32
    %c0_i32_2 = arith.constant 0 : i32
    return %c0_i32, %c0_i32_0, %c0_i32_1 : i32, i32, i32
  }
  func.func @transform_2(%arg0: i32) -> (i32, i32) {
    %c0_i32 = arith.constant 0 : i32
    %c0_i32_0 = arith.constant 0 : i32
    %c0_i32_1 = arith.constant 0 : i32
    return %c0_i32, %c0_i32_0 : i32, i32
  }
  func.func @transform_3(%arg0: i32) -> (i32, i32, i32) {
    %c0_i32 = arith.constant 0 : i32
    %c0_i32_0 = arith.constant 0 : i32
    %c0_i32_1 = arith.constant 0 : i32
    %c0_i32_2 = arith.constant 0 : i32
    return %c0_i32, %c0_i32_0, %c0_i32_1 : i32, i32, i32
  }
  func.func @transform_4(%arg0: i32) -> (i32, i32) {
    %c0_i32 = arith.constant 0 : i32
    %c0_i32_0 = arith.constant 0 : i32
    %c0_i32_1 = arith.constant 0 : i32
    return %c0_i32, %c0_i32_0 : i32, i32
  }
  func.func @transform_5(%arg0: i32) -> (i32, i32, i32) {
    %c0_i32 = arith.constant 0 : i32
    %c0_i32_0 = arith.constant 0 : i32
    %c0_i32_1 = arith.constant 0 : i32
    %c0_i32_2 = arith.constant 0 : i32
    return %c0_i32, %c0_i32_0, %c0_i32_1 : i32, i32, i32
  }
  func.func @transform_6(%arg0: i32) -> (i32, i32, i32) {
    %c0_i32 = arith.constant 0 : i32
    %c0_i32_0 = arith.constant 0 : i32
    %c0_i32_1 = arith.constant 0 : i32
    %c0_i32_2 = arith.constant 0 : i32
    return %c0_i32, %c0_i32_0, %c0_i32_1 : i32, i32, i32
  }
  func.func @transform_7(%arg0: i32) -> (i32, i32) {
    %c0_i32 = arith.constant 0 : i32
    %c0_i32_0 = arith.constant 0 : i32
    %c0_i32_1 = arith.constant 0 : i32
    return %c0_i32, %c0_i32_0 : i32, i32
  }
  func.func @transform_8(%arg0: i32) -> (i32, i32, i32) {
    %c0_i32 = arith.constant 0 : i32
    %c0_i32_0 = arith.constant 0 : i32
    %c0_i32_1 = arith.constant 0 : i32
    %c0_i32_2 = arith.constant 0 : i32
    return %c0_i32, %c0_i32_0, %c0_i32_1 : i32, i32, i32
  }
  func.func @transform_9(%arg0: i32) -> (i32, i32) {
    %c0_i32 = arith.constant 0 : i32
    %c0_i32_0 = arith.constant 0 : i32
    %c0_i32_1 = arith.constant 0 : i32
    return %c0_i32, %c0_i32_0 : i32, i32
  }
  func.func @transform_10(%arg0: i32) -> (i32, i32, i32) {
    %c0_i32 = arith.constant 0 : i32
    %c0_i32_0 = arith.constant 0 : i32
    %c0_i32_1 = arith.constant 0 : i32
    %c0_i32_2 = arith.constant 0 : i32
    return %c0_i32, %c0_i32_0, %c0_i32_1 : i32, i32, i32
  }
  func.func @transform_11(%arg0: i32) -> (i32, i32, i32) {
    %c0_i32 = arith.constant 0 : i32
    %c0_i32_0 = arith.constant 0 : i32
    %c0_i32_1 = arith.constant 0 : i32
    %c0_i32_2 = arith.constant 0 : i32
    return %c0_i32, %c0_i32_0, %c0_i32_1 : i32, i32, i32
  }
  func.func @transform_12(%arg0: i32) -> (i32, i32) {
    %c0_i32 = arith.constant 0 : i32
    %c0_i32_0 = arith.constant 0 : i32
    %c0_i32_1 = arith.constant 0 : i32
    return %c0_i32, %c0_i32_0 : i32, i32
  }
  func.func @transform_13(%arg0: i32) -> (i32, i32, i32) {
    %c0_i32 = arith.constant 0 : i32
    %c0_i32_0 = arith.constant 0 : i32
    %c0_i32_1 = arith.constant 0 : i32
    return %arg0, %c0_i32, %c0_i32_0 : i32, i32, i32
  }
}

</mosaic_0001>

<bundles_post_ra>
// kernel: tiny_vgg_forward.1
= control target key start
LH: loop header
LB: loop body
LE: loop exit
PB: predicated region body
PF: predicated region fallthrough
CT: control target
= control target key end

     0   :  { %18 = vsyncpa [#allocation8], 0  ;;  %s10493_s0 = inlined_call_operand.vmem [shape: f32[272,128], index: 0, kind: input, shape index: {}]   ;;  %s10494_s1 = inlined_call_operand.vmem [shape: bf16[3,128,256], index: 1, kind: input, shape index: {}]   ;;  %s10495_s2 = inlined_call_operand.vmem [shape: f32[1,256], index: 2, kind: input, shape index: {}]   ;;  %s10496_s3 = inlined_call_operand.vmem [shape: bf16[3,256,256], index: 3, kind: input, shape index: {}]   ;;  %s10497_s4 = inlined_call_operand.vmem [shape: f32[1,256], index: 4, kind: input, shape index: {}]   ;;  %s10498_s5 = inlined_call_operand.vmem [shape: bf16[2,256,128], index: 5, kind: input, shape index: {}]   ;;  %s10499_s6 = inlined_call_operand.vmem [shape: bf16[3,128,256], index: 6, kind: input, shape index: {}]   ;;  %s10500_s7 = inlined_call_operand.vmem [shape: f32[1,256], index: 7, kind: input, shape index: {}]   ;;  %s10501_s8 = inlined_call_operand.vmem [shape: bf16[3,256,256], index: 8, kind: input, shape index: {}]   ;;  %s10502_s9 = inlined_call_operand.vmem [shape: f32[1,256], index: 9, kind: input, shape index: {}]   ;;  %s10503_s10 = inlined_call_operand.vmem [shape: bf16[2,256,128], index: 10, kind: input, shape index: {}]   ;;  %s10504_s11 = inlined_call_operand.vmem [shape: bf16[7,128,128], index: 11, kind: input, shape index: {}]   ;;  %s10505_s12 = inlined_call_operand.vmem [shape: f32[1,128], index: 12, kind: input, shape index: {}]   ;;  %s10506_s13 = inlined_call_operand.hbm [shape: f32[2,4,128], index: 13, kind: output, shape index: {}]  }
   0x1   :  { %20 = vsyncpa [#allocation8 + $0x1], 0  ;;  %s8548_s25 = smov 0   ;;  %s8550_s26 = smov 0  }
   0x2   :  { %s8552_s27 = smov 0   ;;  %s8554_s28 = smov 0  }
   0x3 LB: > { %10512 = sst [smem:[#allocation10_spill]] %s8460_s25  ;;  %s8569_s29 = sadd.s32 4294967295, %s8472_s28   ;;  %s8472_s28 = sphi %s8554_s28, %s10523_s28   ;;  %s8468_s27 = sphi %s8552_s27, %s10525_s27   ;;  %s8464_s26 = sphi %s8550_s26, %s10527_s26   ;;  %s8460_s25 = sphi %s8548_s25, %s10526_s25  }
   0x4   : > { %10513 = sst [smem:[#allocation11_spill]] %s8468_s27  ;;  %s6418_s30 = sadd.s32 4294967294, %s8472_s28  }
   0x5   : > { %s8573_s14 = sadd.s32 1, %s8472_s28   ;;  %s311_s15 = sadd.s32 1, %s8468_s27 }
   0x6   : > { %10514 = sst [smem:[#allocation12_spill]] %s8573_s14  ;;  %s308_s16 = ssub.s32 %s8472_s28, %s8573_s14 }
   0x7   : > { %p321_p0 = scmp.ne.s32.totalorder %s8468_s27, %s8464_s26  ;;  %p309_p1 = scmp.eq.s32.totalorder %s308_s16, 0 }
   0x8   : > { %p322_p2 = scmp.eq.s32.totalorder %s8569_s29, 1  ;;  %p327_p3 = scmp.ne.s32.totalorder %s8464_s26, %s8460_s25 }
   0x9   : > { %p328_p4 = scmp.eq.s32.totalorder %s6418_s30, 1  ;;  %p6421_p7 = scmp.ge.s32.totalorder %s8472_s28, 1 }
   0xa   : > { %s8584_s17 = scalar_select %p309_p1, %s8468_s27, %s311_s15  }
   0xb   : > { %p8586_p5 = por %p322_p2, %p321_p0  ;;  %p8590_p6 = por %p328_p4, %p327_p3 }
   0xc   : > { %10515 = sst [smem:[#allocation13_spill]] %s8584_s17  ;;  %p391_p8 = scmp.lt.s32.totalorder %s8472_s28, 3 }
   0xd   : > { %s10517_s19 = scalar_select %p8590_p6, 1, 0 }
   0xe   : > { %p392_p9 = pnand %p6421_p7, %p391_p8 }
   0xf   : > { %10518 = sst [smem:[#allocation14_spill]] %s10517_s19  ;;  %v7858_v0 = vld [vmem:[%s10494_s1 + $0x84] ss:$8 sps:$4 sm:$0xff] (!%p392_p9)   ;;  %v7860_v1 = vld [vmem:[%s10494_s1 + $0x80] ss:$8 sps:$4 sm:$0xff] (!%p392_p9)   ;;  %v8474_v2 = vmov (!%p392_p9), 0  }
  0x10   : > { %395 = sbr.rel (%p392_p9) target bundleno = 2381 (0x94d), region = 72  ;;  %639 = vmatprep.mubr.bf16.mxu0 (!%p392_p9), %v8474_v2  ;;  %607 = vmatprep.subr.bf16.mxu0 (!%p392_p9), %v7858_v0  ;;  %v7861_v3 = vld [vmem:[%s10494_s1 + $0x94] ss:$8 sps:$4 sm:$0xff] (!%p392_p9)   ;;  %v7863_v4 = vld [vmem:[%s10494_s1 + $0x90] ss:$8 sps:$4 sm:$0xff] (!%p392_p9)   ;;  %vm1321_vm1 = vcmask (!%p392_p9), 1040384  }
  0x11   : > { %608 = vmatpush1.bf16.msra.mxu0 (!%p392_p9), %v7860_v1  ;;  %v7864_v5 = vld [vmem:[%s10494_s1 + $0xa4] ss:$8 sps:$4 sm:$0xff] (!%p392_p9)   ;;  %v7866_v6 = vld [vmem:[%s10494_s1 + $0xa0] ss:$8 sps:$4 sm:$0xff] (!%p392_p9)   ;;  %v7867_v7 = vld [vmem:[%s10494_s1 + $0xb4] ss:$8 sps:$4 sm:$0xff] (!%p392_p9)  }
  0x12   : > { %609 = vmatprep.subr.bf16.mxu0 (!%p392_p9), %v7861_v3  ;;  %s435_s24 = smul.u32 (!%p392_p9), 17, %s8569_s29  ;;  %v7869_v8 = vld [vmem:[%s10494_s1 + $0xb0] ss:$8 sps:$4 sm:$0xff] (!%p392_p9)   ;;  %v7870_v9 = vld [vmem:[%s10494_s1 + $0xc4] ss:$8 sps:$4 sm:$0xff] (!%p392_p9)   ;;  %vm2390_vm3 = vcmask (!%p392_p9), 1046528  }
  0x13   : > { %v7872_v10 = vld [vmem:[%s10494_s1 + $0xc0] ss:$8 sps:$4 sm:$0xff] (!%p392_p9)   ;;  %v7873_v11 = vld [vmem:[%s10494_s1 + $0xd4] ss:$8 sps:$4 sm:$0xff] (!%p392_p9)   ;;  %v7875_v12 = vld [vmem:[%s10494_s1 + $0xd0] ss:$8 sps:$4 sm:$0xff] (!%p392_p9)  }
  0x14   : > { %p436_p10 = scmp.lt.s32.totalorder (!%p392_p9), %s435_s24, 33  ;;  %v7876_v13 = vld [vmem:[%s10494_s1 + $0xe4] ss:$8 sps:$4 sm:$0xff] (!%p392_p9)   ;;  %v7878_v14 = vld [vmem:[%s10494_s1 + $0xe0] ss:$8 sps:$4 sm:$0xff] (!%p392_p9)   ;;  %vm8476_vm4 = vmmov (!%p392_p9), 0  }
  0x15   : > { %610 = vmatpush1.bf16.msra.mxu0 (!%p392_p9), %v7863_v4  ;;  %v7879_v15 = vld [vmem:[%s10494_s1 + $0xf4] ss:$8 sps:$4 sm:$0xff] (!%p392_p9)   ;;  %v7881_v16 = vld [vmem:[%s10494_s1 + $0xf0] ss:$8 sps:$4 sm:$0xff] (!%p392_p9)   ;;  %v7884_v19 = vld [vmem:[%s10494_s1 + $0x4] ss:$8 sps:$4 sm:$0xff] (!%p392_p9)  }
  0x16   : > { %611 = vmatprep.subr.bf16.mxu0 (!%p392_p9), %v7864_v5  ;;  %v7882_v21 = vld [vmem:[%s10494_s1] ss:$8 sps:$4 sm:$0xff] (!%p392_p9)   ;;  %v7887_v22 = vld [vmem:[%s10494_s1 + $0x14] ss:$8 sps:$4 sm:$0xff] (!%p392_p9)   ;;  %v7885_v25 = vld [vmem:[%s10494_s1 + $0x10] ss:$8 sps:$4 sm:$0xff] (!%p392_p9)  }
  0x17   : > { %s10529_s24 = smov (!%p436_p10, %s435_s24), 33  ;;  %v7890_v26 = vld [vmem:[%s10494_s1 + $0x24] ss:$8 sps:$4 sm:$0xff]   ;;  %v7888_v28 = vld [vmem:[%s10494_s1 + $0x20] ss:$8 sps:$4 sm:$0xff]   ;;  %s8477_s25 = smov [#allocation7]  }
  0x18   : > { %s6423_s20 = sshll.u32 %s10529_s24, 3  ;;  %v7893_v29 = vld [vmem:[%s10494_s1 + $0x34] ss:$8 sps:$4 sm:$0xff]   ;;  %v7891_v32 = vld [vmem:[%s10494_s1 + $0x30] ss:$8 sps:$4 sm:$0xff]   ;;  %s8414_s16 = sshll.u32 %s8477_s25, 4  ;;  %s8415_s16 = int_to_ptr.vmem [resolvable:$false] %s8414_s16 }
  0x19   : > { %612 = vmatpush1.bf16.msra.mxu0 %v7866_v6  ;;  %s8646_s23 = scalar_lea.vmem %s10493_s0, %s6423_s20  ;;  %v7896_v33 = vld [vmem:[%s10494_s1 + $0x44] ss:$8 sps:$4 sm:$0xff]   ;;  %v7894_v34 = vld [vmem:[%s10494_s1 + $0x40] ss:$8 sps:$4 sm:$0xff]   ;;  %v7899_v36 = vld [vmem:[%s10494_s1 + $0x54] ss:$8 sps:$4 sm:$0xff]  }
  0x1a   : > { %613 = vmatprep.subr.bf16.mxu0 %v7867_v7  ;;  %v484_v17 = vld [vmem:[%s8646_s23 + $0x1] sm:$0xff]  ;;  %v485_v18 = vld [vmem:[%s8646_s23 + $0x9] sm:$0xff]  ;;  %v486_v23 = vld [vmem:[%s8646_s23 + $0x11] sm:$0xff]  ;;  %vm1608_vm2 = vsmask.f32 7424  ;;  %s432_s20 = sand.u32 1, %s8464_s26  }
  0x1b   : > { %v501_v20 = vpack.c.bf16 %v485_v18, %v484_v17  ;;  %v487_v24 = vld [vmem:[%s8646_s23 + $0x19] sm:$0xff]  ;;  %v488_v30 = vld [vmem:[%s8646_s23 + $0x21] sm:$0xff]  ;;  %v489_v31 = vld [vmem:[%s8646_s23 + $0x29] sm:$0xff]  ;;  %s6422_s21 = sshll.u32 %s432_s20, 2  ;;  %s6346_s19 = scalar_lea.sflag [#allocation8], %s432_s20 }
  0x1c   : > { %v502_v27 = vpack.c.bf16 %v487_v24, %v486_v23  ;;  %v503_v35 = vpack.c.bf16 %v489_v31, %v488_v30  ;;  %v490_v37 = vld [vmem:[%s8646_s23 + $0x31] sm:$0xff]  ;;  %v491_v38 = vld [vmem:[%s8646_s23 + $0x39] sm:$0xff]  ;;  %v7902_v40 = vld [vmem:[%s10494_s1 + $0x64] ss:$8 sps:$4 sm:$0xff]   ;;  %s434_s17 = scalar_lea.vmem [#allocation7], %s6422_s21  ;;  %s8416_s21 = scalar_lea.vmem %s8415_s16, 128 }
  0x1d   : > { %614 = vmatpush1.bf16.msra.mxu0 %v7869_v8  ;;  %v7897_v39 = vld [vmem:[%s10494_s1 + $0x50] ss:$8 sps:$4 sm:$0xff]   ;;  %v7900_v41 = vld [vmem:[%s10494_s1 + $0x60] ss:$8 sps:$4 sm:$0xff]   ;;  %v504_v42 = vpack.c.bf16 %v491_v38, %v490_v37  ;;  %v7905_v43 = vld [vmem:[%s10494_s1 + $0x74] ss:$8 sps:$4 sm:$0xff]  }
  0x1e   : > { %615 = vmatprep.subr.bf16.mxu0 %v7870_v9  ;;  %v492_v44 = vld [vmem:[%s8646_s23 + $0x41] sm:$0xff]  ;;  %v493_v45 = vld [vmem:[%s8646_s23 + $0x49] sm:$0xff]  ;;  %v494_v49 = vld [vmem:[%s8646_s23 + $0x51] sm:$0xff]  ;;  %s6359_s30 = sshll.u32 %s434_s17, 4  ;;  %s10453_s30 = int_to_ptr.vmem [resolvable:$true] %s6359_s30 }
  0x1f   : > { %v7903_v46 = vld [vmem:[%s10494_s1 + $0x70] ss:$8 sps:$4 sm:$0xff]   ;;  %v7908_v47 = vld [vmem:[%s10494_s1 + $0x104] ss:$8 sps:$4 sm:$0xff]   ;;  %v505_v48 = vpack.c.bf16 %v493_v45, %v492_v44  ;;  %v7906_v62 = vld [vmem:[%s10494_s1 + $0x100] ss:$8 sps:$4 sm:$0xff]   ;;  %p8417_p0 = scmp.lt.s32.totalorder %s10453_s30, %s8415_s16 }
  0x20   : > { %v495_v50 = vld [vmem:[%s8646_s23 + $0x59] sm:$0xff]  ;;  %v496_v52 = vld [vmem:[%s8646_s23 + $0x61] sm:$0xff]  ;;  %v497_v53 = vld [vmem:[%s8646_s23 + $0x69] sm:$0xff] }
  0x21   : > { %616 = vmatpush1.bf16.msra.mxu0 %v7872_v10  ;;  %v506_v51 = vpack.c.bf16 %v495_v50, %v494_v49  ;;  %v507_v54 = vpack.c.bf16 %v497_v53, %v496_v52  ;;  %v498_v55 = vld [vmem:[%s8646_s23 + $0x71] sm:$0xff]  ;;  %v499_v56 = vld [vmem:[%s8646_s23 + $0x79] sm:$0xff]  ;;  %v500_v58 = vld [vmem:[%s8646_s23 + $0x81] sm:$0x3f] }
  0x22   : > { %617 = vmatprep.subr.bf16.mxu0 %v7873_v11  ;;  %v508_v57 = vpack.c.bf16 %v499_v56, %v498_v55  ;;  %v509_v59 = vpack.c.bf16 %v500_v58, %v500_v58  ;;  %v442_v60 = vld [vmem:[%s8646_s23] sm:$0xff]  ;;  %v443_v61 = vld [vmem:[%s8646_s23 + $0x8] sm:$0xff]  ;;  %v7911_v0 = vld [vmem:[%s10494_s1 + $0x114] ss:$8 sps:$4 sm:$0xff]  }
  0x23   : > { %v459_v63 = vpack.c.bf16 %v443_v61, %v442_v60  ;;  %v444_v1 = vld [vmem:[%s8646_s23 + $0x10] sm:$0xff]  ;;  %v445_v3 = vld [vmem:[%s8646_s23 + $0x18] sm:$0xff]  ;;  %v7914_v5 = vld [vmem:[%s10494_s1 + $0x124] ss:$8 sps:$4 sm:$0xff]  }
  0x24   : > { %v7909_v4 = vld [vmem:[%s10494_s1 + $0x110] ss:$8 sps:$4 sm:$0xff]   ;;  %v7912_v6 = vld [vmem:[%s10494_s1 + $0x120] ss:$8 sps:$4 sm:$0xff]   ;;  %v460_v7 = vpack.c.bf16 %v445_v3, %v444_v1  ;;  %v7917_v8 = vld [vmem:[%s10494_s1 + $0x134] ss:$8 sps:$4 sm:$0xff]  }
  0x25   : > { %618 = vmatpush1.bf16.msra.mxu0 %v7875_v12  ;;  %v446_v9 = vld [vmem:[%s8646_s23 + $0x20] sm:$0xff]  ;;  %v447_v10 = vld [vmem:[%s8646_s23 + $0x28] sm:$0xff]  ;;  %v7915_v11 = vld [vmem:[%s10494_s1 + $0x130] ss:$8 sps:$4 sm:$0xff]  }
  0x26   : > { %619 = vmatprep.subr.bf16.mxu0 %v7876_v13  ;;  %v7920_v12 = vld [vmem:[%s10494_s1 + $0x144] ss:$8 sps:$4 sm:$0xff]   ;;  %v7918_v13 = vld [vmem:[%s10494_s1 + $0x140] ss:$8 sps:$4 sm:$0xff]   ;;  %v449_v17 = vld [vmem:[%s8646_s23 + $0x38] sm:$0xff] }
  0x27   : > { %v7921_v18 = vld [vmem:[%s10494_s1 + $0x150] ss:$8 sps:$4 sm:$0xff]   ;;  %v450_v23 = vld [vmem:[%s8646_s23 + $0x40] sm:$0xff]  ;;  %v451_v24 = vld [vmem:[%s8646_s23 + $0x48] sm:$0xff] }
  0x28   : > { %v454_v30 = vld [vmem:[%s8646_s23 + $0x60] sm:$0xff]  ;;  %v455_v31 = vld [vmem:[%s8646_s23 + $0x68] sm:$0xff]  ;;  %v7935_v49 = vld [vmem:[%s10496_s3 + $0x110] ss:$8 sps:$4 sm:$0xff]  }
  0x29   : > { %620 = vmatpush1.bf16.msra.mxu0 %v7878_v14  ;;  %v461_v14 = vpack.c.bf16 %v447_v10, %v446_v9  ;;  %v929_v38 = vld [vmem:[%s8646_s23 + $0x2] sm:$0xff]  ;;  %v7939_v53 = vld [vmem:[%s10496_s3 + $0x134] ss:$8 sps:$4 sm:$0xff]   ;;  %v7941_v56 = vld [vmem:[%s10496_s3 + $0x130] ss:$8 sps:$4 sm:$0xff]  }
  0x2a   : > { %621 = vmatprep.subr.bf16.mxu0 %v7879_v15  ;;  %v7923_v15 = vld [vmem:[%s10494_s1 + $0x154] ss:$8 sps:$4 sm:$0xff]   ;;  %v7930_v44 = vld [vmem:[%s10496_s3 + $0x104] ss:$8 sps:$4 sm:$0xff]   ;;  %v7932_v45 = vld [vmem:[%s10496_s3 + $0x100] ss:$8 sps:$4 sm:$0xff]  }
  0x2b   : > { %1929 = vmatprep.subr.bf16.mxu1 %v7930_v44  ;;  %v7936_v50 = vld [vmem:[%s10496_s3 + $0x124] ss:$8 sps:$4 sm:$0xff]   ;;  %v936_v55 = vld [vmem:[%s8646_s23 + $0x3a] sm:$0xff] }
  0x2c   : > { %1930 = vmatpush1.bf16.msra.mxu1 %v7932_v45  ;;  %v7944_v58 = vld [vmem:[%s10496_s3 + $0x140] ss:$8 sps:$4 sm:$0xff]   ;;  %v7945_v60 = vld [vmem:[%s10496_s3 + $0x154] ss:$8 sps:$4 sm:$0xff]  }
  0x2d   : > { %622 = vmatpush1.bf16.msra.mxu0 %v7881_v16  ;;  %v448_v16 = vld [vmem:[%s8646_s23 + $0x30] sm:$0xff]  ;;  %v937_v61 = vld [vmem:[%s8646_s23 + $0x42] sm:$0xff]  ;;  %v940_v1 = vld [vmem:[%s8646_s23 + $0x5a] sm:$0xff] }
  0x2e   : > { %808 = vmatprep.subr.bf16.mxu0 %v7884_v19  ;;  %v7926_v19 = vld [vmem:[%s10494_s1 + $0x164] ss:$8 sps:$4 sm:$0xff]  }
  0x2f   : > { %v945_v10 = vld [vmem:[%s8646_s23 + $0x82] sm:$0x3f] }
  0x30   : > { %640 = vmatmul.mubr.bf16.vlgmr.msra.gmra.mrb[0].mxu0 %v501_v20  ;;  %v7924_v20 = vld [vmem:[%s10494_s1 + $0x160] ss:$8 sps:$4 sm:$0xff]  }
  0x31   : > { %809 = vmatpush1.bf16.msra.mxu0 %v7882_v21  ;;  %649 = vmatprep.mubr.bf16.mxu0 %v8474_v2  ;;  %v462_v21 = vpack.c.bf16 %v449_v17, %v448_v16  ;;  %v7953_v16 = vld [vmem:[%s10496_s3 + $0x170] ss:$8 sps:$4 sm:$0xff]   ;;  %v7954_v17 = vld [vmem:[%s10496_s3 + $0x184] ss:$8 sps:$4 sm:$0xff]  }
  0x32   : > { %810 = vmatprep.subr.bf16.mxu0 %v7887_v22  ;;  %v7929_v22 = vld [vmem:[%s10494_s1 + $0x174] ss:$8 sps:$4 sm:$0xff]  }
  0x35   : > { %811 = vmatpush1.bf16.msra.mxu0 %v7885_v25  ;;  %v7927_v25 = vld [vmem:[%s10494_s1 + $0x170] ss:$8 sps:$4 sm:$0xff]  }
  0x36   : > { %812 = vmatprep.subr.bf16.mxu0 %v7890_v26  ;;  %v463_v26 = vpack.c.bf16 %v451_v24, %v450_v23  ;;  %v1209_v23 = vlaneseq  ;;  %v7963_v24 = vld [vmem:[%s10496_s3 + $0x1b4] ss:$8 sps:$4 sm:$0xff]  }
  0x38   : > { %650 = vmatmul.mubr.bf16.gmra.mrb[4].mxu0 %v502_v27  ;;  %v452_v27 = vld [vmem:[%s8646_s23 + $0x50] sm:$0xff]  ;;  %vm8896_vm0 = vcmp.lt.s32.totalorder %v1209_v23, 256 }
  0x39   : > { %659 = vmatprep.mubr.bf16.mxu0 %v8474_v2  ;;  %813 = vmatpush1.bf16.msra.mxu0 %v7888_v28  ;;  %v453_v28 = vld [vmem:[%s8646_s23 + $0x58] sm:$0xff] }
  0x3a   : > { %814 = vmatprep.subr.bf16.mxu0 %v7893_v29  ;;  %v464_v29 = vpack.c.bf16 %v453_v28, %v452_v27  ;;  %v8475_v27 = vmov 0.0   ;;  %v7966_v28 = vld [vmem:[%s10496_s3 + $0x1c4] ss:$8 sps:$4 sm:$0xff]  }
  0x3b   : > { %1460 = vst.msk [vmem:[#allocation2] ss:$8 sm:$0x3] %vm8896_vm0, %v8475_v27  ;;  %1481 = vst.msk [vmem:[#allocation2 + $0x107] ss:$8 sm:$0x3] %vm8896_vm0, %v8475_v27 }
  0x3c   : > { %3366 = vst [vmem:[#allocation4] sm:$0x1] %v8475_v27  ;;  %3367 = vst [vmem:[#allocation4 + $0x11] sm:$0x1] %v8475_v27 }
  0x3d   : > { %815 = vmatpush1.bf16.msra.mxu0 %v7891_v32  ;;  %v465_v32 = vpack.c.bf16 %v455_v31, %v454_v30  ;;  %3380 = vst [vmem:[#allocation4 + $0x12] sm:$0x1] %v8475_v27  ;;  %3381 = vst [vmem:[#allocation4 + $0x23] sm:$0x1] %v8475_v27  ;;  %v7969_v30 = vld [vmem:[%s10496_s3 + $0x1d4] ss:$8 sps:$4 sm:$0xff]  }
  0x3e   : > { %816 = vmatprep.subr.bf16.mxu0 %v7896_v33  ;;  %v456_v33 = vld [vmem:[%s8646_s23 + $0x70] sm:$0xff]  ;;  %3394 = vst [vmem:[#allocation4 + $0x24] sm:$0x1] %v8475_v27  ;;  %3395 = vst [vmem:[#allocation4 + $0x35] sm:$0x1] %v8475_v27 }
  0x3f   : > { %3408 = vst [vmem:[#allocation4 + $0x36] sm:$0x1] %v8475_v27  ;;  %3409 = vst [vmem:[#allocation4 + $0x47] sm:$0x1] %v8475_v27  ;;  %v7971_v31 = vld [vmem:[%s10496_s3 + $0x1d0] ss:$8 sps:$4 sm:$0xff]  }
  0x40   : > { %660 = vmatmul.mubr.bf16.gmra.mrb[8].mxu0 %v503_v35 }
  0x41   : > { %669 = vmatprep.mubr.bf16.mxu0 %v8474_v2  ;;  %817 = vmatpush1.bf16.msra.mxu0 %v7894_v34  ;;  %v457_v34 = vld [vmem:[%s8646_s23 + $0x78] sm:$0xff] }
  0x42   : > { %818 = vmatprep.subr.bf16.mxu0 %v7899_v36  ;;  %v466_v35 = vpack.c.bf16 %v457_v34, %v456_v33  ;;  %v458_v36 = vld [vmem:[%s8646_s23 + $0x80] sm:$0x3f]  ;;  %v7975_v34 = vld [vmem:[%s10496_s3 + $0x1f4] ss:$8 sps:$4 sm:$0xff]  }
  0x43   : > { %v467_v37 = vpack.c.bf16 %v458_v36, %v458_v36  ;;  %v7974_v33 = vld [vmem:[%s10496_s3 + $0x1e0] ss:$8 sps:$4 sm:$0xff]   ;;  %v7980_v36 = vld [vmem:[%s10496_s3 + $0x4] ss:$8 sps:$4 sm:$0xff]  }
  0x45   : > { %819 = vmatpush1.bf16.msra.mxu0 %v7897_v39  ;;  %v930_v39 = vld [vmem:[%s8646_s23 + $0xa] sm:$0xff] }
  0x46   : > { %820 = vmatprep.subr.bf16.mxu0 %v7902_v40  ;;  %v946_v40 = vpack.c.bf16 %v930_v39, %v929_v38 }
  0x48   : > { %670 = vmatmul.mubr.bf16.gmra.mrb[12].mxu0 %v504_v42  ;;  %v932_v42 = vld [vmem:[%s8646_s23 + $0x1a] sm:$0xff] }
  0x49   : > { %679 = vmatprep.mubr.bf16.mxu0 %v8474_v2  ;;  %821 = vmatpush1.bf16.msra.mxu0 %v7900_v41  ;;  %v931_v41 = vld [vmem:[%s8646_s23 + $0x12] sm:$0xff] }
  0x4a   : > { %822 = vmatprep.subr.bf16.mxu0 %v7905_v43  ;;  %v947_v43 = vpack.c.bf16 %v932_v42, %v931_v41  ;;  %v1210_v41 = vshrl.u32 %v1209_v23, 7 }
  0x4c   : > { %v8943_v45 = vsub.s32 0, %v1210_v41 }
  0x4d   : > { %823 = vmatpush1.bf16.msra.mxu0 %v7903_v46  ;;  %v7933_v46 = vld [vmem:[%s10496_s3 + $0x114] ss:$8 sps:$4 sm:$0xff]  }
  0x4e   : > { %1052 = vmatprep.subr.bf16.mxu0 %v7908_v47  ;;  %v933_v47 = vld [vmem:[%s8646_s23 + $0x22] sm:$0xff]  ;;  %1931 = vmatprep.subr.bf16.mxu1 %v7933_v46 }
  0x4f   : > { %1932 = vmatpush1.bf16.msra.mxu1 %v7935_v49  ;;  %v8950_v49 = vsub.s32 1, %v1210_v41 }
  0x50   : > { %680 = vmatmul.mubr.bf16.gmra.mrb[16].mxu0 %v505_v48  ;;  %v934_v48 = vld [vmem:[%s8646_s23 + $0x2a] sm:$0xff]  ;;  %1933 = vmatprep.subr.bf16.mxu1 %v7936_v50 }
  0x51   : > { %689 = vmatprep.mubr.bf16.mxu0 %v8474_v2  ;;  %v948_v52 = vpack.c.bf16 %v934_v48, %v933_v47  ;;  %v1207_v48 = vld [vmem:[%s10495_s2] sm:$0x3] }
  0x58   : > { %690 = vmatmul.mubr.bf16.gmra.mrb[20].mxu0 %v506_v51  ;;  %v7938_v51 = vld [vmem:[%s10496_s3 + $0x120] ss:$8 sps:$4 sm:$0xff]  }
  0x59   : > { %699 = vmatprep.mubr.bf16.mxu0 %v8474_v2  ;;  %1934 = vmatpush1.bf16.msra.mxu1 %v7938_v51  ;;  %v8953_v51 = vrot.slane %v1207_v48, %v8943_v45 }
  0x5a   : > { %1935 = vmatprep.subr.bf16.mxu1 %v7939_v53 }
  0x5d   : > { %1936 = vmatpush1.bf16.msra.mxu1 %v7941_v56 }
  0x60   : > { %700 = vmatmul.mubr.bf16.gmra.mrb[24].mxu0 %v507_v54  ;;  %v935_v54 = vld [vmem:[%s8646_s23 + $0x32] sm:$0xff] }
  0x61   : > { %709 = vmatprep.mubr.bf16.mxu0 %v8474_v2 }
  0x68   : > { %710 = vmatmul.mubr.bf16.gmra.mrb[28].mxu0 %v508_v57  ;;  %v7942_v57 = vld [vmem:[%s10496_s3 + $0x144] ss:$8 sps:$4 sm:$0xff]  }
  0x69   : > { %719 = vmatprep.mubr.bf16.mxu0 %v8474_v2  ;;  %1937 = vmatprep.subr.bf16.mxu1 %v7942_v57 }
  0x6a   : > { %1938 = vmatpush1.bf16.msra.mxu1 %v7944_v58 }
  0x6b   : > { %1939 = vmatprep.subr.bf16.mxu1 %v7945_v60 }
  0x70   : > { %720 = vmatmul.mubr.bf16.gmra.mrb[32].mxu0 %v509_v59  ;;  %v949_v59 = vpack.c.bf16 %v936_v55, %v935_v54 }
  0x71   : > { %840 = vmatprep.mubr.bf16.mxu0 %v8474_v2 }
  0x78   : > { %841 = vmatmul.mubr.bf16.vlgmr.msra.gmra.mrb[0].mxu0 %v459_v63 }
  0x79   : > { %1053 = vmatpush1.bf16.msra.mxu0 %v7906_v62  ;;  %850 = vmatprep.mubr.bf16.mxu0 %v8474_v2  ;;  %v938_v62 = vld [vmem:[%s8646_s23 + $0x4a] sm:$0xff] }
  0x7a   : > { %1054 = vmatprep.subr.bf16.mxu0 %v7911_v0  ;;  %v950_v63 = vpack.c.bf16 %v938_v62, %v937_v61  ;;  %v939_v0 = vld [vmem:[%s8646_s23 + $0x52] sm:$0xff] }
  0x7b   : > { %v951_v3 = vpack.c.bf16 %v940_v1, %v939_v0 }
  0x7d   : > { %1055 = vmatpush1.bf16.msra.mxu0 %v7909_v4  ;;  %v941_v4 = vld [vmem:[%s8646_s23 + $0x62] sm:$0xff] }
  0x7e   : > { %1056 = vmatprep.subr.bf16.mxu0 %v7914_v5  ;;  %v942_v5 = vld [vmem:[%s8646_s23 + $0x6a] sm:$0xff] }
  0x80   : > { %851 = vmatmul.mubr.bf16.gmra.mrb[4].mxu0 %v460_v7  ;;  %v943_v7 = vld [vmem:[%s8646_s23 + $0x72] sm:$0xff] }
  0x81   : > { %860 = vmatprep.mubr.bf16.mxu0 %v8474_v2  ;;  %1057 = vmatpush1.bf16.msra.mxu0 %v7912_v6  ;;  %v952_v6 = vpack.c.bf16 %v942_v5, %v941_v4 }
  0x82   : > { %1058 = vmatprep.subr.bf16.mxu0 %v7917_v8  ;;  %v944_v8 = vld [vmem:[%s8646_s23 + $0x7a] sm:$0xff]  ;;  %s7186_s23 = sshll.u32 %s8569_s29, 6  ;;  %s8410_s29 = scalar_lea.vmem %s10453_s30, 64 }
  0x83   : > { %v953_v9 = vpack.c.bf16 %v944_v8, %v943_v7  ;;  %s10451_s14 = scalar_lea.hbm %s10506_s13, %s7186_s23  ;;  %p8411_p11 = scmp.ne.s32.totalorder %s10453_s30, %s8410_s29 }
  0x84   : > { %p8418_p1 = scmp.lt.s32.totalorder %s8416_s21, %s8410_s29 }
  0x85   : > { %1059 = vmatpush1.bf16.msra.mxu0 %v7915_v11  ;;  %v954_v11 = vpack.c.bf16 %v945_v10, %v945_v10  ;;  %p8412_p12 = pnand %p8411_p11, %p8586_p5 }
  0x86   : > { %1060 = vmatprep.subr.bf16.mxu0 %v7920_v12  ;;  %v7947_v12 = vld [vmem:[%s10496_s3 + $0x150] ss:$8 sps:$4 sm:$0xff]   ;;  %p8419_p2 = por %p8418_p1, %p8417_p0 }
  0x87   : > { %1940 = vmatpush1.bf16.msra.mxu1 %v7947_v12  ;;  %p8413_p13 = pneg %p8412_p12 }
  0x88   : > { %861 = vmatmul.mubr.bf16.gmra.mrb[8].mxu0 %v461_v14  ;;  %v7950_v14 = vld [vmem:[%s10496_s3 + $0x160] ss:$8 sps:$4 sm:$0xff]  }
  0x89   : > { %870 = vmatprep.mubr.bf16.mxu0 %v8474_v2  ;;  %1061 = vmatpush1.bf16.msra.mxu0 %v7918_v13  ;;  %v7948_v13 = vld [vmem:[%s10496_s3 + $0x164] ss:$8 sps:$4 sm:$0xff]   ;;  %p8420_p3 = pnand %p8419_p2, %p8413_p13 }
  0x8a   : > { %1062 = vmatprep.subr.bf16.mxu0 %v7923_v15  ;;  %1941 = vmatprep.subr.bf16.mxu1 %v7948_v13  ;;  %v7951_v15 = vld [vmem:[%s10496_s3 + $0x174] ss:$8 sps:$4 sm:$0xff]  }
  0x8b   : > { %1942 = vmatpush1.bf16.msra.mxu1 %v7950_v14 }
  0x8c   : > { %1943 = vmatprep.subr.bf16.mxu1 %v7951_v15 }
  0x8d   : > { %1063 = vmatpush1.bf16.msra.mxu0 %v7921_v18  ;;  %v7956_v18 = vld [vmem:[%s10496_s3 + $0x180] ss:$8 sps:$4 sm:$0xff]  }
  0x8e   : > { %1064 = vmatprep.subr.bf16.mxu0 %v7926_v19  ;;  %v7957_v19 = vld [vmem:[%s10496_s3 + $0x194] ss:$8 sps:$4 sm:$0xff]  }
  0x8f   : > { %1944 = vmatpush1.bf16.msra.mxu1 %v7953_v16 }
  0x90   : > { %871 = vmatmul.mubr.bf16.gmra.mrb[12].mxu0 %v462_v21  ;;  %1945 = vmatprep.subr.bf16.mxu1 %v7954_v17  ;;  %v7960_v21 = vld [vmem:[%s10496_s3 + $0x1a4] ss:$8 sps:$4 sm:$0xff]  }
  0x91   : > { %880 = vmatprep.mubr.bf16.mxu0 %v8474_v2  ;;  %1065 = vmatpush1.bf16.msra.mxu0 %v7924_v20  ;;  %v7959_v20 = vld [vmem:[%s10496_s3 + $0x190] ss:$8 sps:$4 sm:$0xff]  }
  0x92   : > { %1066 = vmatprep.subr.bf16.mxu0 %v7929_v22  ;;  %v7962_v22 = vld [vmem:[%s10496_s3 + $0x1a0] ss:$8 sps:$4 sm:$0xff]  }
  0x93   : > { %1946 = vmatpush1.bf16.msra.mxu1 %v7956_v18 }
  0x94   : > { %1947 = vmatprep.subr.bf16.mxu1 %v7957_v19 }
  0x95   : > { %1067 = vmatpush1.bf16.msra.mxu0 %v7927_v25  ;;  %v7965_v25 = vld [vmem:[%s10496_s3 + $0x1b0] ss:$8 sps:$4 sm:$0xff]  }
  0x97   : > { %1948 = vmatpush1.bf16.msra.mxu1 %v7959_v20 }
  0x98   : > { %881 = vmatmul.mubr.bf16.gmra.mrb[16].mxu0 %v463_v26  ;;  %1949 = vmatprep.subr.bf16.mxu1 %v7960_v21 }
  0x99   : > { %890 = vmatprep.mubr.bf16.mxu0 %v8474_v2 }
  0x9b   : > { %1950 = vmatpush1.bf16.msra.mxu1 %v7962_v22 }
  0x9c   : > { %1951 = vmatprep.subr.bf16.mxu1 %v7963_v24 }
  0x9f   : > { %1952 = vmatpush1.bf16.msra.mxu1 %v7965_v25 }
  0xa0   : > { %891 = vmatmul.mubr.bf16.gmra.mrb[20].mxu0 %v464_v29  ;;  %v7968_v29 = vld [vmem:[%s10496_s3 + $0x1c0] ss:$8 sps:$4 sm:$0xff]   ;;  %1953 = vmatprep.subr.bf16.mxu1 %v7966_v28 }
  0xa1   : > { %900 = vmatprep.mubr.bf16.mxu0 %v8474_v2 }
  0xa3   : > { %1954 = vmatpush1.bf16.msra.mxu1 %v7968_v29 }
  0xa4   : > { %1955 = vmatprep.subr.bf16.mxu1 %v7969_v30 }
  0xa7   : > { %1956 = vmatpush1.bf16.msra.mxu1 %v7971_v31 }
  0xa8   : > { %901 = vmatmul.mubr.bf16.gmra.mrb[24].mxu0 %v465_v32  ;;  %v7972_v32 = vld [vmem:[%s10496_s3 + $0x1e4] ss:$8 sps:$4 sm:$0xff]  }
  0xa9   : > { %910 = vmatprep.mubr.bf16.mxu0 %v8474_v2  ;;  %1957 = vmatprep.subr.bf16.mxu1 %v7972_v32 }
  0xab   : > { %1958 = vmatpush1.bf16.msra.mxu1 %v7974_v33 }
  0xac   : > { %1959 = vmatprep.subr.bf16.mxu1 %v7975_v34 }
  0xb0   : > { %911 = vmatmul.mubr.bf16.gmra.mrb[28].mxu0 %v466_v35  ;;  %v7977_v35 = vld [vmem:[%s10496_s3 + $0x1f0] ss:$8 sps:$4 sm:$0xff]  }
  0xb1   : > { %920 = vmatprep.mubr.bf16.mxu0 %v8474_v2  ;;  %1960 = vmatpush1.bf16.msra.mxu1 %v7977_v35 }
  0xb2   : > { %2210 = vmatprep.subr.bf16.mxu1 %v7980_v36 }
  0xb8   : > { %921 = vmatmul.mubr.bf16.gmra.mrb[36].mxu0 %v467_v37 }
  0xb9   : > { %1084 = vmatprep.mubr.bf16.mxu0 %v8474_v2 }
  0xc0   : > { %1085 = vmatmul.mubr.bf16.vlgmr.msra.gmra.mrb[0].mxu0 %v946_v40 }
  0xc1   : > { %1094 = vmatprep.mubr.bf16.mxu0 %v8474_v2 }
  0xc8   : > { %1095 = vmatmul.mubr.bf16.gmra.mrb[4].mxu0 %v947_v43 }
  0xc9   : > { %1104 = vmatprep.mubr.bf16.mxu0 %v8474_v2 }
  0xd0   : > { %1105 = vmatmul.mubr.bf16.gmra.mrb[8].mxu0 %v948_v52  ;;  %v8956_v52 = vrot.slane %v1207_v48, %v8950_v49 }
  0xd1   : > { %1114 = vmatprep.mubr.bf16.mxu0 %v8474_v2 }
  0xd8   : > { %1115 = vmatmul.mubr.bf16.gmra.mrb[12].mxu0 %v949_v59 }
  0xd9   : > { %1124 = vmatprep.mubr.bf16.mxu0 %v8474_v2 }
  0xe0   : > { %1125 = vmatmul.mubr.bf16.gmra.mrb[16].mxu0 %v950_v63 }
  0xe1   : > { %1134 = vmatprep.mubr.bf16.mxu0 %v8474_v2 }
  0xe8   : > { %1135 = vmatmul.mubr.bf16.gmra.mrb[20].mxu0 %v951_v3 }
  0xe9   : > { %1144 = vmatprep.mubr.bf16.mxu0 %v8474_v2 }
  0xf0   : > { %1145 = vmatmul.mubr.bf16.gmra.mrb[24].mxu0 %v952_v6 }
  0xf1   : > { %1154 = vmatprep.mubr.bf16.mxu0 %v8474_v2 }
  0xf8   : > { %1155 = vmatmul.mubr.bf16.gmra.mrb[28].mxu0 %v953_v9 }
  0xf9   : > { %1164 = vmatprep.mubr.bf16.mxu0 %v8474_v2 }
 0x100   : > { %1165 = vmatmul.mubr.bf16.gmra.mrb[40].mxu0 %v954_v11 }
 0x143   : > { %v721_v37 = vpop.f32.mrb[32].mxu0 }
 0x144   : > { %v723_v38 = vpop.f32.mrb[33].mxu0 }
 0x145   : > { %v725_v39 = vpop.f32.mrb[34].mxu0 }
 0x146   : > { %v726_v40 = vpop.f32.mrb[35].mxu0 }
 0x18b   : > { %v922_v42 = vpop.f32.mrb[36].mxu0 }
 0x18c   : > { %v8941_v43 = vadd.f32 %v922_v42, %v721_v37  ;;  %v924_v44 = vpop.f32.mrb[37].mxu0 }
 0x18d   : > { %v8945_v46 = vadd.f32 %v924_v44, %v723_v38  ;;  %v926_v47 = vpop.f32.mrb[38].mxu0 }
 0x18e   : > { %v927_v50 = vpop.f32.mrb[39].mxu0 }
 0x193   : > { %v1086_v53 = vpop.f32.mrb[0].mxu0 }
 0x194   : > { %v1219_v54 = vadd.f32 %v8953_v51, %v1086_v53  ;;  %v1088_v55 = vpop.f32.mrb[1].mxu0 }
 0x195   : > { %v1220_v56 = vadd.f32 %v8956_v52, %v1088_v55  ;;  %v1090_v57 = vpop.f32.mrb[2].mxu0 }
 0x196   : > { %v1253_v58 = vmax.f32 %v1219_v54, 0.0  ;;  %v1221_v59 = vadd.f32 %v8953_v51, %v1090_v57  ;;  %v1092_v60 = vpop.f32.mrb[3].mxu0 }
 0x197   : > { %v1254_v61 = vmax.f32 %v1220_v56, 0.0  ;;  %v1222_v62 = vadd.f32 %v8956_v52, %v1092_v60 }
 0x198   : > { %v1322_v63 = vrot.slane %v1253_v58, 7  ;;  %v1255_v0 = vmax.f32 %v1221_v59, 0.0 }
 0x199   : > { %v1323_v1 = vrot.slane %v1254_v61, 7  ;;  %v1256_v3 = vmax.f32 %v1222_v62, 0.0 }
 0x19a   : > { %1422 = vst [vmem:[#allocation2] sm:$0xfe] %v1322_v63  ;;  %v1324_v4 = vrot.slane %v1255_v0, 7 }
 0x19b   : > { %1423 = vst [vmem:[#allocation2 + $0x8] sm:$0xfe] %v1323_v1  ;;  %v1326_v5 = vrot.slane %v1256_v3, 7  ;;  %v1096_v6 = vpop.f32.mrb[4].mxu0 }
 0x19c   : > { %v8963_v7 = vsel %vm1321_vm1, %v1322_v63, %v1324_v4  ;;  %v1223_v8 = vadd.f32 %v8953_v51, %v1096_v6  ;;  %v1098_v9 = vpop.f32.mrb[5].mxu0 }
 0x19d   : > { %v8967_v10 = vsel %vm1321_vm1, %v1323_v1, %v1326_v5  ;;  %v1224_v11 = vadd.f32 %v8956_v52, %v1098_v9  ;;  %v1100_v12 = vpop.f32.mrb[6].mxu0 }
 0x19e   : > { %v1257_v13 = vmax.f32 %v1223_v8, 0.0  ;;  %v1225_v14 = vadd.f32 %v8953_v51, %v1100_v12  ;;  %v1102_v15 = vpop.f32.mrb[7].mxu0  ;;  %v7978_v12 = vld [vmem:[%s10496_s3] ss:$8 sps:$4 sm:$0xff]  }
 0x19f   : > { %v1258_v16 = vmax.f32 %v1224_v11, 0.0  ;;  %v1226_v17 = vadd.f32 %v8956_v52, %v1102_v15 }
 0x1a0   : > { %v1328_v18 = vrot.slane %v1257_v13, 7  ;;  %v1259_v19 = vmax.f32 %v1225_v14, 0.0 }
 0x1a1   : > { %v1330_v20 = vrot.slane %v1258_v16, 7  ;;  %v1260_v21 = vmax.f32 %v1226_v17, 0.0  ;;  %v1567_v22 = vld [vmem:[#allocation2] sm:$0xfe]  ;;  %v7983_v17 = vld [vmem:[%s10496_s3 + $0x14] ss:$8 sps:$4 sm:$0xff]  }
 0x1a2   : > { %v1329_v23 = vsel %vm1321_vm1, %v1324_v4, %v1328_v18  ;;  %v1332_v24 = vrot.slane %v1259_v19, 7  ;;  %v1568_v25 = vld [vmem:[#allocation2 + $0x8] sm:$0xfe]  ;;  %v1571_v28 = vpack.c.bf16 %v8963_v7, %v1567_v22 }
 0x1a3   : > { %v1331_v29 = vsel %vm1321_vm1, %v1326_v5, %v1330_v20  ;;  %v1334_v30 = vrot.slane %v1260_v21, 7  ;;  %v1106_v31 = vpop.f32.mrb[8].mxu0  ;;  %v1572_v32 = vpack.c.bf16 %v8967_v10, %v1568_v25 }
 0x1a4   : > { %v1333_v33 = vsel %vm1321_vm1, %v1328_v18, %v1332_v24  ;;  %v1227_v34 = vadd.f32 %v8953_v51, %v1106_v31  ;;  %v1108_v35 = vpop.f32.mrb[9].mxu0  ;;  %v1610_v36 = vshrl.u32 %v1571_v28, 16  ;;  %v1612_v37 = vshll.u32 %v1571_v28, 16 }
 0x1a5   : > { %v1335_v38 = vsel %vm1321_vm1, %v1330_v20, %v1334_v30  ;;  %v1228_v39 = vadd.f32 %v8956_v52, %v1108_v35  ;;  %v1110_v40 = vpop.f32.mrb[10].mxu0  ;;  %v1622_v41 = vshrl.u32 %v1572_v32, 16  ;;  %v1624_v42 = vshll.u32 %v1572_v32, 16  ;;  %v7986_v32 = vld [vmem:[%s10496_s3 + $0x24] ss:$8 sps:$4 sm:$0xff]  }
 0x1a6   : > { %v1261_v44 = vmax.f32 %v1227_v34, 0.0  ;;  %v1229_v47 = vadd.f32 %v8953_v51, %v1110_v40  ;;  %v1112_v48 = vpop.f32.mrb[11].mxu0  ;;  %v8981_v50 = vpack.c.bf16 %v1335_v38, %v1331_v29  ;;  %v8983_v53 = vpack.c.bf16 %v1333_v33, %v1329_v23  ;;  %v7981_v29 = vld [vmem:[%s10496_s3 + $0x10] ss:$8 sps:$4 sm:$0xff]  }
 0x1a7   : > { %v1262_v54 = vmax.f32 %v1228_v39, 0.0  ;;  %v1230_v55 = vadd.f32 %v8956_v52, %v1112_v48  ;;  %v1626_v56 = vrot.slane %v1624_v42, 1  ;;  %v1614_v57 = vrot.slane %v1612_v37, 1 }
 0x1a8   : > { %v1336_v58 = vrot.slane %v1261_v44, 7  ;;  %v1263_v59 = vmax.f32 %v1229_v47, 0.0  ;;  %v1629_v60 = vshll.u32 %v8981_v50, 16  ;;  %v1617_v61 = vshll.u32 %v8983_v53, 16 }
 0x1a9   : > { %v1338_v62 = vrot.slane %v1262_v54, 7  ;;  %v1264_v63 = vmax.f32 %v1230_v55, 0.0  ;;  %v1627_v0 = vor.u32 %v1626_v56, %v1622_v41  ;;  %v1615_v1 = vor.u32 %v1614_v57, %v1610_v36  ;;  %v7984_v41 = vld [vmem:[%s10496_s3 + $0x20] ss:$8 sps:$4 sm:$0xff]   ;;  %v7989_v57 = vld [vmem:[%s10496_s3 + $0x34] ss:$8 sps:$4 sm:$0xff]  }
 0x1aa   : > { %v1337_v3 = vsel %vm1321_vm1, %v1332_v24, %v1336_v58  ;;  %v1340_v4 = vrot.slane %v1263_v59, 7  ;;  %v1631_v5 = vrot.slane %v1629_v60, 1  ;;  %v8989_v6 = vrot.slane %v1617_v61, 1 }
 0x1ab   : > { %1430 = vst [vmem:[#allocation2 + $0x40] sm:$0xff] %v1337_v3  ;;  %v1339_v8 = vsel %vm1321_vm1, %v1334_v30, %v1338_v62  ;;  %v1342_v9 = vrot.slane %v1264_v63, 7  ;;  %v1116_v11 = vpop.f32.mrb[12].mxu0  ;;  %v1641_v37 = vshrl.u32 %v8981_v50, 16  ;;  %v1633_v56 = vshrl.u32 %v8983_v53, 16 }
 0x1ac   : > { %1431 = vst [vmem:[#allocation2 + $0x48] sm:$0xff] %v1339_v8  ;;  %v1341_v13 = vsel %vm1321_vm1, %v1336_v58, %v1340_v4  ;;  %v1231_v14 = vadd.f32 %v8953_v51, %v1116_v11  ;;  %v1118_v15 = vpop.f32.mrb[13].mxu0  ;;  %v1632_v16 = vsel %vm1608_vm2, %v1627_v0, %v1631_v5  ;;  %v1620_v21 = vsel %vm1608_vm2, %v1615_v1, %v8989_v6 }
 0x1ad   : > { %1463 = vst.msk [vmem:[#allocation2 + $0x41] ss:$8 sm:$0x3] %vm8896_vm0, %v8475_v27  ;;  %1466 = vst.msk [vmem:[#allocation2 + $0x42] ss:$8 sm:$0x3] %vm8896_vm0, %v8475_v27  ;;  %v1343_v18 = vsel %vm1321_vm1, %v1338_v62, %v1342_v9  ;;  %v1232_v19 = vadd.f32 %v8956_v52, %v1118_v15  ;;  %1961 = vmatprep.mubr.bf16.mxu1 %v1632_v16  ;;  %v1643_v54 = vor.u32 %v1641_v37, %v1631_v5 }
 0x1ae   : > { %v1120_v20 = vpop.f32.mrb[14].mxu0  ;;  %v1265_v22 = vmax.f32 %v1231_v14, 0.0  ;;  %1962 = vmatmul.mubr.bf16.vlgmr.msra.gmra.mrb[0].mxu1 %v1620_v21  ;;  %v1635_v15 = vor.u32 %v1633_v56, %v8989_v6  ;;  %v7992_v21 = vld [vmem:[%s10496_s3 + $0x44] ss:$8 sps:$4 sm:$0xff]   ;;  %v7995_v37 = vld [vmem:[%s10496_s3 + $0x54] ss:$8 sps:$4 sm:$0xff]  }
 0x1af   : > { %v1233_v23 = vadd.f32 %v8953_v51, %v1120_v20  ;;  %v1122_v24 = vpop.f32.mrb[15].mxu0  ;;  %v1266_v25 = vmax.f32 %v1232_v19, 0.0  ;;  %2211 = vmatpush1.bf16.msra.mxu1 %v7978_v12  ;;  %v7987_v12 = vld [vmem:[%s10496_s3 + $0x30] ss:$8 sps:$4 sm:$0xff]  }
 0x1b0   : > { %v1234_v28 = vadd.f32 %v8956_v52, %v1122_v24  ;;  %v1344_v30 = vrot.slane %v1265_v22, 7  ;;  %2212 = vmatprep.subr.bf16.mxu1 %v7983_v17 }
 0x1b1   : > { %v1267_v31 = vmax.f32 %v1233_v23, 0.0  ;;  %v1346_v33 = vrot.slane %v1266_v25, 7 }
 0x1b2   : > { %v1268_v34 = vmax.f32 %v1234_v28, 0.0  ;;  %v1345_v35 = vsel %vm1321_vm1, %v1340_v4, %v1344_v30 }
 0x1b3   : > { %v1348_v36 = vrot.slane %v1267_v31, 7  ;;  %v1347_v38 = vsel %vm1321_vm1, %v1342_v9, %v1346_v33  ;;  %v1126_v40 = vpop.f32.mrb[16].mxu0  ;;  %2213 = vmatpush1.bf16.msra.mxu1 %v7981_v29 }
 0x1b4   : > { %v1350_v39 = vrot.slane %v1268_v34, 7  ;;  %v1235_v44 = vadd.f32 %v8953_v51, %v1126_v40  ;;  %v1128_v47 = vpop.f32.mrb[17].mxu0  ;;  %v1492_v48 = vld [vmem:[#allocation2 + $0x48] sm:$0xff]  ;;  %v1491_v55 = vld [vmem:[#allocation2 + $0x40] sm:$0xff]  ;;  %2214 = vmatprep.subr.bf16.mxu1 %v7986_v32 }
 0x1b5   : > { %v1349_v42 = vsel %vm1321_vm1, %v1344_v30, %v1348_v36  ;;  %v1236_v59 = vadd.f32 %v8956_v52, %v1128_v47  ;;  %v1130_v60 = vpop.f32.mrb[18].mxu0  ;;  %v9033_v61 = vpack.c.bf16 %v1343_v18, %v1492_v48  ;;  %v9035_v62 = vpack.c.bf16 %v1341_v13, %v1491_v55  ;;  %v7990_v32 = vld [vmem:[%s10496_s3 + $0x40] ss:$8 sps:$4 sm:$0xff]  }
 0x1b6   : > { %v1351_v58 = vsel %vm1321_vm1, %v1346_v33, %v1350_v39  ;;  %v1269_v63 = vmax.f32 %v1235_v44, 0.0  ;;  %v1237_v0 = vadd.f32 %v8953_v51, %v1130_v60  ;;  %v1132_v1 = vpop.f32.mrb[19].mxu0  ;;  %v9040_v4 = vpack.c.bf16 %v1349_v42, %v1345_v35 }
 0x1b7   : > { %v9038_v3 = vpack.c.bf16 %v1351_v58, %v1347_v38  ;;  %v1270_v5 = vmax.f32 %v1236_v59, 0.0  ;;  %v1238_v8 = vadd.f32 %v8956_v52, %v1132_v1  ;;  %v1645_v9 = vshll.u32 %v9033_v61, 16  ;;  %2215 = vmatpush1.bf16.msra.mxu1 %v7984_v41 }
 0x1b8   : > { %v1637_v11 = vshll.u32 %v9035_v62, 16  ;;  %v1352_v13 = vrot.slane %v1269_v63, 7  ;;  %v1271_v14 = vmax.f32 %v1237_v0, 0.0  ;;  %2216 = vmatprep.subr.bf16.mxu1 %v7989_v57  ;;  %v1657_v24 = vshrl.u32 %v9033_v61, 16  ;;  %v7993_v57 = vld [vmem:[%s10496_s3 + $0x50] ss:$8 sps:$4 sm:$0xff]  }
 0x1b9   : > { %v1661_v16 = vshll.u32 %v9038_v3, 16  ;;  %v1354_v17 = vrot.slane %v1270_v5, 7  ;;  %v1272_v18 = vmax.f32 %v1238_v8, 0.0  ;;  %v1647_v19 = vrot.slane %v1645_v9, 1  ;;  %v7998_v63 = vld [vmem:[%s10496_s3 + $0x64] ss:$8 sps:$4 sm:$0xff]  }
 0x1ba   : > { %v1639_v20 = vrot.slane %v1637_v11, 1  ;;  %v1353_v22 = vsel %vm1321_vm1, %v1348_v36, %v1352_v13  ;;  %v1356_v23 = vrot.slane %v1271_v14, 7  ;;  %v1649_v41 = vshrl.u32 %v9035_v62, 16 }
 0x1bb   : > { %v1663_v25 = vrot.slane %v1661_v16, 1  ;;  %1438 = vst [vmem:[#allocation2 + $0x80] sm:$0xff] %v1353_v22  ;;  %v1355_v6 = vsel %vm1321_vm1, %v1350_v39, %v1354_v17  ;;  %v1358_v28 = vrot.slane %v1272_v18, 7  ;;  %v1136_v29 = vpop.f32.mrb[20].mxu0  ;;  %v1648_v30 = vsel %vm1608_vm2, %v1643_v54, %v1647_v19  ;;  %2217 = vmatpush1.bf16.msra.mxu1 %v7987_v12  ;;  %v7996_v16 = vld [vmem:[%s10496_s3 + $0x60] ss:$8 sps:$4 sm:$0xff]  }
 0x1bc   : > { %v1640_v31 = vsel %vm1608_vm2, %v1635_v15, %v1639_v20  ;;  %1439 = vst [vmem:[#allocation2 + $0x88] sm:$0xff] %v1355_v6  ;;  %v1357_v33 = vsel %vm1321_vm1, %v1352_v13, %v1356_v23  ;;  %v1239_v34 = vadd.f32 %v8953_v51, %v1136_v29  ;;  %v1138_v35 = vpop.f32.mrb[21].mxu0  ;;  %1971 = vmatprep.mubr.bf16.mxu1 %v1648_v30  ;;  %v1653_v54 = vshll.u32 %v9040_v4, 16 }
 0x1bd   : > { %v1659_v36 = vor.u32 %v1657_v24, %v1647_v19  ;;  %1469 = vst.msk [vmem:[#allocation2 + $0x83] ss:$8 sm:$0x3] %vm8896_vm0, %v8475_v27  ;;  %1472 = vst.msk [vmem:[#allocation2 + $0x84] ss:$8 sm:$0x3] %vm8896_vm0, %v8475_v27  ;;  %v1359_v38 = vsel %vm1321_vm1, %v1354_v17, %v1358_v28  ;;  %v1240_v39 = vadd.f32 %v8956_v52, %v1138_v35  ;;  %1972 = vmatmul.mubr.bf16.gmra.mrb[4].mxu1 %v1640_v31 }
 0x1be   : > { %v1140_v40 = vpop.f32.mrb[22].mxu0  ;;  %2218 = vmatprep.subr.bf16.mxu1 %v7992_v21  ;;  %v1273_v42 = vmax.f32 %v1239_v34, 0.0  ;;  %v1651_v60 = vor.u32 %v1649_v41, %v1639_v20  ;;  %v1655_v9 = vrot.slane %v1653_v54, 1  ;;  %v1673_v11 = vshrl.u32 %v9038_v3, 16  ;;  %v8001_v24 = vld [vmem:[%s10496_s3 + $0x74] ss:$8 sps:$4 sm:$0xff]  }
 0x1bf   : > { %v1241_v44 = vadd.f32 %v8953_v51, %v1140_v40  ;;  %v1142_v47 = vpop.f32.mrb[23].mxu0  ;;  %v1664_v48 = vsel %vm1608_vm2, %v1659_v36, %v1663_v25  ;;  %v1274_v55 = vmax.f32 %v1240_v39, 0.0  ;;  %2219 = vmatpush1.bf16.msra.mxu1 %v7990_v32  ;;  %v1665_v15 = vshrl.u32 %v9040_v4, 16 }
 0x1c0   : > { %v1242_v56 = vadd.f32 %v8956_v52, %v1142_v47  ;;  %1981 = vmatprep.mubr.bf16.mxu1 %v1664_v48  ;;  %v1360_v58 = vrot.slane %v1273_v42, 7  ;;  %2220 = vmatprep.subr.bf16.mxu1 %v7995_v37  ;;  %v1656_v20 = vsel %vm1608_vm2, %v1651_v60, %v1655_v9  ;;  %v1675_v22 = vor.u32 %v1673_v11, %v1663_v25 }
 0x1c1   : > { %v1275_v59 = vmax.f32 %v1241_v44, 0.0  ;;  %v1362_v0 = vrot.slane %v1274_v55, 7  ;;  %v1667_v44 = vor.u32 %v1665_v15, %v1655_v9 }
 0x1c2   : > { %v1276_v1 = vmax.f32 %v1242_v56, 0.0  ;;  %v1361_v5 = vsel %vm1321_vm1, %v1356_v23, %v1360_v58 }
 0x1c3   : > { %v1364_v8 = vrot.slane %v1275_v59, 7  ;;  %v1363_v12 = vsel %vm1321_vm1, %v1358_v28, %v1362_v0  ;;  %v1146_v14 = vpop.f32.mrb[24].mxu0  ;;  %2221 = vmatpush1.bf16.msra.mxu1 %v7993_v57  ;;  %v8004_v57 = vld [vmem:[%s10496_s3 + $0x84] ss:$8 sps:$4 sm:$0xff]  }
 0x1c4   : > { %v1366_v13 = vrot.slane %v1276_v1, 7  ;;  %v1243_v18 = vadd.f32 %v8953_v51, %v1146_v14  ;;  %v1148_v19 = vpop.f32.mrb[25].mxu0  ;;  %v1500_v21 = vld [vmem:[#allocation2 + $0x88] sm:$0xff]  ;;  %v1499_v23 = vld [vmem:[#allocation2 + $0x80] sm:$0xff]  ;;  %2222 = vmatprep.subr.bf16.mxu1 %v7998_v63 }
 0x1c5   : > { %v1365_v17 = vsel %vm1321_vm1, %v1360_v58, %v1364_v8  ;;  %v1244_v28 = vadd.f32 %v8956_v52, %v1148_v19  ;;  %v1150_v29 = vpop.f32.mrb[26].mxu0  ;;  %1982 = vmatmul.mubr.bf16.gmra.mrb[8].mxu1 %v1656_v20  ;;  %v9100_v30 = vpack.c.bf16 %v1359_v38, %v1500_v21  ;;  %v9102_v31 = vpack.c.bf16 %v1357_v33, %v1499_v23  ;;  %v7999_v33 = vld [vmem:[%s10496_s3 + $0x70] ss:$8 sps:$4 sm:$0xff]  }
 0x1c6   : > { %v1367_v6 = vsel %vm1321_vm1, %v1362_v0, %v1366_v13  ;;  %v1277_v32 = vmax.f32 %v1243_v18, 0.0  ;;  %v1245_v34 = vadd.f32 %v8953_v51, %v1150_v29  ;;  %v1152_v25 = vpop.f32.mrb[27].mxu0  ;;  %v9107_v36 = vpack.c.bf16 %v1365_v17, %v1361_v5  ;;  %v8005_v29 = vld [vmem:[%s10496_s3 + $0x90] ss:$8 sps:$4 sm:$0xff]  }
 0x1c7   : > { %v9105_v35 = vpack.c.bf16 %v1367_v6, %v1363_v12  ;;  %v1278_v37 = vmax.f32 %v1244_v28, 0.0  ;;  %v1246_v39 = vadd.f32 %v8956_v52, %v1152_v25  ;;  %v1677_v40 = vshll.u32 %v9100_v30, 16  ;;  %2223 = vmatpush1.bf16.msra.mxu1 %v7996_v16  ;;  %v8002_v12 = vld [vmem:[%s10496_s3 + $0x80] ss:$8 sps:$4 sm:$0xff]  }
 0x1c8   : > { %v1669_v41 = vshll.u32 %v9102_v31, 16  ;;  %v1368_v38 = vrot.slane %v1277_v32, 7  ;;  %v1279_v42 = vmax.f32 %v1245_v34, 0.0  ;;  %2224 = vmatprep.subr.bf16.mxu1 %v8001_v24  ;;  %v1689_v60 = vshrl.u32 %v9100_v30, 16 }
 0x1c9   : > { %v1693_v47 = vshll.u32 %v9105_v35, 16  ;;  %v1370_v48 = vrot.slane %v1278_v37, 7  ;;  %v1280_v54 = vmax.f32 %v1246_v39, 0.0  ;;  %v1679_v55 = vrot.slane %v1677_v40, 1  ;;  %v8010_v37 = vld [vmem:[%s10496_s3 + $0xa4] ss:$8 sps:$4 sm:$0xff]  }
 0x1ca   : > { %v1671_v56 = vrot.slane %v1669_v41, 1  ;;  %v1369_v58 = vsel %vm1321_vm1, %v1364_v8, %v1368_v38  ;;  %v1372_v59 = vrot.slane %v1279_v42, 7  ;;  %v1681_v20 = vshrl.u32 %v9102_v31, 16 }
 0x1cb   : > { %v9121_v63 = vrot.slane %v1693_v47, 1  ;;  %1446 = vst [vmem:[#allocation2 + $0xc0] sm:$0xff] %v1369_v58  ;;  %v1371_v0 = vsel %vm1321_vm1, %v1366_v13, %v1370_v48  ;;  %v1374_v1 = vrot.slane %v1280_v54, 7  ;;  %v1156_v5 = vpop.f32.mrb[28].mxu0  ;;  %v1680_v9 = vsel %vm1608_vm2, %v1675_v22, %v1679_v55  ;;  %2225 = vmatpush1.bf16.msra.mxu1 %v7999_v33  ;;  %v8007_v13 = vld [vmem:[%s10496_s3 + $0x94] ss:$8 sps:$4 sm:$0xff]  }
 0x1cc   : > { %v1672_v11 = vsel %vm1608_vm2, %v1667_v44, %v1671_v56  ;;  %1447 = vst [vmem:[#allocation2 + $0xc8] sm:$0xff] %v1371_v0  ;;  %v1373_v8 = vsel %vm1321_vm1, %v1368_v38, %v1372_v59  ;;  %v1247_v14 = vadd.f32 %v8953_v51, %v1156_v5  ;;  %v1158_v15 = vpop.f32.mrb[29].mxu0  ;;  %1991 = vmatprep.mubr.bf16.mxu1 %v1680_v9  ;;  %v1685_v6 = vshll.u32 %v9107_v36, 16  ;;  %v8013_v0 = vld [vmem:[%s10496_s3 + $0xb4] ss:$8 sps:$4 sm:$0xff]  }
 0x1cd   : > { %v1691_v16 = vor.u32 %v1689_v60, %v1679_v55  ;;  %1475 = vst.msk [vmem:[#allocation2 + $0xc5] ss:$8 sm:$0x3] %vm8896_vm0, %v8475_v27  ;;  %1478 = vst.msk [vmem:[#allocation2 + $0xc6] ss:$8 sm:$0x3] %vm8896_vm0, %v8475_v27  ;;  %v1375_v17 = vsel %vm1321_vm1, %v1370_v48, %v1374_v1  ;;  %v1248_v18 = vadd.f32 %v8956_v52, %v1158_v15  ;;  %1992 = vmatmul.mubr.bf16.gmra.mrb[12].mxu1 %v1672_v11 }
 0x1ce   : > { %v1160_v19 = vpop.f32.mrb[30].mxu0  ;;  %2226 = vmatprep.subr.bf16.mxu1 %v8004_v57  ;;  %v1281_v21 = vmax.f32 %v1247_v14, 0.0  ;;  %v1683_v25 = vor.u32 %v1681_v20, %v1671_v56  ;;  %v1687_v38 = vrot.slane %v1685_v6, 1  ;;  %v8008_v48 = vld [vmem:[%s10496_s3 + $0xa0] ss:$8 sps:$4 sm:$0xff]   ;;  %v1697_v15 = vshrl.u32 %v9107_v36, 16 }
 0x1cf   : > { %v1249_v22 = vadd.f32 %v8953_v51, %v1160_v19  ;;  %v1162_v23 = vpop.f32.mrb[31].mxu0  ;;  %v1696_v24 = vsel %vm1608_vm2, %v1691_v16, %v9121_v63  ;;  %v1282_v26 = vmax.f32 %v1248_v18, 0.0  ;;  %2227 = vmatpush1.bf16.msra.mxu1 %v8002_v12 }
 0x1d0   : > { %v1250_v28 = vadd.f32 %v8956_v52, %v1162_v23  ;;  %2001 = vmatprep.mubr.bf16.mxu1 %v1696_v24  ;;  %v1376_v32 = vrot.slane %v1281_v21, 7  ;;  %2228 = vmatprep.subr.bf16.mxu1 %v8007_v13  ;;  %v1688_v57 = vsel %vm1608_vm2, %v1683_v25, %v1687_v38  ;;  %v1699_v20 = vor.u32 %v1697_v15, %v1687_v38  ;;  %v8014_v25 = vld [vmem:[%s10496_s3 + $0xc0] ss:$8 sps:$4 sm:$0xff]  }
 0x1d1   : > { %v1283_v34 = vmax.f32 %v1249_v22, 0.0  ;;  %v1378_v39 = vrot.slane %v1282_v26, 7 }
 0x1d2   : > { %v1284_v40 = vmax.f32 %v1250_v28, 0.0  ;;  %v1377_v41 = vsel %vm1321_vm1, %v1372_v59, %v1376_v32  ;;  %v1705_v59 = vshrl.u32 %v9105_v35, 16 }
 0x1d3   : > { %v1380_v33 = vrot.slane %v1283_v34, 7  ;;  %v1379_v42 = vsel %vm1321_vm1, %v1374_v1, %v1378_v39  ;;  %v1166_v47 = vpop.f32.mrb[40].mxu0  ;;  %2229 = vmatpush1.bf16.msra.mxu1 %v8005_v29 }
 0x1d4   : > { %v1382_v44 = vrot.slane %v1284_v40, 7  ;;  %v1205_v55 = vadd.f32 %v1166_v47, %v8941_v43  ;;  %v1168_v56 = vpop.f32.mrb[41].mxu0  ;;  %v1508_v58 = vld [vmem:[#allocation2 + $0xc8] sm:$0xff]  ;;  %v1507_v60 = vld [vmem:[#allocation2 + $0xc0] sm:$0xff]  ;;  %2230 = vmatprep.subr.bf16.mxu1 %v8010_v37 }
 0x1d5   : > { %v1381_v54 = vsel %vm1321_vm1, %v1376_v32, %v1380_v33  ;;  %v1206_v5 = vadd.f32 %v1168_v56, %v8945_v46  ;;  %v1170_v9 = vpop.f32.mrb[42].mxu0  ;;  %2002 = vmatmul.mubr.bf16.gmra.mrb[16].mxu1 %v1688_v57  ;;  %v9168_v11 = vpack.c.bf16 %v1375_v17, %v1508_v58  ;;  %v9170_v43 = vpack.c.bf16 %v1373_v8, %v1507_v60  ;;  %v8011_v8 = vld [vmem:[%s10496_s3 + $0xb0] ss:$8 sps:$4 sm:$0xff]   ;;  %v8025_v57 = vld [vmem:[%s10496_s3 + $0xf4] ss:$8 sps:$4 sm:$0xff]  }
 0x1d6   : > { %v1383_v1 = vsel %vm1321_vm1, %v1378_v39, %v1382_v44  ;;  %v1251_v12 = vadd.f32 %v8953_v51, %v1205_v55  ;;  %v1171_v14 = vpop.f32.mrb[43].mxu0  ;;  %v9176_v13 = vpack.c.bf16 %v1381_v54, %v1377_v41  ;;  %v1707_v51 = vor.u32 %v1705_v59, %v9121_v63  ;;  %v8019_v39 = vld [vmem:[%s10496_s3 + $0xd4] ss:$8 sps:$4 sm:$0xff]   ;;  %v8020_v54 = vld [vmem:[%s10496_s3 + $0xe0] ss:$8 sps:$4 sm:$0xff]  }
 0x1d7   : > { %v9174_v16 = vpack.c.bf16 %v1383_v1, %v1379_v42  ;;  %v1252_v18 = vadd.f32 %v8956_v52, %v1206_v5  ;;  %v1709_v19 = vshll.u32 %v9168_v11, 16  ;;  %v1701_v46 = vshll.u32 %v9170_v43, 16  ;;  %2231 = vmatpush1.bf16.msra.mxu1 %v8008_v48  ;;  %v8016_v52 = vld [vmem:[%s10496_s3 + $0xc4] ss:$8 sps:$4 sm:$0xff]   ;;  %v8023_v1 = vld [vmem:[%s10496_s3 + $0xf0] ss:$8 sps:$4 sm:$0xff]  }
 0x1d8   : > { %v1285_v17 = vmax.f32 %v1251_v12, 0.0  ;;  %2232 = vmatprep.subr.bf16.mxu1 %v8013_v0  ;;  %v1721_v6 = vshrl.u32 %v9168_v11, 16  ;;  %v1713_v38 = vshrl.u32 %v9170_v43, 16  ;;  %v1717_v42 = vshll.u32 %v9176_v13, 16  ;;  %v8028_v12 = vld [vmem:[%s10496_s3 + $0x204] ss:$8 sps:$4 sm:$0xff]  }
 0x1d9   : > { %v1725_v21 = vshll.u32 %v9174_v16, 16  ;;  %v1286_v22 = vmax.f32 %v1252_v18, 0.0  ;;  %v1711_v23 = vrot.slane %v1709_v19, 1  ;;  %v1703_v24 = vrot.slane %v1701_v46, 1 }
 0x1da   : > { %v1384_v26 = vrot.slane %v1285_v17, 7  ;;  %v1719_v48 = vrot.slane %v1717_v42, 1  ;;  %v1737_v5 = vshrl.u32 %v9174_v16, 16  ;;  %v1729_v14 = vshrl.u32 %v9176_v13, 16  ;;  %v8044_v42 = vld [vmem:[%s10496_s3 + $0x260] ss:$8 sps:$4 sm:$0xff]  }
 0x1db   : > { %v1727_v28 = vrot.slane %v1725_v21, 1  ;;  %v1386_v29 = vrot.slane %v1286_v22, 7  ;;  %v1712_v32 = vsel %vm1608_vm2, %v1707_v51, %v1711_v23  ;;  %v1704_v63 = vsel %vm1608_vm2, %v1699_v20, %v1703_v24  ;;  %2233 = vmatpush1.bf16.msra.mxu1 %v8011_v8 }
 0x1dc   : > { %v1723_v34 = vor.u32 %v1721_v6, %v1711_v23  ;;  %v1385_v37 = vsel %vm1321_vm1, %v1380_v33, %v1384_v26  ;;  %2011 = vmatprep.mubr.bf16.mxu1 %v1712_v32  ;;  %2234 = vmatprep.subr.bf16.mxu1 %v8016_v52  ;;  %v8017_v33 = vld [vmem:[%s10496_s3 + $0xd0] ss:$8 sps:$4 sm:$0xff]   ;;  %v1715_v47 = vor.u32 %v1713_v38, %v1703_v24  ;;  %v1484_v52 = vld [vmem:[#allocation2 + $0x8] sm:$0xff]  ;;  %v1483_v24 = vld [vmem:[#allocation2] sm:$0xff] }
 0x1dd   : > { %1454 = vst [vmem:[#allocation2 + $0x100] sm:$0x7f] %v1385_v37  ;;  %v1387_v40 = vsel %vm1321_vm1, %v1382_v44, %v1386_v29  ;;  %2012 = vmatmul.mubr.bf16.gmra.mrb[20].mxu1 %v1704_v63  ;;  %v8022_v44 = vld [vmem:[%s10496_s3 + $0xe4] ss:$8 sps:$4 sm:$0xff]   ;;  %v1739_v18 = vor.u32 %v1737_v5, %v1727_v28  ;;  %v1731_v8 = vor.u32 %v1729_v14, %v1719_v48  ;;  %v8026_v6 = vld [vmem:[%s10496_s3 + $0x200] ss:$8 sps:$4 sm:$0xff]  }
 0x1de   : > { %v1728_v41 = vsel %vm1608_vm2, %v1723_v34, %v1727_v28  ;;  %1455 = vst [vmem:[#allocation2 + $0x108] sm:$0x7f] %v1387_v40  ;;  %v1720_v55 = vsel %vm1608_vm2, %v1715_v47, %v1719_v48  ;;  %v1518_v23 = vpack.c.bf16 %v8967_v10, %v1484_v52  ;;  %v1517_v26 = vpack.c.bf16 %v8963_v7, %v1483_v24  ;;  %v8031_v28 = vld [vmem:[%s10496_s3 + $0x214] ss:$8 sps:$4 sm:$0xff]   ;;  %v8029_v29 = vld [vmem:[%s10496_s3 + $0x210] ss:$8 sps:$4 sm:$0xff]  }
 0x1df   : > { %2021 = vmatprep.mubr.bf16.mxu1 %v1728_v41  ;;  %2235 = vmatpush1.bf16.msra.mxu1 %v8014_v25  ;;  %v8034_v32 = vld [vmem:[%s10496_s3 + $0x224] ss:$8 sps:$4 sm:$0xff]   ;;  %v8032_v63 = vld [vmem:[%s10496_s3 + $0x220] ss:$8 sps:$4 sm:$0xff]   ;;  %v8037_v34 = vld [vmem:[%s10496_s3 + $0x234] ss:$8 sps:$4 sm:$0xff]  }
 0x1e0   : > { %2236 = vmatprep.subr.bf16.mxu1 %v8019_v39  ;;  %v8035_v25 = vld [vmem:[%s10496_s3 + $0x230] ss:$8 sps:$4 sm:$0xff]   ;;  %v8040_v37 = vld [vmem:[%s10496_s3 + $0x244] ss:$8 sps:$4 sm:$0xff]   ;;  %v8038_v39 = vld [vmem:[%s10496_s3 + $0x240] ss:$8 sps:$4 sm:$0xff]  }
 0x1e1   : > { %v8043_v40 = vld [vmem:[%s10496_s3 + $0x254] ss:$8 sps:$4 sm:$0xff]   ;;  %v8041_v41 = vld [vmem:[%s10496_s3 + $0x250] ss:$8 sps:$4 sm:$0xff]   ;;  %v8046_v38 = vld [vmem:[%s10496_s3 + $0x264] ss:$8 sps:$4 sm:$0xff]  }
 0x1e2   : > { %v8047_v47 = vld [vmem:[%s10496_s3 + $0x270] ss:$8 sps:$4 sm:$0xff]   ;;  %v8050_v48 = vld [vmem:[%s10496_s3 + $0x280] ss:$8 sps:$4 sm:$0xff]   ;;  %v2392_v24 = vrot.slane %v8983_v53, 1 }
 0x1e3   : > { %2237 = vmatpush1.bf16.msra.mxu1 %v8017_v33  ;;  %v8049_v33 = vld [vmem:[%s10496_s3 + $0x274] ss:$8 sps:$4 sm:$0xff]   ;;  %v8065_v5 = vld [vmem:[%s10496_s3 + $0x2d0] ss:$8 sps:$4 sm:$0xff]   ;;  %v8068_v14 = vld [vmem:[%s10496_s3 + $0x2e0] ss:$8 sps:$4 sm:$0xff]  }
 0x1e4   : > { %v1569_v56 = vld [vmem:[#allocation2 + $0x100] sm:$0x7f]  ;;  %2238 = vmatprep.subr.bf16.mxu1 %v8022_v44 }
 0x1e5   : > { %2022 = vmatmul.mubr.bf16.gmra.mrb[24].mxu1 %v1720_v55  ;;  %v1570_v58 = vld [vmem:[#allocation2 + $0x108] sm:$0x7f]  ;;  %v1573_v59 = vpack.c.bf16 %v1569_v56, %v1569_v56  ;;  %v8053_v55 = vld [vmem:[%s10496_s3 + $0x290] ss:$8 sps:$4 sm:$0xff]   ;;  %v2331_v52 = vld [vmem:[#allocation2] sm:$0xfc] }
 0x1e6   : > { %v1574_v60 = vpack.c.bf16 %v1570_v58, %v1570_v58  ;;  %v8052_v44 = vld [vmem:[%s10496_s3 + $0x284] ss:$8 sps:$4 sm:$0xff]   ;;  %v8061_v58 = vld [vmem:[%s10496_s3 + $0x2b4] ss:$8 sps:$4 sm:$0xff]  }
 0x1e7   : > { %v1733_v0 = vshll.u32 %v1573_v59, 16  ;;  %2239 = vmatpush1.bf16.msra.mxu1 %v8020_v54  ;;  %v1745_v21 = vshrl.u32 %v1573_v59, 16  ;;  %v8055_v54 = vld [vmem:[%s10496_s3 + $0x294] ss:$8 sps:$4 sm:$0xff]   ;;  %v8058_v56 = vld [vmem:[%s10496_s3 + $0x2a4] ss:$8 sps:$4 sm:$0xff]  }
 0x1e8   : > { %v1741_v9 = vshll.u32 %v1574_v60, 16  ;;  %2240 = vmatprep.subr.bf16.mxu1 %v8025_v57  ;;  %v1748_v46 = vshrl.u32 %v1574_v60, 16  ;;  %v8056_v57 = vld [vmem:[%s10496_s3 + $0x2a0] ss:$8 sps:$4 sm:$0xff]   ;;  %v8059_v59 = vld [vmem:[%s10496_s3 + $0x2b0] ss:$8 sps:$4 sm:$0xff]  }
 0x1e9   : > { %v1735_v15 = vrot.slane %v1733_v0, 1  ;;  %v8064_v60 = vld [vmem:[%s10496_s3 + $0x2c4] ss:$8 sps:$4 sm:$0xff]   ;;  %v8062_v0 = vld [vmem:[%s10496_s3 + $0x2c0] ss:$8 sps:$4 sm:$0xff]  }
 0x1ea   : > { %v1743_v19 = vrot.slane %v1741_v9, 1  ;;  %v8070_v9 = vld [vmem:[%s10496_s3 + $0x2e4] ss:$8 sps:$4 sm:$0xff]  }
 0x1eb   : > { %2241 = vmatpush1.bf16.msra.mxu1 %v8023_v1  ;;  %v1736_v20 = vsel %vm1608_vm2, %v1731_v8, %v1735_v15  ;;  %v1747_v22 = vor.u32 %v1745_v21, %v1735_v15  ;;  %v8067_v1 = vld [vmem:[%s10496_s3 + $0x2d4] ss:$8 sps:$4 sm:$0xff]  }
 0x1ec   : > { %v1744_v17 = vsel %vm1608_vm2, %v1739_v18, %v1743_v19  ;;  %v1750_v51 = vor.u32 %v1748_v46, %v1743_v19  ;;  %2603 = vmatprep.subr.bf16.mxu1 %v8028_v12  ;;  %v1516_v12 = vld [vmem:[#allocation2 + $0x108] sm:$0x3f]  ;;  %v8073_v15 = vld [vmem:[%s10496_s3 + $0x2f4] ss:$8 sps:$4 sm:$0xff]   ;;  %v8071_v46 = vld [vmem:[%s10496_s3 + $0x2f0] ss:$8 sps:$4 sm:$0xff]  }
 0x1ed   : > { %2031 = vmatprep.mubr.bf16.mxu1 %v1744_v17  ;;  %v1534_v18 = vpack.c.bf16 %v1516_v12, %v1516_v12  ;;  %v2332_v19 = vld [vmem:[#allocation2 + $0x8] sm:$0xfc]  ;;  %v1515_v17 = vld [vmem:[#allocation2 + $0x100] sm:$0x3f]  ;;  %v2409_v12 = vrot.slane %v9107_v36, 1 }
 0x1ee   : > { %2032 = vmatmul.mubr.bf16.gmra.mrb[28].mxu1 %v1736_v20  ;;  %v2336_v8 = vpack.c.bf16 %v8967_v10, %v2332_v19  ;;  %v1533_v20 = vpack.c.bf16 %v1515_v17, %v1515_v17  ;;  %v2413_v19 = vrot.slane %v9170_v43, 1 }
 0x1ef   : > { %2041 = vmatprep.mubr.bf16.mxu1 %v1750_v51  ;;  %v2395_v51 = vrot.slane %v8981_v50, 1 }
 0x1f0   : > { %v2394_v21 = vrot.slane %v2336_v8, 1  ;;  %v2334_v8 = vld [vmem:[#allocation2 + $0x108] sm:$0xff]  ;;  %v2414_v17 = vsel %vm2390_vm3, %v2409_v12, %v2413_v19 }
 0x1f6   : > { %2042 = vmatmul.mubr.bf16.gmra.mrb[32].mxu1 %v1747_v22  ;;  %v2396_v22 = vsel %vm2390_vm3, %v2394_v21, %v2395_v51  ;;  %v2333_v21 = vld [vmem:[#allocation2 + $0x100] sm:$0xff] }
 0x1f7   : > { %2242 = vmatprep.mubr.bf16.mxu1 %v1518_v23  ;;  %v2335_v23 = vpack.c.bf16 %v8963_v7, %v2331_v52  ;;  %v8075_v7 = vld [vmem:[%s10498_s5 + $0xc0] sm:$0xff]  }
 0x1f9   : > { %v2391_v10 = vrot.slane %v2335_v23, 1 }
 0x1fe   : > { %2243 = vmatmul.mubr.bf16.vlgmr.msra.gmra.mrb[0].mxu1 %v1517_v26  ;;  %v2393_v26 = vsel %vm2390_vm3, %v2391_v10, %v2392_v24  ;;  %v8101_v10 = vld [vmem:[%s10498_s5 + $0xb0] sm:$0xff]  }
 0x1ff   : > { %2252 = vmatprep.mubr.bf16.mxu1 %v8981_v50  ;;  %2604 = vmatpush1.bf16.msra.mxu1 %v8026_v6  ;;  %v2399_v6 = vrot.slane %v9033_v61, 1 }
 0x200   : > { %2605 = vmatprep.subr.bf16.mxu1 %v8031_v28  ;;  %v2397_v28 = vrot.slane %v9035_v62, 1 }
 0x201   : > { %v2400_v50 = vsel %vm2390_vm3, %v2395_v51, %v2399_v6  ;;  %v2338_v51 = vpack.c.bf16 %v2334_v8, %v2334_v8 }
 0x203   : > { %2606 = vmatpush1.bf16.msra.mxu1 %v8029_v29  ;;  %v2403_v29 = vrot.slane %v9038_v3, 1 }
 0x204   : > { %2607 = vmatprep.subr.bf16.mxu1 %v8034_v32  ;;  %v8074_v32 = vld [vmem:[%s10498_s5 + $0x40] sm:$0xff]  }
 0x205   : > { %7189 = vmatprep.subr.bf16.mxu0 %v8074_v32 }
 0x206   : > { %2253 = vmatmul.mubr.bf16.gmra.mrb[4].mxu1 %v8983_v53  ;;  %v8076_v53 = vld [vmem:[%s10498_s5] sm:$0xff]  }
 0x207   : > { %2262 = vmatprep.mubr.bf16.mxu1 %v9033_v61  ;;  %2608 = vmatpush1.bf16.msra.mxu1 %v8032_v63  ;;  %v2398_v61 = vsel %vm2390_vm3, %v2392_v24, %v2397_v28  ;;  %v8079_v63 = vld [vmem:[%s10498_s5 + $0xc8] sm:$0xff]   ;;  %v8098_v24 = vld [vmem:[%s10498_s5 + $0x70] sm:$0xff]  }
 0x208   : > { %2609 = vmatprep.subr.bf16.mxu1 %v8037_v34  ;;  %v2404_v34 = vsel %vm2390_vm3, %v2399_v6, %v2403_v29  ;;  %7190 = vmatpush3.bf16.msra.mxu0 %v8076_v53  ;;  %v8100_v6 = vld [vmem:[%s10498_s5 + $0x30] sm:$0xff]  }
 0x20b   : > { %2610 = vmatpush1.bf16.msra.mxu1 %v8035_v25  ;;  %v8080_v25 = vld [vmem:[%s10498_s5 + $0x8] sm:$0xff]  }
 0x20c   : > { %2611 = vmatprep.subr.bf16.mxu1 %v8040_v37  ;;  %v8081_v37 = vld [vmem:[%s10498_s5 + $0x88] sm:$0xff]  }
 0x20e   : > { %2263 = vmatmul.mubr.bf16.gmra.mrb[8].mxu1 %v9035_v62  ;;  %v8077_v62 = vld [vmem:[%s10498_s5 + $0x80] sm:$0xff]  }
 0x20f   : > { %2272 = vmatprep.mubr.bf16.mxu1 %v9038_v3  ;;  %2612 = vmatpush1.bf16.msra.mxu1 %v8038_v39  ;;  %v8078_v3 = vld [vmem:[%s10498_s5 + $0x48] sm:$0xff]   ;;  %v2401_v39 = vrot.slane %v9040_v4, 1 }
 0x210   : > { %2613 = vmatprep.subr.bf16.mxu1 %v8043_v40  ;;  %7191 = vmatprep.subr.bf16.mxu0 %v8078_v3  ;;  %v8082_v40 = vld [vmem:[%s10498_s5 + $0x50] sm:$0xff]  }
 0x211   : > { %7192 = vmatpush3.bf16.msra.mxu0 %v8080_v25 }
 0x212   : > { %7193 = vmatprep.subr.bf16.mxu0 %v8082_v40 }
 0x213   : > { %2614 = vmatpush1.bf16.msra.mxu1 %v8041_v41  ;;  %v8083_v41 = vld [vmem:[%s10498_s5 + $0xd0] sm:$0xff]  }
 0x214   : > { %2615 = vmatprep.subr.bf16.mxu1 %v8046_v38  ;;  %v2407_v38 = vrot.slane %v9100_v30, 1 }
 0x216   : > { %2273 = vmatmul.mubr.bf16.gmra.mrb[12].mxu1 %v9040_v4  ;;  %v8085_v4 = vld [vmem:[%s10498_s5 + $0x90] sm:$0xff]  }
 0x217   : > { %2282 = vmatprep.mubr.bf16.mxu1 %v9100_v30  ;;  %2616 = vmatpush1.bf16.msra.mxu1 %v8044_v42  ;;  %v8084_v42 = vld [vmem:[%s10498_s5 + $0x10] sm:$0xff]   ;;  %v8087_v30 = vld [vmem:[%s10498_s5 + $0xd8] sm:$0xff]  }
 0x218   : > { %2617 = vmatprep.subr.bf16.mxu1 %v8049_v33  ;;  %v2402_v33 = vsel %vm2390_vm3, %v2397_v28, %v2401_v39  ;;  %7194 = vmatpush3.bf16.msra.mxu0 %v8084_v42  ;;  %v8104_v28 = vld [vmem:[%s10498_s5 + $0x38] sm:$0xff]  }
 0x21b   : > { %2618 = vmatpush1.bf16.msra.mxu1 %v8047_v47  ;;  %v8086_v47 = vld [vmem:[%s10498_s5 + $0x58] sm:$0xff]  }
 0x21c   : > { %2619 = vmatprep.subr.bf16.mxu1 %v8052_v44  ;;  %v2408_v44 = vsel %vm2390_vm3, %v2403_v29, %v2407_v38  ;;  %7195 = vmatprep.subr.bf16.mxu0 %v8086_v47  ;;  %v8105_v29 = vld [vmem:[%s10498_s5 + $0xb8] sm:$0xff]  }
 0x21e   : > { %2283 = vmatmul.mubr.bf16.gmra.mrb[16].mxu1 %v9102_v31 }
 0x21f   : > { %2292 = vmatprep.mubr.bf16.mxu1 %v9105_v35  ;;  %2620 = vmatpush1.bf16.msra.mxu1 %v8050_v48  ;;  %v8088_v48 = vld [vmem:[%s10498_s5 + $0x18] sm:$0xff]  }
 0x220   : > { %2621 = vmatprep.subr.bf16.mxu1 %v8055_v54  ;;  %v8089_v54 = vld [vmem:[%s10498_s5 + $0x98] sm:$0xff]   ;;  %7196 = vmatpush3.bf16.msra.mxu0 %v8088_v48 }
 0x223   : > { %2622 = vmatpush1.bf16.msra.mxu1 %v8053_v55  ;;  %v2405_v55 = vrot.slane %v9102_v31, 1  ;;  %v8093_v31 = vld [vmem:[%s10498_s5 + $0xa0] sm:$0xff]  }
 0x224   : > { %2623 = vmatprep.subr.bf16.mxu1 %v8058_v56  ;;  %v8090_v56 = vld [vmem:[%s10498_s5 + $0x60] sm:$0xff]  }
 0x225   : > { %7197 = vmatprep.subr.bf16.mxu0 %v8090_v56 }
 0x226   : > { %2293 = vmatmul.mubr.bf16.gmra.mrb[20].mxu1 %v9107_v36 }
 0x227   : > { %2302 = vmatprep.mubr.bf16.mxu1 %v9168_v11  ;;  %2624 = vmatpush1.bf16.msra.mxu1 %v8056_v57  ;;  %v8091_v57 = vld [vmem:[%s10498_s5 + $0xe0] sm:$0xff]  }
 0x228   : > { %2625 = vmatprep.subr.bf16.mxu1 %v8061_v58  ;;  %v2411_v58 = vrot.slane %v9105_v35, 1  ;;  %v8095_v35 = vld [vmem:[%s10498_s5 + $0xe8] sm:$0xff]  }
 0x22b   : > { %2626 = vmatpush1.bf16.msra.mxu1 %v8059_v59  ;;  %v8092_v59 = vld [vmem:[%s10498_s5 + $0x20] sm:$0xff]  }
 0x22c   : > { %2627 = vmatprep.subr.bf16.mxu1 %v8064_v60  ;;  %v2406_v60 = vsel %vm2390_vm3, %v2401_v39, %v2405_v55  ;;  %7198 = vmatpush3.bf16.msra.mxu0 %v8092_v59  ;;  %v2758_v39 = vld [vmem:[%s10497_s4] sm:$0x3] }
 0x22e   : > { %2303 = vmatmul.mubr.bf16.gmra.mrb[24].mxu1 %v9170_v43 }
 0x22f   : > { %2312 = vmatprep.mubr.bf16.mxu1 %v9174_v16  ;;  %2628 = vmatpush1.bf16.msra.mxu1 %v8062_v0  ;;  %v8094_v0 = vld [vmem:[%s10498_s5 + $0x68] sm:$0xff]  }
 0x230   : > { %2629 = vmatprep.subr.bf16.mxu1 %v8067_v1  ;;  %v2412_v1 = vsel %vm2390_vm3, %v2407_v38, %v2411_v58  ;;  %7199 = vmatprep.subr.bf16.mxu0 %v8094_v0  ;;  %v9477_v38 = vrot.slane %v2758_v39, %v8950_v49  ;;  %v8106_v0 = vld [vmem:[%s10499_s6 + $0x80] ss:$8 sps:$4 sm:$0xff]  }
 0x233   : > { %2630 = vmatpush1.bf16.msra.mxu1 %v8065_v5  ;;  %v8096_v5 = vld [vmem:[%s10498_s5 + $0x28] sm:$0xff]  }
 0x234   : > { %2631 = vmatprep.subr.bf16.mxu1 %v8070_v9  ;;  %v8097_v9 = vld [vmem:[%s10498_s5 + $0xa8] sm:$0xff]   ;;  %7200 = vmatpush3.bf16.msra.mxu0 %v8096_v5 }
 0x235   : > { %7201 = vmatprep.subr.bf16.mxu0 %v8098_v24 }
 0x236   : > { %2313 = vmatmul.mubr.bf16.gmra.mrb[28].mxu1 %v9176_v13 }
 0x237   : > { %2322 = vmatprep.mubr.bf16.mxu1 %v1534_v18  ;;  %2632 = vmatpush1.bf16.msra.mxu1 %v8068_v14  ;;  %v2415_v14 = vrot.slane %v9168_v11, 1  ;;  %v2417_v11 = vrot.slane %v9176_v13, 1  ;;  %v8099_v13 = vld [vmem:[%s10498_s5 + $0xf0] sm:$0xff]  }
 0x238   : > { %2633 = vmatprep.subr.bf16.mxu1 %v8073_v15  ;;  %v2410_v15 = vsel %vm2390_vm3, %v2405_v55, %v2409_v12  ;;  %7202 = vmatpush3.bf16.msra.mxu0 %v8100_v6 }
 0x239   : > { %v2416_v18 = vsel %vm2390_vm3, %v2411_v58, %v2415_v14  ;;  %v2418_v52 = vsel %vm2390_vm3, %v2413_v19, %v2417_v11 }
 0x23b   : > { %2634 = vmatpush1.bf16.msra.mxu1 %v8071_v46  ;;  %v2419_v46 = vrot.slane %v9174_v16, 1 }
 0x23c   : > { %7259 = vmatprep.subr.bf16.mxu1 %v8075_v7 }
 0x23d   : > { %v2420_v36 = vsel %vm2390_vm3, %v2415_v14, %v2419_v46 }
 0x23e   : > { %2323 = vmatmul.mubr.bf16.gmra.mrb[36].mxu1 %v1533_v20  ;;  %v2423_v20 = vrot.slane %v2338_v51, 1 }
 0x23f   : > { %2635 = vmatprep.mubr.bf16.mxu1 %v2396_v22  ;;  %v2337_v22 = vpack.c.bf16 %v2333_v21, %v2333_v21 }
 0x240   : > { %v2424_v43 = vsel %vm2390_vm3, %v2419_v46, %v2423_v20 }
 0x241   : > { %v2421_v16 = vrot.slane %v2337_v22, 1 }
 0x243   : > { %v2422_v23 = vsel %vm2390_vm3, %v2417_v11, %v2421_v16 }
 0x246   : > { %2636 = vmatmul.mubr.bf16.vlgmr.msra.gmra.mrb[0].mxu1 %v2393_v26  ;;  %v8102_v26 = vld [vmem:[%s10498_s5 + $0x78] sm:$0xff]  }
 0x247   : > { %2645 = vmatprep.mubr.bf16.mxu1 %v2400_v50  ;;  %7260 = vmatpush3.bf16.msra.mxu1 %v8077_v62  ;;  %v8103_v50 = vld [vmem:[%s10498_s5 + $0xf8] sm:$0xff]   ;;  %v8108_v62 = vld [vmem:[%s10499_s6 + $0x84] ss:$8 sps:$4 sm:$0xff]  }
 0x248   : > { %7261 = vmatprep.subr.bf16.mxu1 %v8079_v63  ;;  %7203 = vmatprep.subr.bf16.mxu0 %v8102_v26 }
 0x249   : > { %7204 = vmatpush3.bf16.msra.mxu0 %v8104_v28 }
 0x24a   : > { %3551 = vmatprep.subr.bf16.mxu0 %v8108_v62 }
 0x24b   : > { %7262 = vmatpush3.bf16.msra.mxu1 %v8081_v37 }
 0x24c   : > { %7263 = vmatprep.subr.bf16.mxu1 %v8083_v41  ;;  %v9474_v41 = vrot.slane %v2758_v39, %v8943_v45 }
 0x24e   : > { %2646 = vmatmul.mubr.bf16.gmra.mrb[4].mxu1 %v2398_v61 }
 0x24f   : > { %2655 = vmatprep.mubr.bf16.mxu1 %v2404_v34  ;;  %7264 = vmatpush3.bf16.msra.mxu1 %v8085_v4 }
 0x250   : > { %7265 = vmatprep.subr.bf16.mxu1 %v8087_v30 }
 0x253   : > { %7266 = vmatpush3.bf16.msra.mxu1 %v8089_v54 }
 0x254   : > { %7267 = vmatprep.subr.bf16.mxu1 %v8091_v57 }
 0x256   : > { %2656 = vmatmul.mubr.bf16.gmra.mrb[8].mxu1 %v2402_v33 }
 0x257   : > { %2665 = vmatprep.mubr.bf16.mxu1 %v2408_v44  ;;  %7268 = vmatpush3.bf16.msra.mxu1 %v8093_v31 }
 0x258   : > { %7269 = vmatprep.subr.bf16.mxu1 %v8095_v35 }
 0x25b   : > { %7270 = vmatpush3.bf16.msra.mxu1 %v8097_v9 }
 0x25c   : > { %7271 = vmatprep.subr.bf16.mxu1 %v8099_v13 }
 0x25e   : > { %2666 = vmatmul.mubr.bf16.gmra.mrb[12].mxu1 %v2406_v60 }
 0x25f   : > { %2675 = vmatprep.mubr.bf16.mxu1 %v2412_v1  ;;  %7272 = vmatpush3.bf16.msra.mxu1 %v8101_v10 }
 0x260   : > { %7273 = vmatprep.subr.bf16.mxu1 %v8103_v50 }
 0x263   : > { %7274 = vmatpush3.bf16.msra.mxu1 %v8105_v29 }
 0x266   : > { %2676 = vmatmul.mubr.bf16.gmra.mrb[16].mxu1 %v2410_v15 }
 0x267   : > { %2685 = vmatprep.mubr.bf16.mxu1 %v2416_v18 }
 0x26e   : > { %2686 = vmatmul.mubr.bf16.gmra.mrb[20].mxu1 %v2414_v17 }
 0x26f   : > { %2695 = vmatprep.mubr.bf16.mxu1 %v2420_v36 }
 0x276   : > { %2696 = vmatmul.mubr.bf16.gmra.mrb[24].mxu1 %v2418_v52 }
 0x277   : > { %2705 = vmatprep.mubr.bf16.mxu1 %v2424_v43 }
 0x27e   : > { %2706 = vmatmul.mubr.bf16.gmra.mrb[28].mxu1 %v2422_v23 }
 0x27f   : > { %2715 = vmatprep.mubr.bf16.mxu1 %v2423_v20 }
 0x286   : > { %2716 = vmatmul.mubr.bf16.gmra.mrb[40].mxu1 %v2421_v16 }
 0x2c9   : > { %v2043_v32 = vpop.f32.mrb[32].mxu1 }
 0x2ca   : > { %v2045_v7 = vpop.f32.mrb[33].mxu1 }
 0x2cb   : > { %v2047_v53 = vpop.f32.mrb[34].mxu1 }
 0x2cc   : > { %v2048_v61 = vpop.f32.mrb[35].mxu1 }
 0x311   : > { %v2324_v3 = vpop.f32.mrb[36].mxu1 }
 0x312   : > { %v9466_v63 = vadd.f32 %v2324_v3, %v2043_v32  ;;  %v2326_v34 = vpop.f32.mrb[37].mxu1 }
 0x313   : > { %v9468_v25 = vadd.f32 %v2326_v34, %v2045_v7  ;;  %v2328_v37 = vpop.f32.mrb[38].mxu1 }
 0x314   : > { %v2329_v40 = vpop.f32.mrb[39].mxu1 }
 0x319   : > { %v2637_v42 = vpop.f32.mrb[0].mxu1 }
 0x31a   : > { %v2770_v4 = vadd.f32 %v9474_v41, %v2637_v42  ;;  %v2639_v33 = vpop.f32.mrb[1].mxu1 }
 0x31b   : > { %v2771_v47 = vadd.f32 %v9477_v38, %v2639_v33  ;;  %v2641_v30 = vpop.f32.mrb[2].mxu1 }
 0x31c   : > { %v2772_v44 = vadd.f32 %v9474_v41, %v2641_v30  ;;  %v2643_v48 = vpop.f32.mrb[3].mxu1  ;;  %v2804_v55 = vmax.f32 %v2770_v4, 0.0 }
 0x31d   : > { %v2773_v54 = vadd.f32 %v9477_v38, %v2643_v48  ;;  %v2805_v57 = vmax.f32 %v2771_v47, 0.0 }
 0x31e   : > { %v2806_v56 = vmax.f32 %v2772_v44, 0.0 }
 0x31f   : > { %v2807_v58 = vmax.f32 %v2773_v54, 0.0 }
 0x320   : > { %v2838_v59 = vpack.c.bf16 %v2806_v56, %v2804_v55 }
 0x321   : > { %v2839_v31 = vpack.c.bf16 %v2807_v58, %v2805_v57  ;;  %v2647_v60 = vpop.f32.mrb[4].mxu1 }
 0x322   : > { %v2774_v35 = vadd.f32 %v9474_v41, %v2647_v60  ;;  %v2649_v1 = vpop.f32.mrb[5].mxu1 }
 0x323   : > { %v2775_v5 = vadd.f32 %v9477_v38, %v2649_v1  ;;  %v2651_v9 = vpop.f32.mrb[6].mxu1  ;;  %3016 = vmatprep.mubr.bf16.mxu0 %v2839_v31  ;;  %3249 = vmatprep.mubr.bf16.mxu1 %v2839_v31 }
 0x324   : > { %v2776_v12 = vadd.f32 %v9474_v41, %v2651_v9  ;;  %v2653_v14 = vpop.f32.mrb[7].mxu1  ;;  %3017 = vmatmul.mubr.bf16.vlgmr.msra.gmra.mrb[44].mxu0 %v2838_v59  ;;  %3250 = vmatmul.mubr.bf16.vlgmr.msra.gmra.mrb[44].mxu1 %v2838_v59  ;;  %v2808_v18 = vmax.f32 %v2774_v35, 0.0 }
 0x325   : > { %v2777_v15 = vadd.f32 %v9477_v38, %v2653_v14  ;;  %3552 = vmatpush1.bf16.msra.mxu0 %v8106_v0  ;;  %v2809_v46 = vmax.f32 %v2775_v5, 0.0 }
 0x326   : > { %v2810_v19 = vmax.f32 %v2776_v12, 0.0 }
 0x327   : > { %v2811_v8 = vmax.f32 %v2777_v15, 0.0 }
 0x328   : > { %v2840_v17 = vpack.c.bf16 %v2810_v19, %v2808_v18 }
 0x329   : > { %v2841_v36 = vpack.c.bf16 %v2811_v8, %v2809_v46  ;;  %v2657_v51 = vpop.f32.mrb[8].mxu1 }
 0x32a   : > { %v2778_v11 = vadd.f32 %v9474_v41, %v2657_v51  ;;  %v2659_v20 = vpop.f32.mrb[9].mxu1 }
 0x32b   : > { %v2779_v21 = vadd.f32 %v9477_v38, %v2659_v20  ;;  %v2661_v52 = vpop.f32.mrb[10].mxu1  ;;  %3024 = vmatprep.mubr.bf16.mxu0 %v2841_v36  ;;  %3257 = vmatprep.mubr.bf16.mxu1 %v2841_v36 }
 0x32c   : > { %v2780_v22 = vadd.f32 %v9474_v41, %v2661_v52  ;;  %v2663_v43 = vpop.f32.mrb[11].mxu1  ;;  %3025 = vmatmul.mubr.bf16.gmra.mrb[48].mxu0 %v2840_v17  ;;  %3258 = vmatmul.mubr.bf16.gmra.mrb[48].mxu1 %v2840_v17  ;;  %v2812_v23 = vmax.f32 %v2778_v11, 0.0 }
 0x32d   : > { %v2781_v16 = vadd.f32 %v9477_v38, %v2663_v43  ;;  %v2813_v13 = vmax.f32 %v2779_v21, 0.0 }
 0x32e   : > { %v2814_v24 = vmax.f32 %v2780_v22, 0.0 }
 0x32f   : > { %v2815_v6 = vmax.f32 %v2781_v16, 0.0 }
 0x330   : > { %v2842_v10 = vpack.c.bf16 %v2814_v24, %v2812_v23 }
 0x331   : > { %v2843_v26 = vpack.c.bf16 %v2815_v6, %v2813_v13  ;;  %v2667_v50 = vpop.f32.mrb[12].mxu1 }
 0x332   : > { %v2782_v28 = vadd.f32 %v9474_v41, %v2667_v50  ;;  %v2669_v29 = vpop.f32.mrb[13].mxu1 }
 0x333   : > { %v2783_v32 = vadd.f32 %v9477_v38, %v2669_v29  ;;  %v2671_v7 = vpop.f32.mrb[14].mxu1  ;;  %3032 = vmatprep.mubr.bf16.mxu0 %v2843_v26  ;;  %3265 = vmatprep.mubr.bf16.mxu1 %v2843_v26 }
 0x334   : > { %v2784_v53 = vadd.f32 %v9474_v41, %v2671_v7  ;;  %v2673_v61 = vpop.f32.mrb[15].mxu1  ;;  %3033 = vmatmul.mubr.bf16.gmra.mrb[52].mxu0 %v2842_v10  ;;  %3266 = vmatmul.mubr.bf16.gmra.mrb[52].mxu1 %v2842_v10  ;;  %v2816_v3 = vmax.f32 %v2782_v28, 0.0 }
 0x335   : > { %v2785_v62 = vadd.f32 %v9477_v38, %v2673_v61  ;;  %v2817_v37 = vmax.f32 %v2783_v32, 0.0 }
 0x336   : > { %v2818_v34 = vmax.f32 %v2784_v53, 0.0 }
 0x337   : > { %v2819_v39 = vmax.f32 %v2785_v62, 0.0 }
 0x338   : > { %v2844_v40 = vpack.c.bf16 %v2818_v34, %v2816_v3 }
 0x339   : > { %v2845_v42 = vpack.c.bf16 %v2819_v39, %v2817_v37  ;;  %v2677_v4 = vpop.f32.mrb[16].mxu1 }
 0x33a   : > { %v2786_v33 = vadd.f32 %v9474_v41, %v2677_v4  ;;  %v2679_v47 = vpop.f32.mrb[17].mxu1 }
 0x33b   : > { %v2787_v30 = vadd.f32 %v9477_v38, %v2679_v47  ;;  %v2681_v44 = vpop.f32.mrb[18].mxu1  ;;  %3040 = vmatprep.mubr.bf16.mxu0 %v2845_v42  ;;  %3273 = vmatprep.mubr.bf16.mxu1 %v2845_v42 }
 0x33c   : > { %v2788_v48 = vadd.f32 %v9474_v41, %v2681_v44  ;;  %v2683_v54 = vpop.f32.mrb[19].mxu1  ;;  %3041 = vmatmul.mubr.bf16.gmra.mrb[56].mxu0 %v2844_v40  ;;  %3274 = vmatmul.mubr.bf16.gmra.mrb[56].mxu1 %v2844_v40  ;;  %v2820_v56 = vmax.f32 %v2786_v33, 0.0 }
 0x33d   : > { %v2789_v55 = vadd.f32 %v9477_v38, %v2683_v54  ;;  %v2821_v58 = vmax.f32 %v2787_v30, 0.0 }
 0x33e   : > { %v2822_v57 = vmax.f32 %v2788_v48, 0.0 }
 0x33f   : > { %v2823_v59 = vmax.f32 %v2789_v55, 0.0 }
 0x340   : > { %v2846_v31 = vpack.c.bf16 %v2822_v57, %v2820_v56 }
 0x341   : > { %v2847_v60 = vpack.c.bf16 %v2823_v59, %v2821_v58  ;;  %v2687_v0 = vpop.f32.mrb[20].mxu1 }
 0x342   : > { %v2790_v35 = vadd.f32 %v9474_v41, %v2687_v0  ;;  %v2689_v1 = vpop.f32.mrb[21].mxu1  ;;  %v8120_v0 = vld [vmem:[%s10499_s6 + $0xc4] ss:$8 sps:$4 sm:$0xff]  }
 0x343   : > { %v2791_v5 = vadd.f32 %v9477_v38, %v2689_v1  ;;  %v2691_v9 = vpop.f32.mrb[22].mxu1  ;;  %3048 = vmatprep.mubr.bf16.mxu0 %v2847_v60  ;;  %3281 = vmatprep.mubr.bf16.mxu1 %v2847_v60  ;;  %v8115_v60 = vld [vmem:[%s10499_s6 + $0xb0] ss:$8 sps:$4 sm:$0xff]   ;;  %v8123_v1 = vld [vmem:[%s10499_s6 + $0xd4] ss:$8 sps:$4 sm:$0xff]  }
 0x344   : > { %v2792_v12 = vadd.f32 %v9474_v41, %v2691_v9  ;;  %v2693_v14 = vpop.f32.mrb[23].mxu1  ;;  %3049 = vmatmul.mubr.bf16.gmra.mrb[60].mxu0 %v2846_v31  ;;  %3282 = vmatmul.mubr.bf16.gmra.mrb[60].mxu1 %v2846_v31  ;;  %v2824_v18 = vmax.f32 %v2790_v35, 0.0  ;;  %v8117_v31 = vld [vmem:[%s10499_s6 + $0xb4] ss:$8 sps:$4 sm:$0xff]   ;;  %v8118_v35 = vld [vmem:[%s10499_s6 + $0xc0] ss:$8 sps:$4 sm:$0xff]  }
 0x345   : > { %v2793_v15 = vadd.f32 %v9477_v38, %v2693_v14  ;;  %v2825_v46 = vmax.f32 %v2791_v5, 0.0  ;;  %v8121_v5 = vld [vmem:[%s10499_s6 + $0xd0] ss:$8 sps:$4 sm:$0xff]   ;;  %v8126_v9 = vld [vmem:[%s10499_s6 + $0xe4] ss:$8 sps:$4 sm:$0xff]  }
 0x346   : > { %v2826_v19 = vmax.f32 %v2792_v12, 0.0  ;;  %v8124_v12 = vld [vmem:[%s10499_s6 + $0xe0] ss:$8 sps:$4 sm:$0xff]   ;;  %v8129_v14 = vld [vmem:[%s10499_s6 + $0xf4] ss:$8 sps:$4 sm:$0xff]  }
 0x347   : > { %v2827_v8 = vmax.f32 %v2793_v15, 0.0  ;;  %v8127_v15 = vld [vmem:[%s10499_s6 + $0xf0] ss:$8 sps:$4 sm:$0xff]  }
 0x348   : > { %v2848_v17 = vpack.c.bf16 %v2826_v19, %v2824_v18  ;;  %v8132_v18 = vld [vmem:[%s10499_s6 + $0x4] ss:$8 sps:$4 sm:$0xff]  }
 0x349   : > { %v2849_v36 = vpack.c.bf16 %v2827_v8, %v2825_v46  ;;  %v2697_v51 = vpop.f32.mrb[24].mxu1 }
 0x34a   : > { %v2794_v11 = vadd.f32 %v9474_v41, %v2697_v51  ;;  %v2699_v20 = vpop.f32.mrb[25].mxu1 }
 0x34b   : > { %v2795_v21 = vadd.f32 %v9477_v38, %v2699_v20  ;;  %v2701_v52 = vpop.f32.mrb[26].mxu1  ;;  %3056 = vmatprep.mubr.bf16.mxu0 %v2849_v36  ;;  %3289 = vmatprep.mubr.bf16.mxu1 %v2849_v36 }
 0x34c   : > { %v2796_v22 = vadd.f32 %v9474_v41, %v2701_v52  ;;  %v2703_v43 = vpop.f32.mrb[27].mxu1  ;;  %3057 = vmatmul.mubr.bf16.gmra.mrb[64].mxu0 %v2848_v17  ;;  %3290 = vmatmul.mubr.bf16.gmra.mrb[64].mxu1 %v2848_v17  ;;  %v2828_v23 = vmax.f32 %v2794_v11, 0.0 }
 0x34d   : > { %v2797_v16 = vadd.f32 %v9477_v38, %v2703_v43  ;;  %v2829_v13 = vmax.f32 %v2795_v21, 0.0 }
 0x34e   : > { %v2830_v24 = vmax.f32 %v2796_v22, 0.0 }
 0x34f   : > { %v2831_v6 = vmax.f32 %v2797_v16, 0.0 }
 0x350   : > { %v2850_v10 = vpack.c.bf16 %v2830_v24, %v2828_v23 }
 0x351   : > { %v2851_v26 = vpack.c.bf16 %v2831_v6, %v2829_v13  ;;  %v2707_v50 = vpop.f32.mrb[28].mxu1 }
 0x352   : > { %v2798_v28 = vadd.f32 %v9474_v41, %v2707_v50  ;;  %v2709_v29 = vpop.f32.mrb[29].mxu1 }
 0x353   : > { %v2799_v32 = vadd.f32 %v9477_v38, %v2709_v29  ;;  %v2711_v7 = vpop.f32.mrb[30].mxu1  ;;  %3064 = vmatprep.mubr.bf16.mxu0 %v2851_v26  ;;  %3297 = vmatprep.mubr.bf16.mxu1 %v2851_v26 }
 0x354   : > { %v2800_v53 = vadd.f32 %v9474_v41, %v2711_v7  ;;  %v2713_v61 = vpop.f32.mrb[31].mxu1  ;;  %3065 = vmatmul.mubr.bf16.gmra.mrb[68].mxu0 %v2850_v10  ;;  %3298 = vmatmul.mubr.bf16.gmra.mrb[68].mxu1 %v2850_v10  ;;  %v2832_v3 = vmax.f32 %v2798_v28, 0.0 }
 0x355   : > { %v2801_v62 = vadd.f32 %v9477_v38, %v2713_v61  ;;  %v2833_v37 = vmax.f32 %v2799_v32, 0.0 }
 0x356   : > { %v2834_v34 = vmax.f32 %v2800_v53, 0.0 }
 0x357   : > { %v2835_v39 = vmax.f32 %v2801_v62, 0.0 }
 0x358   : > { %v2852_v40 = vpack.c.bf16 %v2834_v34, %v2832_v3 }
 0x359   : > { %v2853_v42 = vpack.c.bf16 %v2835_v39, %v2833_v37  ;;  %v2717_v4 = vpop.f32.mrb[40].mxu1 }
 0x35a   : > { %v2756_v33 = vadd.f32 %v2717_v4, %v9466_v63  ;;  %v2719_v47 = vpop.f32.mrb[41].mxu1  ;;  %v8109_v63 = vld [vmem:[%s10499_s6 + $0x90] ss:$8 sps:$4 sm:$0xff]  }
 0x35b   : > { %v2757_v30 = vadd.f32 %v2719_v47, %v9468_v25  ;;  %v2721_v44 = vpop.f32.mrb[42].mxu1  ;;  %3072 = vmatprep.mubr.bf16.mxu0 %v2853_v42  ;;  %3305 = vmatprep.mubr.bf16.mxu1 %v2853_v42  ;;  %v8111_v25 = vld [vmem:[%s10499_s6 + $0x94] ss:$8 sps:$4 sm:$0xff]  }
 0x35c   : > { %v2802_v48 = vadd.f32 %v9474_v41, %v2756_v33  ;;  %v2722_v54 = vpop.f32.mrb[43].mxu1  ;;  %3073 = vmatmul.mubr.bf16.gmra.mrb[72].mxu0 %v2852_v40  ;;  %3306 = vmatmul.mubr.bf16.gmra.mrb[72].mxu1 %v2852_v40  ;;  %v8114_v41 = vld [vmem:[%s10499_s6 + $0xa4] ss:$8 sps:$4 sm:$0xff]  }
 0x35d   : > { %v2803_v55 = vadd.f32 %v9477_v38, %v2757_v30  ;;  %3553 = vmatprep.subr.bf16.mxu0 %v8111_v25  ;;  %v8112_v38 = vld [vmem:[%s10499_s6 + $0xa0] ss:$8 sps:$4 sm:$0xff]  }
 0x35e   : > { %v2836_v56 = vmax.f32 %v2802_v48, 0.0  ;;  %3554 = vmatpush1.bf16.msra.mxu0 %v8109_v63 }
 0x35f   : > { %v2837_v57 = vmax.f32 %v2803_v55, 0.0  ;;  %3555 = vmatprep.subr.bf16.mxu0 %v8114_v41 }
 0x360   : > { %v2854_v59 = vpack.c.bf16 %v2836_v56, %v2836_v56 }
 0x361   : > { %v2855_v58 = vpack.c.bf16 %v2837_v57, %v2837_v57 }
 0x362   : > { %3556 = vmatpush1.bf16.msra.mxu0 %v8112_v38 }
 0x363   : > { %3080 = vmatprep.mubr.bf16.mxu0 %v2855_v58  ;;  %3313 = vmatprep.mubr.bf16.mxu1 %v2855_v58 }
 0x364   : > { %3081 = vmatmul.mubr.bf16.gmra.mrb[76].mxu0 %v2854_v59  ;;  %3314 = vmatmul.mubr.bf16.gmra.mrb[76].mxu1 %v2854_v59 }
 0x365   : > { %3583 = vmatprep.mubr.bf16.mxu0 %v8474_v2  ;;  %3557 = vmatprep.subr.bf16.mxu0 %v8117_v31 }
 0x366   : > { %3558 = vmatpush1.bf16.msra.mxu0 %v8115_v60 }
 0x367   : > { %3559 = vmatprep.subr.bf16.mxu0 %v8120_v0 }
 0x36a   : > { %3560 = vmatpush1.bf16.msra.mxu0 %v8118_v35  ;;  %v8130_v35 = vld [vmem:[%s10499_s6] ss:$8 sps:$4 sm:$0xff]  }
 0x36b   : > { %3561 = vmatprep.subr.bf16.mxu0 %v8123_v1 }
 0x36e   : > { %3562 = vmatpush1.bf16.msra.mxu0 %v8121_v5 }
 0x36f   : > { %3563 = vmatprep.subr.bf16.mxu0 %v8126_v9 }
 0x372   : > { %3564 = vmatpush1.bf16.msra.mxu0 %v8124_v12 }
 0x373   : > { %3565 = vmatprep.subr.bf16.mxu0 %v8129_v14 }
 0x376   : > { %3566 = vmatpush1.bf16.msra.mxu0 %v8127_v15  ;;  %v8135_v15 = vld [vmem:[%s10499_s6 + $0x14] ss:$8 sps:$4 sm:$0xff]  }
 0x377   : > { %3712 = vmatprep.subr.bf16.mxu0 %v8132_v18 }
 0x3f7   : > { %v7205_v19 = vpop.f32.mrb[44].mxu0  ;;  %v7275_v46 = vpop.f32.mrb[44].mxu1 }
 0x3f8   : > { %v7206_v8 = vpop.f32.mrb[45].mxu0  ;;  %v7276_v17 = vpop.f32.mrb[45].mxu1 }
 0x3f9   : > { %v7207_v36 = vadd.f32 %v7206_v8, %v7205_v19  ;;  %v7277_v51 = vadd.f32 %v7276_v17, %v7275_v46  ;;  %v7208_v11 = vpop.f32.mrb[46].mxu0  ;;  %v7278_v20 = vpop.f32.mrb[46].mxu1 }
 0x3fa   : > { %v7209_v21 = vpop.f32.mrb[47].mxu0  ;;  %v7279_v52 = vpop.f32.mrb[47].mxu1 }
 0x3fb   : > { %v3321_v22 = vmax.f32 %v7207_v36, %v7277_v51  ;;  %v7210_v43 = vadd.f32 %v7209_v21, %v7208_v11  ;;  %v7280_v16 = vadd.f32 %v7279_v52, %v7278_v20  ;;  %v8133_v36 = vld [vmem:[%s10499_s6 + $0x10] ss:$8 sps:$4 sm:$0xff]   ;;  %v8138_v11 = vld [vmem:[%s10499_s6 + $0x24] ss:$8 sps:$4 sm:$0xff]  }
 0x3fd   : > { %3338 = vst [vmem:[#allocation3] sm:$0xff] %v3321_v22  ;;  %v3322_v23 = vmax.f32 %v7210_v43, %v7280_v16  ;;  %v8136_v43 = vld [vmem:[%s10499_s6 + $0x20] ss:$8 sps:$4 sm:$0xff]  }
 0x3ff   : > { %3339 = vst [vmem:[#allocation3 + $0x8] sm:$0xff] %v3322_v23  ;;  %v7211_v24 = vpop.f32.mrb[48].mxu0  ;;  %v7281_v13 = vpop.f32.mrb[48].mxu1 }
 0x400   : > { %v7212_v6 = vpop.f32.mrb[49].mxu0  ;;  %v7282_v10 = vpop.f32.mrb[49].mxu1 }
 0x401   : > { %v7213_v26 = vadd.f32 %v7212_v6, %v7211_v24  ;;  %v7283_v50 = vadd.f32 %v7282_v10, %v7281_v13  ;;  %v7214_v28 = vpop.f32.mrb[50].mxu0  ;;  %v7284_v29 = vpop.f32.mrb[50].mxu1  ;;  %v8141_v6 = vld [vmem:[%s10499_s6 + $0x34] ss:$8 sps:$4 sm:$0xff]  }
 0x402   : > { %v7215_v32 = vpop.f32.mrb[51].mxu0  ;;  %v7285_v7 = vpop.f32.mrb[51].mxu1 }
 0x403   : > { %v3323_v53 = vmax.f32 %v7213_v26, %v7283_v50  ;;  %v7216_v61 = vadd.f32 %v7215_v32, %v7214_v28  ;;  %v7286_v62 = vadd.f32 %v7285_v7, %v7284_v29 }
 0x405   : > { %3340 = vst [vmem:[#allocation3 + $0x10] sm:$0xff] %v3323_v53  ;;  %v3324_v3 = vmax.f32 %v7216_v61, %v7286_v62  ;;  %v8139_v53 = vld [vmem:[%s10499_s6 + $0x30] ss:$8 sps:$4 sm:$0xff]  }
 0x406   : > { %v3355_v34 = vld [vmem:[#allocation3] ss:$2 sm:$0xff]  ;;  %v3359_v37 = vld [vmem:[#allocation3 + $0x1] ss:$2 sm:$0xff] }
 0x407   : > { %v3362_v39 = vmax.f32 %v3355_v34, %v3359_v37  ;;  %3341 = vst [vmem:[#allocation3 + $0x18] sm:$0xff] %v3324_v3  ;;  %v7217_v40 = vpop.f32.mrb[52].mxu0  ;;  %v7287_v42 = vpop.f32.mrb[52].mxu1  ;;  %v8144_v3 = vld [vmem:[%s10499_s6 + $0x44] ss:$8 sps:$4 sm:$0xff]  }
 0x408   : > { %v7218_v4 = vpop.f32.mrb[53].mxu0  ;;  %v7288_v33 = vpop.f32.mrb[53].mxu1 }
 0x409   : > { %3364 = vst [vmem:[#allocation4 + $0x1] sm:$0xff] %v3362_v39  ;;  %v7219_v47 = vadd.f32 %v7218_v4, %v7217_v40  ;;  %v7289_v30 = vadd.f32 %v7288_v33, %v7287_v42  ;;  %v7220_v44 = vpop.f32.mrb[54].mxu0  ;;  %v7290_v48 = vpop.f32.mrb[54].mxu1  ;;  %v8142_v42 = vld [vmem:[%s10499_s6 + $0x40] ss:$8 sps:$4 sm:$0xff]  }
 0x40a   : > { %v7221_v54 = vpop.f32.mrb[55].mxu0  ;;  %v7291_v55 = vpop.f32.mrb[55].mxu1 }
 0x40b   : > { %v3325_v56 = vmax.f32 %v7219_v47, %v7289_v30  ;;  %v7222_v57 = vadd.f32 %v7221_v54, %v7220_v44  ;;  %v7292_v58 = vadd.f32 %v7291_v55, %v7290_v48  ;;  %v8147_v44 = vld [vmem:[%s10499_s6 + $0x54] ss:$8 sps:$4 sm:$0xff]  }
 0x40d   : > { %3342 = vst [vmem:[#allocation3 + $0x20] sm:$0xff] %v3325_v56  ;;  %v3326_v59 = vmax.f32 %v7222_v57, %v7292_v58 }
 0x40e   : > { %v3357_v63 = vld [vmem:[#allocation3 + $0x10] ss:$2 sm:$0xff]  ;;  %v3361_v25 = vld [vmem:[#allocation3 + $0x11] ss:$2 sm:$0xff] }
 0x40f   : > { %v3363_v41 = vmax.f32 %v3357_v63, %v3361_v25  ;;  %3343 = vst [vmem:[#allocation3 + $0x28] sm:$0xff] %v3326_v59  ;;  %v7223_v38 = vpop.f32.mrb[56].mxu0  ;;  %v7293_v31 = vpop.f32.mrb[56].mxu1  ;;  %v8145_v63 = vld [vmem:[%s10499_s6 + $0x50] ss:$8 sps:$4 sm:$0xff]  }
 0x410   : > { %v7224_v60 = vpop.f32.mrb[57].mxu0  ;;  %v7294_v0 = vpop.f32.mrb[57].mxu1 }
 0x411   : > { %3365 = vst [vmem:[#allocation4 + $0x9] sm:$0xff] %v3363_v41  ;;  %v7225_v1 = vadd.f32 %v7224_v60, %v7223_v38  ;;  %v7295_v5 = vadd.f32 %v7294_v0, %v7293_v31  ;;  %v7226_v9 = vpop.f32.mrb[58].mxu0  ;;  %v7296_v12 = vpop.f32.mrb[58].mxu1  ;;  %v3449_v14 = vpack.c.bf16 %v3363_v41, %v3362_v39  ;;  %v8150_v38 = vld [vmem:[%s10499_s6 + $0x64] ss:$8 sps:$4 sm:$0xff]  }
 0x412   : > { %v7227_v18 = vpop.f32.mrb[59].mxu0  ;;  %v7297_v19 = vpop.f32.mrb[59].mxu1 }
 0x413   : > { %v3327_v46 = vmax.f32 %v7225_v1, %v7295_v5  ;;  %v7228_v8 = vadd.f32 %v7227_v18, %v7226_v9  ;;  %v7298_v17 = vadd.f32 %v7297_v19, %v7296_v12  ;;  %3584 = vmatmul.mubr.bf16.vlgmr.msra.gmra.mrb[80].mxu0 %v3449_v14  ;;  %v8148_v1 = vld [vmem:[%s10499_s6 + $0x60] ss:$8 sps:$4 sm:$0xff]  }
 0x414   : > { %3593 = vmatprep.mubr.bf16.mxu0 %v8474_v2  ;;  %3713 = vmatpush1.bf16.msra.mxu0 %v8130_v35 }
 0x415   : > { %3344 = vst [vmem:[#allocation3 + $0x30] sm:$0xff] %v3327_v46  ;;  %v3328_v51 = vmax.f32 %v7228_v8, %v7298_v17  ;;  %3714 = vmatprep.subr.bf16.mxu0 %v8135_v15  ;;  %v8153_v15 = vld [vmem:[%s10499_s6 + $0x74] ss:$8 sps:$4 sm:$0xff]  }
 0x417   : > { %3345 = vst [vmem:[#allocation3 + $0x38] sm:$0xff] %v3328_v51  ;;  %v7229_v20 = vpop.f32.mrb[60].mxu0  ;;  %v7299_v21 = vpop.f32.mrb[60].mxu1 }
 0x418   : > { %v7230_v52 = vpop.f32.mrb[61].mxu0  ;;  %v7300_v22 = vpop.f32.mrb[61].mxu1  ;;  %3715 = vmatpush1.bf16.msra.mxu0 %v8133_v36 }
 0x419   : > { %v7231_v16 = vadd.f32 %v7230_v52, %v7229_v20  ;;  %v7301_v23 = vadd.f32 %v7300_v22, %v7299_v21  ;;  %v7232_v24 = vpop.f32.mrb[62].mxu0  ;;  %v7302_v13 = vpop.f32.mrb[62].mxu1  ;;  %3716 = vmatprep.subr.bf16.mxu0 %v8138_v11  ;;  %v8151_v11 = vld [vmem:[%s10499_s6 + $0x70] ss:$8 sps:$4 sm:$0xff]   ;;  %v8156_v52 = vld [vmem:[%s10499_s6 + $0x104] ss:$8 sps:$4 sm:$0xff]  }
 0x41a   : > { %v7233_v10 = vpop.f32.mrb[63].mxu0  ;;  %v7303_v26 = vpop.f32.mrb[63].mxu1 }
 0x41b   : > { %v3329_v50 = vmax.f32 %v7231_v16, %v7301_v23  ;;  %v7234_v28 = vadd.f32 %v7233_v10, %v7232_v24  ;;  %v7304_v29 = vadd.f32 %v7303_v26, %v7302_v13 }
 0x41c   : > { %v3369_v32 = vld [vmem:[#allocation3 + $0x22] ss:$2 sm:$0xff]  ;;  %v3373_v7 = vld [vmem:[#allocation3 + $0x23] ss:$2 sm:$0xff]  ;;  %3717 = vmatpush1.bf16.msra.mxu0 %v8136_v43 }
 0x41d   : > { %3346 = vst [vmem:[#allocation3 + $0x40] sm:$0xff] %v3329_v50  ;;  %v3330_v61 = vmax.f32 %v7234_v28, %v7304_v29  ;;  %v3376_v62 = vmax.f32 %v3369_v32, %v3373_v7  ;;  %3718 = vmatprep.subr.bf16.mxu0 %v8141_v6 }
 0x41f   : > { %3347 = vst [vmem:[#allocation3 + $0x48] sm:$0xff] %v3330_v61  ;;  %v7235_v34 = vpop.f32.mrb[64].mxu0  ;;  %v7305_v37 = vpop.f32.mrb[64].mxu1  ;;  %3378 = vst [vmem:[#allocation4 + $0x13] sm:$0xff] %v3376_v62 }
 0x420   : > { %v7236_v39 = vpop.f32.mrb[65].mxu0  ;;  %v7306_v40 = vpop.f32.mrb[65].mxu1  ;;  %3719 = vmatpush1.bf16.msra.mxu0 %v8139_v53 }
 0x421   : > { %v7237_v4 = vadd.f32 %v7236_v39, %v7235_v34  ;;  %v7307_v33 = vadd.f32 %v7306_v40, %v7305_v37  ;;  %v7238_v47 = vpop.f32.mrb[66].mxu0  ;;  %v7308_v30 = vpop.f32.mrb[66].mxu1  ;;  %3720 = vmatprep.subr.bf16.mxu0 %v8144_v3 }
 0x422   : > { %v7239_v48 = vpop.f32.mrb[67].mxu0  ;;  %v7309_v54 = vpop.f32.mrb[67].mxu1 }
 0x423   : > { %v3331_v55 = vmax.f32 %v7237_v4, %v7307_v33  ;;  %v7240_v56 = vadd.f32 %v7239_v48, %v7238_v47  ;;  %v7310_v57 = vadd.f32 %v7309_v54, %v7308_v30 }
 0x424   : > { %v3371_v58 = vld [vmem:[#allocation3 + $0x32] ss:$2 sm:$0xff]  ;;  %v3375_v59 = vld [vmem:[#allocation3 + $0x33] ss:$2 sm:$0xff]  ;;  %3721 = vmatpush1.bf16.msra.mxu0 %v8142_v42 }
 0x425   : > { %3348 = vst [vmem:[#allocation3 + $0x50] sm:$0xff] %v3331_v55  ;;  %v3332_v25 = vmax.f32 %v7240_v56, %v7310_v57  ;;  %v3377_v41 = vmax.f32 %v3371_v58, %v3375_v59  ;;  %3722 = vmatprep.subr.bf16.mxu0 %v8147_v44 }
 0x426   : > { %v3442_v22 = vld [vmem:[#allocation4 + $0x11] sm:$0xff] }
 0x427   : > { %3349 = vst [vmem:[#allocation3 + $0x58] sm:$0xff] %v3332_v25  ;;  %v7241_v31 = vpop.f32.mrb[68].mxu0  ;;  %v7311_v60 = vpop.f32.mrb[68].mxu1  ;;  %3379 = vst [vmem:[#allocation4 + $0x1b] sm:$0xff] %v3377_v41 }
 0x428   : > { %v7242_v0 = vpop.f32.mrb[69].mxu0  ;;  %v7312_v35 = vpop.f32.mrb[69].mxu1  ;;  %3723 = vmatpush1.bf16.msra.mxu0 %v8145_v63 }
 0x429   : > { %v7243_v5 = vadd.f32 %v7242_v0, %v7241_v31  ;;  %v7313_v9 = vadd.f32 %v7312_v35, %v7311_v60  ;;  %v7244_v12 = vpop.f32.mrb[70].mxu0  ;;  %v7314_v14 = vpop.f32.mrb[70].mxu1  ;;  %3724 = vmatprep.subr.bf16.mxu0 %v8150_v38 }
 0x42a   : > { %v7245_v18 = vpop.f32.mrb[71].mxu0  ;;  %v7315_v19 = vpop.f32.mrb[71].mxu1 }
 0x42b   : > { %v3333_v46 = vmax.f32 %v7243_v5, %v7313_v9  ;;  %v7246_v8 = vadd.f32 %v7245_v18, %v7244_v12  ;;  %v7316_v17 = vadd.f32 %v7315_v19, %v7314_v14  ;;  %v3411_v9 = vld [vmem:[#allocation4 + $0x8] sm:$0xff]  ;;  %v3410_v12 = vld [vmem:[#allocation4] sm:$0xff] }
 0x42c   : > { %v3383_v36 = vld [vmem:[#allocation3 + $0x44] ss:$2 sm:$0xff]  ;;  %v3387_v51 = vld [vmem:[#allocation3 + $0x45] ss:$2 sm:$0xff]  ;;  %3725 = vmatpush1.bf16.msra.mxu0 %v8148_v1 }
 0x42d   : > { %v3390_v20 = vmax.f32 %v3383_v36, %v3387_v51  ;;  %3350 = vst [vmem:[#allocation3 + $0x60] sm:$0xff] %v3333_v46  ;;  %v3334_v21 = vmax.f32 %v7246_v8, %v7316_v17  ;;  %3726 = vmatprep.subr.bf16.mxu0 %v8153_v15  ;;  %v8154_v14 = vld [vmem:[%s10499_s6 + $0x100] ss:$8 sps:$4 sm:$0xff]   ;;  %v3419_v15 = vpack.c.bf16 %v3411_v9, %v3410_v12  ;;  %v8159_v18 = vld [vmem:[%s10499_s6 + $0x114] ss:$8 sps:$4 sm:$0xff]  }
 0x42e   : > { %v3443_v43 = vld [vmem:[#allocation4 + $0x19] sm:$0xff]  ;;  %v8162_v46 = vld [vmem:[%s10499_s6 + $0x124] ss:$8 sps:$4 sm:$0xff]   ;;  %v8160_v36 = vld [vmem:[%s10499_s6 + $0x120] ss:$8 sps:$4 sm:$0xff]  }
 0x42f   : > { %3392 = vst [vmem:[#allocation4 + $0x25] sm:$0xff] %v3390_v20  ;;  %3351 = vst [vmem:[#allocation3 + $0x68] sm:$0xff] %v3334_v21  ;;  %v7247_v16 = vpop.f32.mrb[72].mxu0  ;;  %v7317_v23 = vpop.f32.mrb[72].mxu1  ;;  %v3450_v24 = vpack.c.bf16 %v3443_v43, %v3442_v22  ;;  %v8157_v19 = vld [vmem:[%s10499_s6 + $0x110] ss:$8 sps:$4 sm:$0xff]  }
 0x430   : > { %v7248_v13 = vpop.f32.mrb[73].mxu0  ;;  %v7318_v6 = vpop.f32.mrb[73].mxu1  ;;  %3727 = vmatpush1.bf16.msra.mxu0 %v8151_v11  ;;  %v3413_v8 = vld [vmem:[#allocation4 + $0x18] sm:$0xff]  ;;  %v3412_v17 = vld [vmem:[#allocation4 + $0x10] sm:$0xff] }
 0x431   : > { %v7249_v10 = vadd.f32 %v7248_v13, %v7247_v16  ;;  %v7319_v26 = vadd.f32 %v7318_v6, %v7317_v23  ;;  %v7250_v50 = vpop.f32.mrb[74].mxu0  ;;  %v7320_v28 = vpop.f32.mrb[74].mxu1  ;;  %3594 = vmatmul.mubr.bf16.gmra.mrb[84].mxu0 %v3450_v24  ;;  %3904 = vmatprep.subr.bf16.mxu0 %v8156_v52  ;;  %v3420_v51 = vpack.c.bf16 %v3413_v8, %v3412_v17  ;;  %v8165_v11 = vld [vmem:[%s10499_s6 + $0x134] ss:$8 sps:$4 sm:$0xff]   ;;  %v8163_v20 = vld [vmem:[%s10499_s6 + $0x130] ss:$8 sps:$4 sm:$0xff]  }
 0x432   : > { %v7251_v29 = vpop.f32.mrb[75].mxu0  ;;  %v7321_v32 = vpop.f32.mrb[75].mxu1  ;;  %3603 = vmatprep.mubr.bf16.mxu0 %v8474_v2  ;;  %v8168_v21 = vld [vmem:[%s10499_s6 + $0x144] ss:$8 sps:$4 sm:$0xff]   ;;  %v8166_v43 = vld [vmem:[%s10499_s6 + $0x140] ss:$8 sps:$4 sm:$0xff]  }
 0x433   : > { %v3335_v7 = vmax.f32 %v7249_v10, %v7319_v26  ;;  %v7252_v53 = vadd.f32 %v7251_v29, %v7250_v50  ;;  %v7322_v61 = vadd.f32 %v7321_v32, %v7320_v28  ;;  %v8171_v23 = vld [vmem:[%s10499_s6 + $0x154] ss:$8 sps:$4 sm:$0xff]   ;;  %v8169_v24 = vld [vmem:[%s10499_s6 + $0x150] ss:$8 sps:$4 sm:$0xff]   ;;  %v8174_v13 = vld [vmem:[%s10499_s6 + $0x164] ss:$8 sps:$4 sm:$0xff]  }
 0x434   : > { %v3385_v62 = vld [vmem:[#allocation3 + $0x54] ss:$2 sm:$0xff]  ;;  %v3389_v3 = vld [vmem:[#allocation3 + $0x55] ss:$2 sm:$0xff]  ;;  %v8177_v28 = vld [vmem:[%s10499_s6 + $0x174] ss:$8 sps:$4 sm:$0xff]  }
 0x435   : > { %v3391_v34 = vmax.f32 %v3385_v62, %v3389_v3  ;;  %3352 = vst [vmem:[#allocation3 + $0x70] sm:$0xff] %v3335_v7  ;;  %v3336_v37 = vmax.f32 %v7252_v53, %v7322_v61  ;;  %v8172_v26 = vld [vmem:[%s10499_s6 + $0x160] ss:$8 sps:$4 sm:$0xff]   ;;  %v8175_v29 = vld [vmem:[%s10499_s6 + $0x170] ss:$8 sps:$4 sm:$0xff]  }
 0x436   : > { %v3444_v59 = vld [vmem:[#allocation4 + $0x21] sm:$0xff]  ;;  %v3794_v61 = vld [vmem:[#allocation4 + $0xa] sm:$0xff] }
 0x437   : > { %3393 = vst [vmem:[#allocation4 + $0x2d] sm:$0xff] %v3391_v34  ;;  %3353 = vst [vmem:[#allocation3 + $0x78] sm:$0xff] %v3336_v37  ;;  %v7253_v39 = vpop.f32.mrb[76].mxu0  ;;  %v7323_v40 = vpop.f32.mrb[76].mxu1  ;;  %v3414_v22 = vld [vmem:[#allocation4 + $0x20] sm:$0xff]  ;;  %v3795_v34 = vld [vmem:[#allocation4 + $0x12] sm:$0xff] }
 0x438   : > { %v7254_v42 = vpop.f32.mrb[77].mxu0  ;;  %v7324_v4 = vpop.f32.mrb[77].mxu1  ;;  %v3793_v53 = vld [vmem:[#allocation4 + $0x2] sm:$0xff]  ;;  %v3796_v3 = vld [vmem:[#allocation4 + $0x1a] sm:$0xff] }
 0x439   : > { %v7255_v33 = vadd.f32 %v7254_v42, %v7253_v39  ;;  %v7325_v47 = vadd.f32 %v7324_v4, %v7323_v40  ;;  %v7256_v30 = vpop.f32.mrb[78].mxu0  ;;  %v7326_v44 = vpop.f32.mrb[78].mxu1  ;;  %v3802_v62 = vpack.c.bf16 %v3794_v61, %v3793_v53  ;;  %v3803_v37 = vpack.c.bf16 %v3796_v3, %v3795_v34  ;;  %v3797_v40 = vld [vmem:[#allocation4 + $0x22] sm:$0xff] }
 0x43a   : > { %v7257_v48 = vpop.f32.mrb[79].mxu0  ;;  %v7327_v54 = vpop.f32.mrb[79].mxu1  ;;  %v8205_v9 = vld [vmem:[%s10501_s8 + $0x190] ss:$8 sps:$4 sm:$0xff]   ;;  %v8207_v12 = vld [vmem:[%s10501_s8 + $0x194] ss:$8 sps:$4 sm:$0xff]  }
 0x43b   : > { %v3337_v55 = vmax.f32 %v7255_v33, %v7325_v47  ;;  %v8178_v48 = vld [vmem:[%s10501_s8 + $0x100] ss:$8 sps:$4 sm:$0xff]   ;;  %v8180_v54 = vld [vmem:[%s10501_s8 + $0x104] ss:$8 sps:$4 sm:$0xff]   ;;  %v8217_v17 = vld [vmem:[%s10501_s8 + $0x1d0] ss:$8 sps:$4 sm:$0xff]  }
 0x43c   : > { %v3397_v56 = vld [vmem:[#allocation3 + $0x66] ss:$2 sm:$0xff]  ;;  %v3401_v57 = vld [vmem:[#allocation3 + $0x67] ss:$2 sm:$0xff]  ;;  %4418 = vmatprep.subr.bf16.mxu1 %v8180_v54 }
 0x43d   : > { %v3404_v58 = vmax.f32 %v3397_v56, %v3401_v57  ;;  %3354 = vst [vmem:[#allocation3 + $0x80] sm:$0x3f] %v3337_v55  ;;  %v8183_v55 = vld [vmem:[%s10501_s8 + $0x114] ss:$8 sps:$4 sm:$0xff]   ;;  %4419 = vmatpush1.bf16.msra.mxu1 %v8178_v48  ;;  %v8186_v56 = vld [vmem:[%s10501_s8 + $0x124] ss:$8 sps:$4 sm:$0xff]  }
 0x43e   : > { %v3445_v63 = vld [vmem:[#allocation4 + $0x29] sm:$0xff]  ;;  %4420 = vmatprep.subr.bf16.mxu1 %v8183_v55 }
 0x43f   : > { %3406 = vst [vmem:[#allocation4 + $0x37] sm:$0xff] %v3404_v58  ;;  %v3451_v25 = vpack.c.bf16 %v3445_v63, %v3444_v59  ;;  %v3415_v52 = vld [vmem:[#allocation4 + $0x28] sm:$0xff]  ;;  %v8189_v58 = vld [vmem:[%s10501_s8 + $0x134] ss:$8 sps:$4 sm:$0xff]   ;;  %v8187_v59 = vld [vmem:[%s10501_s8 + $0x130] ss:$8 sps:$4 sm:$0xff]  }
 0x440   : > { %v3421_v16 = vpack.c.bf16 %v3415_v52, %v3414_v22  ;;  %v3798_v39 = vld [vmem:[#allocation4 + $0x2a] sm:$0xff] }
 0x441   : > { %3604 = vmatmul.mubr.bf16.gmra.mrb[88].mxu0 %v3451_v25  ;;  %v3804_v42 = vpack.c.bf16 %v3798_v39, %v3797_v40  ;;  %v8184_v57 = vld [vmem:[%s10501_s8 + $0x120] ss:$8 sps:$4 sm:$0xff]   ;;  %v8192_v63 = vld [vmem:[%s10501_s8 + $0x144] ss:$8 sps:$4 sm:$0xff]  }
 0x442   : > { %3613 = vmatprep.mubr.bf16.mxu0 %v8474_v2  ;;  %v8190_v25 = vld [vmem:[%s10501_s8 + $0x140] ss:$8 sps:$4 sm:$0xff]   ;;  %v8228_v52 = vld [vmem:[%s10501_s8 + $0x4] ss:$8 sps:$4 sm:$0xff]  }
 0x443   : > { %v8214_v8 = vld [vmem:[%s10501_s8 + $0x1c0] ss:$8 sps:$4 sm:$0xff]  }
 0x444   : > { %v3399_v41 = vld [vmem:[#allocation3 + $0x76] ss:$2 sm:$0xff]  ;;  %v3403_v38 = vld [vmem:[#allocation3 + $0x77] ss:$2 sm:$0xff] }
 0x445   : > { %v3405_v31 = vmax.f32 %v3399_v41, %v3403_v38  ;;  %v8195_v41 = vld [vmem:[%s10501_s8 + $0x154] ss:$8 sps:$4 sm:$0xff]   ;;  %v8193_v38 = vld [vmem:[%s10501_s8 + $0x150] ss:$8 sps:$4 sm:$0xff]  }
 0x446   : > { %v3446_v60 = vld [vmem:[#allocation4 + $0x31] sm:$0xff] }
 0x447   : > { %3407 = vst [vmem:[#allocation4 + $0x3f] sm:$0xff] %v3405_v31  ;;  %v3416_v10 = vld [vmem:[#allocation4 + $0x30] sm:$0xff] }
 0x448   : > { %v3799_v33 = vld [vmem:[#allocation4 + $0x32] sm:$0xff] }
 0x449   : > { %v8198_v31 = vld [vmem:[%s10501_s8 + $0x164] ss:$8 sps:$4 sm:$0xff]  }
 0x44e   : > { %v3447_v0 = vld [vmem:[#allocation4 + $0x39] sm:$0xff]  ;;  %v3448_v1 = vld [vmem:[#allocation4 + $0x41] sm:$0x3f] }
 0x44f   : > { %v3452_v35 = vpack.c.bf16 %v3447_v0, %v3446_v60  ;;  %v3453_v5 = vpack.c.bf16 %v3448_v1, %v3448_v1  ;;  %v3417_v6 = vld [vmem:[#allocation4 + $0x38] sm:$0xff]  ;;  %v3418_v32 = vld [vmem:[#allocation4 + $0x40] sm:$0x3f]  ;;  %v8196_v60 = vld [vmem:[%s10501_s8 + $0x160] ss:$8 sps:$4 sm:$0xff]  }
 0x450   : > { %v3422_v50 = vpack.c.bf16 %v3417_v6, %v3416_v10  ;;  %v3423_v7 = vpack.c.bf16 %v3418_v32, %v3418_v32  ;;  %v3800_v4 = vld [vmem:[#allocation4 + $0x3a] sm:$0xff]  ;;  %v3801_v30 = vld [vmem:[#allocation4 + $0x42] sm:$0x3f]  ;;  %v8204_v1 = vld [vmem:[%s10501_s8 + $0x184] ss:$8 sps:$4 sm:$0xff]  }
 0x451   : > { %3614 = vmatmul.mubr.bf16.gmra.mrb[92].mxu0 %v3452_v35  ;;  %v3805_v47 = vpack.c.bf16 %v3800_v4, %v3799_v33  ;;  %v3806_v44 = vpack.c.bf16 %v3801_v30, %v3801_v30  ;;  %v8199_v0 = vld [vmem:[%s10501_s8 + $0x170] ss:$8 sps:$4 sm:$0xff]   ;;  %v8201_v35 = vld [vmem:[%s10501_s8 + $0x174] ss:$8 sps:$4 sm:$0xff]  }
 0x452   : > { %3623 = vmatprep.mubr.bf16.mxu0 %v8474_v2 }
 0x459   : > { %3624 = vmatmul.mubr.bf16.gmra.mrb[96].mxu0 %v3453_v5  ;;  %v8202_v5 = vld [vmem:[%s10501_s8 + $0x180] ss:$8 sps:$4 sm:$0xff]  }
 0x45a   : > { %3744 = vmatprep.mubr.bf16.mxu0 %v8474_v2 }
 0x461   : > { %3745 = vmatmul.mubr.bf16.vlgmr.msra.gmra.mrb[80].mxu0 %v3419_v15  ;;  %v8208_v15 = vld [vmem:[%s10501_s8 + $0x1a0] ss:$8 sps:$4 sm:$0xff]  }
 0x462   : > { %3905 = vmatpush1.bf16.msra.mxu0 %v8154_v14  ;;  %3754 = vmatprep.mubr.bf16.mxu0 %v8474_v2  ;;  %v8210_v14 = vld [vmem:[%s10501_s8 + $0x1a4] ss:$8 sps:$4 sm:$0xff]  }
 0x463   : > { %3906 = vmatprep.subr.bf16.mxu0 %v8159_v18  ;;  %v8211_v18 = vld [vmem:[%s10501_s8 + $0x1b0] ss:$8 sps:$4 sm:$0xff]  }
 0x466   : > { %3907 = vmatpush1.bf16.msra.mxu0 %v8157_v19  ;;  %v8213_v19 = vld [vmem:[%s10501_s8 + $0x1b4] ss:$8 sps:$4 sm:$0xff]  }
 0x467   : > { %3908 = vmatprep.subr.bf16.mxu0 %v8162_v46  ;;  %v8216_v46 = vld [vmem:[%s10501_s8 + $0x1c4] ss:$8 sps:$4 sm:$0xff]  }
 0x469   : > { %3755 = vmatmul.mubr.bf16.gmra.mrb[84].mxu0 %v3420_v51  ;;  %v8222_v51 = vld [vmem:[%s10501_s8 + $0x1e4] ss:$8 sps:$4 sm:$0xff]  }
 0x46a   : > { %3909 = vmatpush1.bf16.msra.mxu0 %v8160_v36  ;;  %3764 = vmatprep.mubr.bf16.mxu0 %v8474_v2  ;;  %v8219_v36 = vld [vmem:[%s10501_s8 + $0x1d4] ss:$8 sps:$4 sm:$0xff]  }
 0x46b   : > { %3910 = vmatprep.subr.bf16.mxu0 %v8165_v11  ;;  %v8220_v11 = vld [vmem:[%s10501_s8 + $0x1e0] ss:$8 sps:$4 sm:$0xff]  }
 0x46e   : > { %3911 = vmatpush1.bf16.msra.mxu0 %v8163_v20  ;;  %v8223_v20 = vld [vmem:[%s10501_s8 + $0x1f0] ss:$8 sps:$4 sm:$0xff]  }
 0x46f   : > { %3912 = vmatprep.subr.bf16.mxu0 %v8168_v21  ;;  %v8225_v21 = vld [vmem:[%s10501_s8 + $0x1f4] ss:$8 sps:$4 sm:$0xff]  }
 0x471   : > { %3765 = vmatmul.mubr.bf16.gmra.mrb[88].mxu0 %v3421_v16 }
 0x472   : > { %3913 = vmatpush1.bf16.msra.mxu0 %v8166_v43  ;;  %3774 = vmatprep.mubr.bf16.mxu0 %v8474_v2 }
 0x473   : > { %3914 = vmatprep.subr.bf16.mxu0 %v8171_v23 }
 0x476   : > { %3915 = vmatpush1.bf16.msra.mxu0 %v8169_v24 }
 0x477   : > { %3916 = vmatprep.subr.bf16.mxu0 %v8174_v13 }
 0x479   : > { %3775 = vmatmul.mubr.bf16.gmra.mrb[92].mxu0 %v3422_v50  ;;  %v4003_v50 = vld [vmem:[%s10500_s7] sm:$0x3] }
 0x47a   : > { %3784 = vmatprep.mubr.bf16.mxu0 %v8474_v2  ;;  %3917 = vmatpush1.bf16.msra.mxu0 %v8172_v26  ;;  %v9781_v32 = vrot.slane %v4003_v50, %v8950_v49 }
 0x47b   : > { %3918 = vmatprep.subr.bf16.mxu0 %v8177_v28 }
 0x47e   : > { %3919 = vmatpush1.bf16.msra.mxu0 %v8175_v29  ;;  %v9778_v29 = vrot.slane %v4003_v50, %v8943_v45  ;;  %v8226_v50 = vld [vmem:[%s10501_s8] ss:$8 sps:$4 sm:$0xff]  }
 0x481   : > { %3785 = vmatmul.mubr.bf16.gmra.mrb[100].mxu0 %v3423_v7 }
 0x482   : > { %3936 = vmatprep.mubr.bf16.mxu0 %v8474_v2 }
 0x489   : > { %3937 = vmatmul.mubr.bf16.vlgmr.msra.gmra.mrb[80].mxu0 %v3802_v62 }
 0x48a   : > { %3946 = vmatprep.mubr.bf16.mxu0 %v8474_v2 }
 0x491   : > { %3947 = vmatmul.mubr.bf16.gmra.mrb[84].mxu0 %v3803_v37 }
 0x492   : > { %3956 = vmatprep.mubr.bf16.mxu0 %v8474_v2 }
 0x499   : > { %3957 = vmatmul.mubr.bf16.gmra.mrb[88].mxu0 %v3804_v42 }
 0x49a   : > { %3966 = vmatprep.mubr.bf16.mxu0 %v8474_v2 }
 0x4a1   : > { %3967 = vmatmul.mubr.bf16.gmra.mrb[92].mxu0 %v3805_v47 }
 0x4a2   : > { %3976 = vmatprep.mubr.bf16.mxu0 %v8474_v2  ;;  %v8181_v2 = vld [vmem:[%s10501_s8 + $0x110] ss:$8 sps:$4 sm:$0xff]  }
 0x4a3   : > { %4421 = vmatpush1.bf16.msra.mxu1 %v8181_v2 }
 0x4a4   : > { %4422 = vmatprep.subr.bf16.mxu1 %v8186_v56 }
 0x4a7   : > { %4423 = vmatpush1.bf16.msra.mxu1 %v8184_v57 }
 0x4a8   : > { %4424 = vmatprep.subr.bf16.mxu1 %v8189_v58 }
 0x4a9   : > { %3977 = vmatmul.mubr.bf16.gmra.mrb[104].mxu0 %v3806_v44 }
 0x4ab   : > { %4425 = vmatpush1.bf16.msra.mxu1 %v8187_v59 }
 0x4ac   : > { %4426 = vmatprep.subr.bf16.mxu1 %v8192_v63 }
 0x4af   : > { %4427 = vmatpush1.bf16.msra.mxu1 %v8190_v25 }
 0x4b0   : > { %4428 = vmatprep.subr.bf16.mxu1 %v8195_v41 }
 0x4b3   : > { %4429 = vmatpush1.bf16.msra.mxu1 %v8193_v38 }
 0x4b4   : > { %4430 = vmatprep.subr.bf16.mxu1 %v8198_v31 }
 0x4b7   : > { %4431 = vmatpush1.bf16.msra.mxu1 %v8196_v60 }
 0x4b8   : > { %4432 = vmatprep.subr.bf16.mxu1 %v8201_v35 }
 0x4bb   : > { %4433 = vmatpush1.bf16.msra.mxu1 %v8199_v0 }
 0x4bc   : > { %4434 = vmatprep.subr.bf16.mxu1 %v8204_v1 }
 0x4bf   : > { %4435 = vmatpush1.bf16.msra.mxu1 %v8202_v5 }
 0x4c0   : > { %4436 = vmatprep.subr.bf16.mxu1 %v8207_v12 }
 0x4c3   : > { %4437 = vmatpush1.bf16.msra.mxu1 %v8205_v9 }
 0x4c4   : > { %4438 = vmatprep.subr.bf16.mxu1 %v8210_v14 }
 0x4c7   : > { %4439 = vmatpush1.bf16.msra.mxu1 %v8208_v15 }
 0x4c8   : > { %4440 = vmatprep.subr.bf16.mxu1 %v8213_v19 }
 0x4cb   : > { %4441 = vmatpush1.bf16.msra.mxu1 %v8211_v18 }
 0x4cc   : > { %4442 = vmatprep.subr.bf16.mxu1 %v8216_v46 }
 0x4cf   : > { %4443 = vmatpush1.bf16.msra.mxu1 %v8214_v8 }
 0x4d0   : > { %4444 = vmatprep.subr.bf16.mxu1 %v8219_v36 }
 0x4d3   : > { %4445 = vmatpush1.bf16.msra.mxu1 %v8217_v17 }
 0x4d4   : > { %4446 = vmatprep.subr.bf16.mxu1 %v8222_v51 }
 0x4d7   : > { %4447 = vmatpush1.bf16.msra.mxu1 %v8220_v11 }
 0x4d8   : > { %4448 = vmatprep.subr.bf16.mxu1 %v8225_v21 }
 0x4db   : > { %4449 = vmatpush1.bf16.msra.mxu1 %v8223_v20 }
 0x4dc   : > { %4659 = vmatprep.subr.bf16.mxu1 %v8228_v52 }
 0x52c   : > { %v3625_v22 = vpop.f32.mrb[96].mxu0 }
 0x52d   : > { %v3627_v43 = vpop.f32.mrb[97].mxu0 }
 0x52e   : > { %v3629_v16 = vpop.f32.mrb[98].mxu0 }
 0x52f   : > { %v3630_v23 = vpop.f32.mrb[99].mxu0 }
 0x554   : > { %v3786_v24 = vpop.f32.mrb[100].mxu0 }
 0x555   : > { %v9770_v13 = vadd.f32 %v3786_v24, %v3625_v22  ;;  %v3788_v6 = vpop.f32.mrb[101].mxu0 }
 0x556   : > { %v9772_v10 = vadd.f32 %v3788_v6, %v3627_v43  ;;  %v3790_v26 = vpop.f32.mrb[102].mxu0 }
 0x557   : > { %v3791_v28 = vpop.f32.mrb[103].mxu0 }
 0x55c   : > { %v3938_v7 = vpop.f32.mrb[80].mxu0 }
 0x55d   : > { %v4015_v53 = vadd.f32 %v9778_v29, %v3938_v7  ;;  %v3940_v61 = vpop.f32.mrb[81].mxu0 }
 0x55e   : > { %v4016_v62 = vadd.f32 %v9781_v32, %v3940_v61  ;;  %v3942_v3 = vpop.f32.mrb[82].mxu0 }
 0x55f   : > { %v4033_v34 = vmax.f32 %v4015_v53, 0.0  ;;  %v4017_v37 = vadd.f32 %v9778_v29, %v3942_v3  ;;  %v3944_v39 = vpop.f32.mrb[83].mxu0  ;;  %v8231_v53 = vld [vmem:[%s10501_s8 + $0x14] ss:$8 sps:$4 sm:$0xff]  }
 0x560   : > { %v4034_v40 = vmax.f32 %v4016_v62, 0.0  ;;  %v4018_v42 = vadd.f32 %v9781_v32, %v3944_v39 }
 0x561   : > { %4051 = vst [vmem:[#allocation5] sm:$0xff] %v4033_v34  ;;  %v9787_v4 = vmax.f32 %v4017_v37, 0.0 }
 0x562   : > { %4052 = vst [vmem:[#allocation5 + $0x8] sm:$0xff] %v4034_v40  ;;  %v9789_v33 = vmax.f32 %v4018_v42, 0.0 }
 0x563   : > { %v9792_v47 = vpack.c.bf16 %v9787_v4, %v4033_v34 }
 0x564   : > { %v3948_v30 = vpop.f32.mrb[84].mxu0  ;;  %v9795_v44 = vpack.c.bf16 %v9789_v33, %v4034_v40  ;;  %v8229_v40 = vld [vmem:[%s10501_s8 + $0x10] ss:$8 sps:$4 sm:$0xff]  }
 0x565   : > { %v4019_v48 = vadd.f32 %v9778_v29, %v3948_v30  ;;  %v3950_v54 = vpop.f32.mrb[85].mxu0 }
 0x566   : > { %v4020_v55 = vadd.f32 %v9781_v32, %v3950_v54  ;;  %v3952_v2 = vpop.f32.mrb[86].mxu0 }
 0x567   : > { %v4037_v56 = vmax.f32 %v4019_v48, 0.0  ;;  %v4021_v57 = vadd.f32 %v9778_v29, %v3952_v2  ;;  %v3954_v58 = vpop.f32.mrb[87].mxu0  ;;  %v8234_v2 = vld [vmem:[%s10501_s8 + $0x24] ss:$8 sps:$4 sm:$0xff]  }
 0x568   : > { %v4038_v59 = vmax.f32 %v4020_v55, 0.0  ;;  %v4022_v63 = vadd.f32 %v9781_v32, %v3954_v58  ;;  %v4129_v25 = vld [vmem:[#allocation5] sm:$0xfe] }
 0x569   : > { %v4039_v41 = vmax.f32 %v4021_v57, 0.0  ;;  %v4130_v38 = vld [vmem:[#allocation5 + $0x8] sm:$0xfe]  ;;  %v4133_v31 = vpack.c.bf16 %v9787_v4, %v4129_v25 }
 0x56a   : > { %v4040_v60 = vmax.f32 %v4022_v63, 0.0  ;;  %v4134_v0 = vpack.c.bf16 %v9789_v33, %v4130_v38 }
 0x56b   : > { %v9803_v35 = vpack.c.bf16 %v4039_v41, %v4037_v56  ;;  %v4173_v1 = vshll.u32 %v4133_v31, 16  ;;  %v4171_v18 = vshrl.u32 %v4133_v31, 16 }
 0x56c   : > { %v3958_v5 = vpop.f32.mrb[88].mxu0  ;;  %v9805_v9 = vpack.c.bf16 %v4040_v60, %v4038_v59  ;;  %v4185_v12 = vshll.u32 %v4134_v0, 16  ;;  %v4183_v36 = vshrl.u32 %v4134_v0, 16  ;;  %v8232_v0 = vld [vmem:[%s10501_s8 + $0x20] ss:$8 sps:$4 sm:$0xff]  }
 0x56d   : > { %v4023_v14 = vadd.f32 %v9778_v29, %v3958_v5  ;;  %v3960_v15 = vpop.f32.mrb[89].mxu0  ;;  %v4175_v19 = vrot.slane %v4173_v1, 1  ;;  %v4178_v46 = vshll.u32 %v9803_v35, 16  ;;  %v4194_v59 = vshrl.u32 %v9803_v35, 16 }
 0x56e   : > { %v4024_v8 = vadd.f32 %v9781_v32, %v3960_v15  ;;  %v3962_v17 = vpop.f32.mrb[90].mxu0  ;;  %v4187_v51 = vrot.slane %v4185_v12, 1  ;;  %v4190_v11 = vshll.u32 %v9805_v9, 16  ;;  %v4202_v54 = vshrl.u32 %v9805_v9, 16 }
 0x56f   : > { %v4041_v20 = vmax.f32 %v4023_v14, 0.0  ;;  %v4025_v21 = vadd.f32 %v9778_v29, %v3962_v17  ;;  %v3964_v52 = vpop.f32.mrb[91].mxu0  ;;  %v4176_v22 = vor.u32 %v4175_v19, %v4171_v18  ;;  %v4180_v43 = vrot.slane %v4178_v46, 1  ;;  %v8237_v14 = vld [vmem:[%s10501_s8 + $0x34] ss:$8 sps:$4 sm:$0xff]  }
 0x570   : > { %v4042_v16 = vmax.f32 %v4024_v8, 0.0  ;;  %v4026_v23 = vadd.f32 %v9781_v32, %v3964_v52  ;;  %v4188_v24 = vor.u32 %v4187_v51, %v4183_v36  ;;  %v4192_v6 = vrot.slane %v4190_v11, 1  ;;  %v8235_v36 = vld [vmem:[%s10501_s8 + $0x30] ss:$8 sps:$4 sm:$0xff]  }
 0x571   : > { %v4043_v26 = vmax.f32 %v4025_v21, 0.0  ;;  %v4181_v61 = vsel %vm1608_vm2, %v4176_v22, %v4180_v43  ;;  %v4196_v1 = vor.u32 %v4194_v59, %v4180_v43 }
 0x572   : > { %v4044_v28 = vmax.f32 %v4026_v23, 0.0  ;;  %v4193_v7 = vsel %vm1608_vm2, %v4188_v24, %v4192_v6  ;;  %v4204_v38 = vor.u32 %v4202_v54, %v4192_v6 }
 0x573   : > { %4450 = vmatprep.mubr.bf16.mxu1 %v4193_v7  ;;  %v9821_v62 = vpack.c.bf16 %v4043_v26, %v4041_v20 }
 0x574   : > { %v3968_v3 = vpop.f32.mrb[92].mxu0  ;;  %4451 = vmatmul.mubr.bf16.vlgmr.msra.gmra.mrb[80].mxu1 %v4181_v61  ;;  %v9823_v34 = vpack.c.bf16 %v4044_v28, %v4042_v16  ;;  %v8241_v61 = vld [vmem:[%s10501_s8 + $0x50] ss:$8 sps:$4 sm:$0xff]  }
 0x575   : > { %v4027_v37 = vadd.f32 %v9778_v29, %v3968_v3  ;;  %v3970_v39 = vpop.f32.mrb[93].mxu0  ;;  %4660 = vmatpush1.bf16.msra.mxu1 %v8226_v50  ;;  %v4198_v42 = vshll.u32 %v9821_v62, 16  ;;  %v4210_v16 = vshrl.u32 %v9821_v62, 16  ;;  %v8238_v50 = vld [vmem:[%s10501_s8 + $0x40] ss:$8 sps:$4 sm:$0xff]  }
 0x576   : > { %v4028_v30 = vadd.f32 %v9781_v32, %v3970_v39  ;;  %v3972_v48 = vpop.f32.mrb[94].mxu0  ;;  %4661 = vmatprep.subr.bf16.mxu1 %v8231_v53  ;;  %v4206_v55 = vshll.u32 %v9823_v34, 16  ;;  %v4218_v21 = vshrl.u32 %v9823_v34, 16  ;;  %v8246_v3 = vld [vmem:[%s10501_s8 + $0x64] ss:$8 sps:$4 sm:$0xff]  }
 0x577   : > { %v4045_v56 = vmax.f32 %v4027_v37, 0.0  ;;  %v4029_v57 = vadd.f32 %v9778_v29, %v3972_v48  ;;  %v3974_v58 = vpop.f32.mrb[95].mxu0  ;;  %v4200_v63 = vrot.slane %v4198_v42, 1  ;;  %v8244_v37 = vld [vmem:[%s10501_s8 + $0x60] ss:$8 sps:$4 sm:$0xff]  }
 0x578   : > { %v4046_v25 = vmax.f32 %v4028_v30, 0.0  ;;  %v4030_v41 = vadd.f32 %v9781_v32, %v3974_v58  ;;  %v4208_v31 = vrot.slane %v4206_v55, 1  ;;  %v8247_v55 = vld [vmem:[%s10501_s8 + $0x70] ss:$8 sps:$4 sm:$0xff]  }
 0x579   : > { %v4047_v60 = vmax.f32 %v4029_v57, 0.0  ;;  %4662 = vmatpush1.bf16.msra.mxu1 %v8229_v40  ;;  %v4201_v15 = vsel %vm1608_vm2, %v4196_v1, %v4200_v63  ;;  %v4212_v28 = vor.u32 %v4210_v16, %v4200_v63  ;;  %v8249_v40 = vld [vmem:[%s10501_s8 + $0x74] ss:$8 sps:$4 sm:$0xff]   ;;  %v8252_v57 = vld [vmem:[%s10501_s8 + $0x84] ss:$8 sps:$4 sm:$0xff]  }
 0x57a   : > { %v4048_v5 = vmax.f32 %v4030_v41, 0.0  ;;  %v4209_v12 = vsel %vm1608_vm2, %v4204_v38, %v4208_v31  ;;  %4663 = vmatprep.subr.bf16.mxu1 %v8234_v2  ;;  %v4220_v6 = vor.u32 %v4218_v21, %v4208_v31  ;;  %v8250_v31 = vld [vmem:[%s10501_s8 + $0x80] ss:$8 sps:$4 sm:$0xff]   ;;  %v8255_v1 = vld [vmem:[%s10501_s8 + $0x94] ss:$8 sps:$4 sm:$0xff]  }
 0x57b   : > { %4460 = vmatprep.mubr.bf16.mxu1 %v4209_v12  ;;  %v9847_v18 = vpack.c.bf16 %v4047_v60, %v4045_v56  ;;  %v8253_v12 = vld [vmem:[%s10501_s8 + $0x90] ss:$8 sps:$4 sm:$0xff]   ;;  %v8270_v21 = vld [vmem:[%s10501_s8 + $0xe4] ss:$8 sps:$4 sm:$0xff]   ;;  %v8274_v16 = vld [vmem:[%s10501_s8 + $0x200] ss:$8 sps:$4 sm:$0xff]  }
 0x57c   : > { %v3978_v19 = vpop.f32.mrb[104].mxu0  ;;  %4461 = vmatmul.mubr.bf16.gmra.mrb[84].mxu1 %v4201_v15  ;;  %v9849_v46 = vpack.c.bf16 %v4048_v5, %v4046_v25 }
 0x57d   : > { %v4001_v8 = vadd.f32 %v3978_v19, %v9770_v13  ;;  %v3980_v17 = vpop.f32.mrb[105].mxu0  ;;  %4664 = vmatpush1.bf16.msra.mxu1 %v8232_v0  ;;  %v4214_v51 = vshll.u32 %v9847_v18, 16  ;;  %v8240_v13 = vld [vmem:[%s10501_s8 + $0x44] ss:$8 sps:$4 sm:$0xff]   ;;  %v4226_v58 = vshrl.u32 %v9847_v18, 16 }
 0x57e   : > { %v4002_v11 = vadd.f32 %v3980_v17, %v9772_v10  ;;  %v3982_v20 = vpop.f32.mrb[106].mxu0  ;;  %4665 = vmatprep.subr.bf16.mxu1 %v8237_v14  ;;  %v4222_v52 = vshll.u32 %v9849_v46, 16  ;;  %v4234_v2 = vshrl.u32 %v9849_v46, 16  ;;  %v8258_v14 = vld [vmem:[%s10501_s8 + $0xa4] ss:$8 sps:$4 sm:$0xff]  }
 0x57f   : > { %v4031_v22 = vadd.f32 %v9778_v29, %v4001_v8  ;;  %v3983_v43 = vpop.f32.mrb[107].mxu0  ;;  %v4216_v23 = vrot.slane %v4214_v51, 1  ;;  %v8243_v29 = vld [vmem:[%s10501_s8 + $0x54] ss:$8 sps:$4 sm:$0xff]   ;;  %v8256_v19 = vld [vmem:[%s10501_s8 + $0xa0] ss:$8 sps:$4 sm:$0xff]  }
 0x580   : > { %v4032_v24 = vadd.f32 %v9781_v32, %v4002_v11  ;;  %v4224_v10 = vrot.slane %v4222_v52, 1  ;;  %v8261_v17 = vld [vmem:[%s10501_s8 + $0xb4] ss:$8 sps:$4 sm:$0xff]   ;;  %v8264_v51 = vld [vmem:[%s10501_s8 + $0xc4] ss:$8 sps:$4 sm:$0xff]  }
 0x581   : > { %v4049_v26 = vmax.f32 %v4031_v22, 0.0  ;;  %4666 = vmatpush1.bf16.msra.mxu1 %v8235_v36  ;;  %v4217_v32 = vsel %vm1608_vm2, %v4212_v28, %v4216_v23  ;;  %v4228_v38 = vor.u32 %v4226_v58, %v4216_v23  ;;  %v8259_v36 = vld [vmem:[%s10501_s8 + $0xb0] ss:$8 sps:$4 sm:$0xff]   ;;  %v8262_v11 = vld [vmem:[%s10501_s8 + $0xc0] ss:$8 sps:$4 sm:$0xff]  }
 0x582   : > { %v4050_v7 = vmax.f32 %v4032_v24, 0.0  ;;  %v4225_v53 = vsel %vm1608_vm2, %v4220_v6, %v4224_v10  ;;  %4667 = vmatprep.subr.bf16.mxu1 %v8240_v13  ;;  %v4236_v63 = vor.u32 %v4234_v2, %v4224_v10  ;;  %v8265_v20 = vld [vmem:[%s10501_s8 + $0xd0] ss:$8 sps:$4 sm:$0xff]   ;;  %v8268_v52 = vld [vmem:[%s10501_s8 + $0xe0] ss:$8 sps:$4 sm:$0xff]  }
 0x583   : > { %4067 = vst [vmem:[#allocation5 + $0x80] sm:$0x3f] %v4049_v26  ;;  %4470 = vmatprep.mubr.bf16.mxu1 %v4225_v53  ;;  %v8273_v13 = vld [vmem:[%s10501_s8 + $0xf4] ss:$8 sps:$4 sm:$0xff]   ;;  %v8271_v22 = vld [vmem:[%s10501_s8 + $0xf0] ss:$8 sps:$4 sm:$0xff]  }
 0x584   : > { %4068 = vst [vmem:[#allocation5 + $0x88] sm:$0x3f] %v4050_v7  ;;  %4471 = vmatmul.mubr.bf16.gmra.mrb[88].mxu1 %v4217_v32  ;;  %v8276_v43 = vld [vmem:[%s10501_s8 + $0x204] ss:$8 sps:$4 sm:$0xff]   ;;  %v8279_v23 = vld [vmem:[%s10501_s8 + $0x214] ss:$8 sps:$4 sm:$0xff]  }
 0x585   : > { %4668 = vmatpush1.bf16.msra.mxu1 %v8238_v50  ;;  %v8277_v24 = vld [vmem:[%s10501_s8 + $0x210] ss:$8 sps:$4 sm:$0xff]   ;;  %v8282_v6 = vld [vmem:[%s10501_s8 + $0x224] ss:$8 sps:$4 sm:$0xff]   ;;  %v8280_v10 = vld [vmem:[%s10501_s8 + $0x220] ss:$8 sps:$4 sm:$0xff]  }
 0x586   : > { %4669 = vmatprep.subr.bf16.mxu1 %v8243_v29  ;;  %v8283_v26 = vld [vmem:[%s10501_s8 + $0x230] ss:$8 sps:$4 sm:$0xff]   ;;  %v8288_v50 = vld [vmem:[%s10501_s8 + $0x244] ss:$8 sps:$4 sm:$0xff]   ;;  %v8286_v28 = vld [vmem:[%s10501_s8 + $0x240] ss:$8 sps:$4 sm:$0xff]  }
 0x587   : > { %v8291_v7 = vld [vmem:[%s10501_s8 + $0x254] ss:$8 sps:$4 sm:$0xff]   ;;  %v8289_v53 = vld [vmem:[%s10501_s8 + $0x250] ss:$8 sps:$4 sm:$0xff]   ;;  %v8294_v29 = vld [vmem:[%s10501_s8 + $0x264] ss:$8 sps:$4 sm:$0xff]  }
 0x589   : > { %4670 = vmatpush1.bf16.msra.mxu1 %v8241_v61  ;;  %v8292_v61 = vld [vmem:[%s10501_s8 + $0x260] ss:$8 sps:$4 sm:$0xff]  }
 0x58a   : > { %4671 = vmatprep.subr.bf16.mxu1 %v8246_v3  ;;  %v4131_v39 = vld [vmem:[#allocation5 + $0x80] sm:$0x1f]  ;;  %v8297_v3 = vld [vmem:[%s10501_s8 + $0x274] ss:$8 sps:$4 sm:$0xff]  }
 0x58b   : > { %v4132_v42 = vld [vmem:[#allocation5 + $0x88] sm:$0x1f]  ;;  %v4135_v30 = vpack.c.bf16 %v4131_v39, %v4131_v39 }
 0x58c   : > { %v4136_v48 = vpack.c.bf16 %v4132_v42, %v4132_v42  ;;  %v4086_v32 = vld [vmem:[#allocation5 + $0x88] sm:$0xf]  ;;  %v8300_v42 = vld [vmem:[%s10501_s8 + $0x284] ss:$8 sps:$4 sm:$0xff]  }
 0x58d   : > { %v4230_v54 = vshll.u32 %v4135_v30, 16  ;;  %4672 = vmatpush1.bf16.msra.mxu1 %v8244_v37  ;;  %v4242_v15 = vshrl.u32 %v4135_v30, 16  ;;  %v4096_v37 = vpack.c.bf16 %v4086_v32, %v4086_v32  ;;  %v4741_v39 = vld [vmem:[#allocation5 + $0x8] sm:$0xfc]  ;;  %v8334_v32 = vld [vmem:[%s10503_s10 + $0x70] sm:$0xff]  }
 0x58e   : > { %v4238_v56 = vshll.u32 %v4136_v48, 16  ;;  %4673 = vmatprep.subr.bf16.mxu1 %v8249_v40  ;;  %v4245_v41 = vshrl.u32 %v4136_v48, 16  ;;  %v8295_v40 = vld [vmem:[%s10501_s8 + $0x270] ss:$8 sps:$4 sm:$0xff]   ;;  %v4745_v30 = vpack.c.bf16 %v9789_v33, %v4741_v39  ;;  %v4085_v48 = vld [vmem:[#allocation5 + $0x80] sm:$0xf] }
 0x58f   : > { %v4232_v59 = vrot.slane %v4230_v54, 1  ;;  %v4795_v54 = vrot.slane %v9805_v9, 1  ;;  %v4095_v2 = vpack.c.bf16 %v4085_v48, %v4085_v48  ;;  %v8301_v33 = vld [vmem:[%s10501_s8 + $0x290] ss:$8 sps:$4 sm:$0xff]   ;;  %v8338_v39 = vld [vmem:[%s10503_s10 + $0xc0] sm:$0xff]  }
 0x590   : > { %v4240_v25 = vrot.slane %v4238_v56, 1  ;;  %v4794_v56 = vrot.slane %v4745_v30, 1 }
 0x591   : > { %4674 = vmatpush1.bf16.msra.mxu1 %v8247_v55  ;;  %v4233_v5 = vsel %vm1608_vm2, %v4228_v38, %v4232_v59  ;;  %v4244_v8 = vor.u32 %v4242_v15, %v4232_v59  ;;  %v8298_v55 = vld [vmem:[%s10501_s8 + $0x280] ss:$8 sps:$4 sm:$0xff]  }
 0x592   : > { %v4241_v60 = vsel %vm1608_vm2, %v4236_v63, %v4240_v25  ;;  %v4247_v0 = vor.u32 %v4245_v41, %v4240_v25  ;;  %4675 = vmatprep.subr.bf16.mxu1 %v8252_v57  ;;  %v8303_v57 = vld [vmem:[%s10501_s8 + $0x294] ss:$8 sps:$4 sm:$0xff]   ;;  %v4796_v58 = vsel %vm2390_vm3, %v4794_v56, %v4795_v54  ;;  %v8304_v59 = vld [vmem:[%s10501_s8 + $0x2a0] ss:$8 sps:$4 sm:$0xff]   ;;  %v8307_v25 = vld [vmem:[%s10501_s8 + $0x2b0] ss:$8 sps:$4 sm:$0xff]  }
 0x593   : > { %4480 = vmatprep.mubr.bf16.mxu1 %v4241_v60  ;;  %v8309_v63 = vld [vmem:[%s10501_s8 + $0x2b4] ss:$8 sps:$4 sm:$0xff]   ;;  %v8312_v41 = vld [vmem:[%s10501_s8 + $0x2c4] ss:$8 sps:$4 sm:$0xff]   ;;  %v8310_v38 = vld [vmem:[%s10501_s8 + $0x2c0] ss:$8 sps:$4 sm:$0xff]  }
 0x594   : > { %4481 = vmatmul.mubr.bf16.gmra.mrb[92].mxu1 %v4233_v5  ;;  %v8313_v60 = vld [vmem:[%s10501_s8 + $0x2d0] ss:$8 sps:$4 sm:$0xff]   ;;  %v8321_v5 = vld [vmem:[%s10501_s8 + $0x2f4] ss:$8 sps:$4 sm:$0xff]  }
 0x595   : > { %4490 = vmatprep.mubr.bf16.mxu1 %v4247_v0  ;;  %4676 = vmatpush1.bf16.msra.mxu1 %v8250_v31  ;;  %v8315_v31 = vld [vmem:[%s10501_s8 + $0x2d4] ss:$8 sps:$4 sm:$0xff]   ;;  %v8318_v0 = vld [vmem:[%s10501_s8 + $0x2e4] ss:$8 sps:$4 sm:$0xff]  }
 0x596   : > { %4677 = vmatprep.subr.bf16.mxu1 %v8255_v1  ;;  %v8316_v1 = vld [vmem:[%s10501_s8 + $0x2e0] ss:$8 sps:$4 sm:$0xff]  }
 0x599   : > { %4678 = vmatpush1.bf16.msra.mxu1 %v8253_v12  ;;  %v4740_v12 = vld [vmem:[#allocation5] sm:$0xfc] }
 0x59a   : > { %4679 = vmatprep.subr.bf16.mxu1 %v8258_v14  ;;  %v8319_v14 = vld [vmem:[%s10501_s8 + $0x2f0] ss:$8 sps:$4 sm:$0xff]   ;;  %v4744_v15 = vpack.c.bf16 %v9787_v4, %v4740_v12  ;;  %v4743_v4 = vld [vmem:[#allocation5 + $0x88] sm:$0x3f] }
 0x59c   : > { %4491 = vmatmul.mubr.bf16.gmra.mrb[96].mxu1 %v4244_v8  ;;  %v4799_v8 = vrot.slane %v9823_v34, 1 }
 0x59d   : > { %4691 = vmatprep.mubr.bf16.mxu1 %v9795_v44  ;;  %4680 = vmatpush1.bf16.msra.mxu1 %v8256_v19  ;;  %v8267_v44 = vld [vmem:[%s10501_s8 + $0xd4] ss:$8 sps:$4 sm:$0xff]   ;;  %v4792_v19 = vrot.slane %v9803_v35, 1 }
 0x59e   : > { %4681 = vmatprep.subr.bf16.mxu1 %v8261_v17  ;;  %v4791_v17 = vrot.slane %v4744_v15, 1 }
 0x5a1   : > { %4682 = vmatpush1.bf16.msra.mxu1 %v8259_v36  ;;  %v4793_v36 = vsel %vm2390_vm3, %v4791_v17, %v4792_v19 }
 0x5a2   : > { %4683 = vmatprep.subr.bf16.mxu1 %v8264_v51  ;;  %v4800_v51 = vsel %vm2390_vm3, %v4795_v54, %v4799_v8 }
 0x5a5   : > { %4684 = vmatpush1.bf16.msra.mxu1 %v8262_v11  ;;  %v4797_v11 = vrot.slane %v9821_v62, 1 }
 0x5a6   : > { %4685 = vmatprep.subr.bf16.mxu1 %v8267_v44  ;;  %v4803_v44 = vrot.slane %v9849_v46, 1 }
 0x5a9   : > { %4686 = vmatpush1.bf16.msra.mxu1 %v8265_v20  ;;  %v4798_v20 = vsel %vm2390_vm3, %v4792_v19, %v4797_v11 }
 0x5aa   : > { %4687 = vmatprep.subr.bf16.mxu1 %v8270_v21  ;;  %v4801_v21 = vrot.slane %v9847_v18, 1 }
 0x5ad   : > { %4688 = vmatpush1.bf16.msra.mxu1 %v8268_v52 }
 0x5ae   : > { %4689 = vmatprep.subr.bf16.mxu1 %v8273_v13  ;;  %v4742_v13 = vld [vmem:[#allocation5 + $0x80] sm:$0x3f] }
 0x5b1   : > { %4690 = vmatpush1.bf16.msra.mxu1 %v8271_v22  ;;  %v4802_v22 = vsel %vm2390_vm3, %v4797_v11, %v4801_v21 }
 0x5b2   : > { %4979 = vmatprep.subr.bf16.mxu1 %v8276_v43  ;;  %v4746_v43 = vpack.c.bf16 %v4742_v13, %v4742_v13  ;;  %v8342_v13 = vld [vmem:[%s10503_s10 + $0xd0] sm:$0xff]  }
 0x5b4   : > { %4692 = vmatmul.mubr.bf16.vlgmr.msra.gmra.mrb[80].mxu1 %v9792_v47  ;;  %v8285_v47 = vld [vmem:[%s10501_s8 + $0x234] ss:$8 sps:$4 sm:$0xff]  }
 0x5b5   : > { %4701 = vmatprep.mubr.bf16.mxu1 %v9805_v9  ;;  %4980 = vmatpush1.bf16.msra.mxu1 %v8274_v16  ;;  %v8306_v9 = vld [vmem:[%s10501_s8 + $0x2a4] ss:$8 sps:$4 sm:$0xff]  }
 0x5b6   : > { %4981 = vmatprep.subr.bf16.mxu1 %v8279_v23  ;;  %v8322_v23 = vld [vmem:[%s10503_s10 + $0x40] sm:$0xff]  }
 0x5b7   : > { %7329 = vmatprep.subr.bf16.mxu0 %v8322_v23  ;;  %v8343_v23 = vld [vmem:[%s10503_s10 + $0x90] sm:$0xff]  }
 0x5b9   : > { %4982 = vmatpush1.bf16.msra.mxu1 %v8277_v24  ;;  %v8324_v24 = vld [vmem:[%s10503_s10 + $0x48] sm:$0xff]  }
 0x5ba   : > { %4983 = vmatprep.subr.bf16.mxu1 %v8282_v6  ;;  %v8325_v6 = vld [vmem:[%s10503_s10 + $0x8] sm:$0xff]  }
 0x5bc   : > { %4702 = vmatmul.mubr.bf16.gmra.mrb[84].mxu1 %v9803_v35  ;;  %v4804_v35 = vsel %vm2390_vm3, %v4799_v8, %v4803_v44  ;;  %v8339_v8 = vld [vmem:[%s10503_s10 + $0x80] sm:$0xff]  }
 0x5bd   : > { %4711 = vmatprep.mubr.bf16.mxu1 %v9823_v34  ;;  %4984 = vmatpush1.bf16.msra.mxu1 %v8280_v10  ;;  %v4747_v34 = vpack.c.bf16 %v4743_v4, %v4743_v4  ;;  %v8326_v10 = vld [vmem:[%s10503_s10 + $0x50] sm:$0xff]  }
 0x5be   : > { %4985 = vmatprep.subr.bf16.mxu1 %v8285_v47  ;;  %v8327_v47 = vld [vmem:[%s10503_s10 + $0x10] sm:$0xff]  }
 0x5bf   : > { %v4807_v52 = vrot.slane %v4747_v34, 1  ;;  %v8341_v34 = vld [vmem:[%s10503_s10 + $0x88] sm:$0xff]  }
 0x5c1   : > { %4986 = vmatpush1.bf16.msra.mxu1 %v8283_v26  ;;  %v8328_v26 = vld [vmem:[%s10503_s10 + $0x58] sm:$0xff]  }
 0x5c2   : > { %4987 = vmatprep.subr.bf16.mxu1 %v8288_v50  ;;  %v8329_v50 = vld [vmem:[%s10503_s10 + $0x18] sm:$0xff]  }
 0x5c4   : > { %4712 = vmatmul.mubr.bf16.gmra.mrb[88].mxu1 %v9821_v62  ;;  %v4808_v62 = vsel %vm2390_vm3, %v4803_v44, %v4807_v52 }
 0x5c5   : > { %4721 = vmatprep.mubr.bf16.mxu1 %v9849_v46  ;;  %4988 = vmatpush1.bf16.msra.mxu1 %v8286_v28  ;;  %v4805_v46 = vrot.slane %v4746_v43, 1  ;;  %v8330_v28 = vld [vmem:[%s10503_s10 + $0x60] sm:$0xff]  }
 0x5c6   : > { %4989 = vmatprep.subr.bf16.mxu1 %v8291_v7  ;;  %v8331_v7 = vld [vmem:[%s10503_s10 + $0x20] sm:$0xff]  }
 0x5c7   : > { %v4806_v16 = vsel %vm2390_vm3, %v4801_v21, %v4805_v46 }
 0x5c9   : > { %4990 = vmatpush1.bf16.msra.mxu1 %v8289_v53  ;;  %v8332_v53 = vld [vmem:[%s10503_s10 + $0x68] sm:$0xff]  }
 0x5ca   : > { %4991 = vmatprep.subr.bf16.mxu1 %v8294_v29  ;;  %v8333_v29 = vld [vmem:[%s10503_s10 + $0x28] sm:$0xff]  }
 0x5cc   : > { %4722 = vmatmul.mubr.bf16.gmra.mrb[92].mxu1 %v9847_v18  ;;  %v8323_v18 = vld [vmem:[%s10503_s10] sm:$0xff]  }
 0x5cd   : > { %4731 = vmatprep.mubr.bf16.mxu1 %v4096_v37  ;;  %4992 = vmatpush1.bf16.msra.mxu1 %v8292_v61  ;;  %v8335_v61 = vld [vmem:[%s10503_s10 + $0x30] sm:$0xff]   ;;  %v8337_v37 = vld [vmem:[%s10503_s10 + $0x38] sm:$0xff]  }
 0x5ce   : > { %4993 = vmatprep.subr.bf16.mxu1 %v8297_v3  ;;  %7330 = vmatpush3.bf16.msra.mxu0 %v8323_v18  ;;  %v8336_v3 = vld [vmem:[%s10503_s10 + $0x78] sm:$0xff]  }
 0x5cf   : > { %7331 = vmatprep.subr.bf16.mxu0 %v8324_v24 }
 0x5d1   : > { %4994 = vmatpush1.bf16.msra.mxu1 %v8295_v40 }
 0x5d2   : > { %4995 = vmatprep.subr.bf16.mxu1 %v8300_v42  ;;  %7332 = vmatpush3.bf16.msra.mxu0 %v8325_v6  ;;  %v8344_v6 = vld [vmem:[%s10503_s10 + $0xd8] sm:$0xff]  }
 0x5d3   : > { %7333 = vmatprep.subr.bf16.mxu0 %v8326_v10 }
 0x5d4   : > { %4732 = vmatmul.mubr.bf16.gmra.mrb[100].mxu1 %v4095_v2 }
 0x5d5   : > { %4996 = vmatpush1.bf16.msra.mxu1 %v8298_v55  ;;  %5011 = vmatprep.mubr.bf16.mxu1 %v4796_v58 }
 0x5d6   : > { %4997 = vmatprep.subr.bf16.mxu1 %v8303_v57  ;;  %7334 = vmatpush3.bf16.msra.mxu0 %v8327_v47 }
 0x5d7   : > { %7335 = vmatprep.subr.bf16.mxu0 %v8328_v26 }
 0x5d9   : > { %4998 = vmatpush1.bf16.msra.mxu1 %v8301_v33  ;;  %v5078_v33 = vld [vmem:[%s10502_s9] sm:$0x3] }
 0x5da   : > { %4999 = vmatprep.subr.bf16.mxu1 %v8306_v9  ;;  %7336 = vmatpush3.bf16.msra.mxu0 %v8329_v50  ;;  %v10120_v9 = vrot.slane %v5078_v33, %v8943_v45 }
 0x5db   : > { %7337 = vmatprep.subr.bf16.mxu0 %v8330_v28 }
 0x5dd   : > { %5000 = vmatpush1.bf16.msra.mxu1 %v8304_v59  ;;  %v10123_v59 = vrot.slane %v5078_v33, %v8950_v49 }
 0x5de   : > { %5001 = vmatprep.subr.bf16.mxu1 %v8309_v63  ;;  %7338 = vmatpush3.bf16.msra.mxu0 %v8331_v7  ;;  %v8345_v7 = vld [vmem:[%s10503_s10 + $0x98] sm:$0xff]  }
 0x5df   : > { %7339 = vmatprep.subr.bf16.mxu0 %v8332_v53 }
 0x5e1   : > { %5002 = vmatpush1.bf16.msra.mxu1 %v8307_v25 }
 0x5e2   : > { %5003 = vmatprep.subr.bf16.mxu1 %v8312_v41  ;;  %7340 = vmatpush3.bf16.msra.mxu0 %v8333_v29 }
 0x5e3   : > { %7341 = vmatprep.subr.bf16.mxu0 %v8334_v32  ;;  %v8346_v32 = vld [vmem:[%s10503_s10 + $0xe0] sm:$0xff]  }
 0x5e5   : > { %5004 = vmatpush1.bf16.msra.mxu1 %v8310_v38 }
 0x5e6   : > { %5005 = vmatprep.subr.bf16.mxu1 %v8315_v31  ;;  %7342 = vmatpush3.bf16.msra.mxu0 %v8335_v61 }
 0x5e7   : > { %7343 = vmatprep.subr.bf16.mxu0 %v8336_v3 }
 0x5e9   : > { %5006 = vmatpush1.bf16.msra.mxu1 %v8313_v60 }
 0x5ea   : > { %5007 = vmatprep.subr.bf16.mxu1 %v8318_v0  ;;  %7344 = vmatpush3.bf16.msra.mxu0 %v8337_v37 }
 0x5eb   : > { %7375 = vmatprep.subr.bf16.mxu0 %v8338_v39 }
 0x5ed   : > { %5008 = vmatpush1.bf16.msra.mxu1 %v8316_v1 }
 0x5ee   : > { %5009 = vmatprep.subr.bf16.mxu1 %v8321_v5 }
 0x5f1   : > { %5010 = vmatpush1.bf16.msra.mxu1 %v8319_v14 }
 0x5f2   : > { %7504 = vmatprep.subr.bf16.mxu1 %v8475_v27 }
 0x5f4   : > { %5012 = vmatmul.mubr.bf16.vlgmr.msra.gmra.mrb[80].mxu1 %v4793_v36 }
 0x5f5   : > { %5021 = vmatprep.mubr.bf16.mxu1 %v4800_v51  ;;  %v8340_v51 = vld [vmem:[%s10503_s10 + $0xc8] sm:$0xff]  }
 0x5fc   : > { %5022 = vmatmul.mubr.bf16.gmra.mrb[84].mxu1 %v4798_v20 }
 0x5fd   : > { %5031 = vmatprep.mubr.bf16.mxu1 %v4804_v35 }
 0x604   : > { %5032 = vmatmul.mubr.bf16.gmra.mrb[88].mxu1 %v4802_v22 }
 0x605   : > { %5041 = vmatprep.mubr.bf16.mxu1 %v4808_v62 }
 0x60c   : > { %5042 = vmatmul.mubr.bf16.gmra.mrb[92].mxu1 %v4806_v16 }
 0x60d   : > { %5051 = vmatprep.mubr.bf16.mxu1 %v4807_v52 }
 0x614   : > { %5052 = vmatmul.mubr.bf16.gmra.mrb[104].mxu1 %v4805_v46 }
 0x615   : > { %7520 = vmatprep.mubr.msk.bf16.mxu1 %vm8476_vm4, %v8475_v27 }
 0x66f   : > { %v4492_v40 = vpop.f32.mrb[96].mxu1 }
 0x670   : > { %v4494_v42 = vpop.f32.mrb[97].mxu1 }
 0x671   : > { %v4496_v30 = vpop.f32.mrb[98].mxu1 }
 0x672   : > { %v4497_v48 = vpop.f32.mrb[99].mxu1 }
 0x6a7   : > { %v4733_v54 = vpop.f32.mrb[100].mxu1 }
 0x6a8   : > { %v10112_v55 = vadd.f32 %v4733_v54, %v4492_v40  ;;  %v4735_v2 = vpop.f32.mrb[101].mxu1  ;;  %v8348_v54 = vld [vmem:[%s10503_s10 + $0xe8] sm:$0xff]  }
 0x6a9   : > { %v10114_v56 = vadd.f32 %v4735_v2, %v4494_v42  ;;  %v4737_v57 = vpop.f32.mrb[102].mxu1  ;;  %v8347_v42 = vld [vmem:[%s10503_s10 + $0xa0] sm:$0xff]  }
 0x6aa   : > { %v4738_v58 = vpop.f32.mrb[103].mxu1 }
 0x6c7   : > { %v5013_v63 = vpop.f32.mrb[80].mxu1 }
 0x6c8   : > { %v5090_v25 = vadd.f32 %v10120_v9, %v5013_v63  ;;  %v5015_v41 = vpop.f32.mrb[81].mxu1 }
 0x6c9   : > { %v5091_v38 = vadd.f32 %v10123_v59, %v5015_v41  ;;  %v5017_v31 = vpop.f32.mrb[82].mxu1 }
 0x6ca   : > { %v5092_v60 = vadd.f32 %v10120_v9, %v5017_v31  ;;  %v5019_v0 = vpop.f32.mrb[83].mxu1  ;;  %v5108_v5 = vmax.f32 %v5090_v25, 0.0  ;;  %v8349_v25 = vld [vmem:[%s10503_s10 + $0xa8] sm:$0xff]   ;;  %v8350_v31 = vld [vmem:[%s10503_s10 + $0xf0] sm:$0xff]  }
 0x6cb   : > { %v5093_v1 = vadd.f32 %v10123_v59, %v5019_v0  ;;  %v5109_v14 = vmax.f32 %v5091_v38, 0.0 }
 0x6cc   : > { %v5110_v12 = vmax.f32 %v5092_v60, 0.0 }
 0x6cd   : > { %v5111_v45 = vmax.f32 %v5093_v1, 0.0 }
 0x6ce   : > { %v10129_v15 = vpack.c.bf16 %v5110_v12, %v5108_v5 }
 0x6cf   : > { %v10131_v49 = vpack.c.bf16 %v5111_v45, %v5109_v14  ;;  %v5023_v19 = vpop.f32.mrb[84].mxu1  ;;  %v8351_v14 = vld [vmem:[%s10503_s10 + $0xb0] sm:$0xff]  }
 0x6d0   : > { %v5094_v17 = vadd.f32 %v10120_v9, %v5023_v19  ;;  %v5025_v36 = vpop.f32.mrb[85].mxu1 }
 0x6d1   : > { %v5095_v11 = vadd.f32 %v10123_v59, %v5025_v36  ;;  %v5027_v44 = vpop.f32.mrb[86].mxu1  ;;  %5296 = vmatprep.mubr.bf16.mxu0 %v10131_v49 }
 0x6d2   : > { %v5096_v4 = vadd.f32 %v10120_v9, %v5027_v44  ;;  %v5029_v20 = vpop.f32.mrb[87].mxu1  ;;  %5297 = vmatmul.mubr.bf16.vlgmr.msra.gmra.mrb[108].mxu0 %v10129_v15  ;;  %v5112_v21 = vmax.f32 %v5094_v17, 0.0 }
 0x6d3   : > { %v5097_v35 = vadd.f32 %v10123_v59, %v5029_v20  ;;  %7376 = vmatpush3.bf16.msra.mxu0 %v8339_v8  ;;  %v5113_v22 = vmax.f32 %v5095_v11, 0.0  ;;  %v8352_v8 = vld [vmem:[%s10503_s10 + $0xf8] sm:$0xff]  }
 0x6d4   : > { %v5114_v52 = vmax.f32 %v5096_v4, 0.0  ;;  %7377 = vmatprep.subr.bf16.mxu0 %v8340_v51 }
 0x6d5   : > { %v5115_v43 = vmax.f32 %v5097_v35, 0.0 }
 0x6d6   : > { %v10151_v62 = vpack.c.bf16 %v5114_v52, %v5112_v21  ;;  %v8359_v21 = vld [vmem:[%s10504_s11 + $0x58] sm:$0xff]   ;;  %v8360_v52 = vld [vmem:[%s10504_s11 + $0x10] sm:$0xff]  }
 0x6d7   : > { %v10153_v46 = vpack.c.bf16 %v5115_v43, %v5113_v22  ;;  %v5033_v16 = vpop.f32.mrb[88].mxu1  ;;  %7378 = vmatpush3.bf16.msra.mxu0 %v8341_v34  ;;  %v8362_v22 = vld [vmem:[%s10504_s11 + $0x60] sm:$0xff]  }
 0x6d8   : > { %v5098_v18 = vadd.f32 %v10120_v9, %v5033_v16  ;;  %v5035_v24 = vpop.f32.mrb[89].mxu1  ;;  %7379 = vmatprep.subr.bf16.mxu0 %v8342_v13  ;;  %v8361_v13 = vld [vmem:[%s10504_s11 + $0x18] sm:$0xff]   ;;  %v8363_v43 = vld [vmem:[%s10504_s11 + $0x20] sm:$0xff]   ;;  %v8366_v16 = vld [vmem:[%s10504_s11 + $0x70] sm:$0xff]  }
 0x6d9   : > { %v5099_v10 = vadd.f32 %v10123_v59, %v5035_v24  ;;  %v5037_v47 = vpop.f32.mrb[90].mxu1  ;;  %5304 = vmatprep.mubr.bf16.mxu0 %v10153_v46  ;;  %v8369_v24 = vld [vmem:[%s10504_s11 + $0x38] sm:$0xff]  }
 0x6da   : > { %v5100_v26 = vadd.f32 %v10120_v9, %v5037_v47  ;;  %v5039_v50 = vpop.f32.mrb[91].mxu1  ;;  %5305 = vmatmul.mubr.bf16.gmra.mrb[112].mxu0 %v10151_v62  ;;  %v5116_v53 = vmax.f32 %v5098_v18, 0.0  ;;  %v8368_v18 = vld [vmem:[%s10504_s11 + $0x78] sm:$0xff]  }
 0x6db   : > { %v5101_v28 = vadd.f32 %v10123_v59, %v5039_v50  ;;  %7380 = vmatpush3.bf16.msra.mxu0 %v8343_v23  ;;  %v5117_v61 = vmax.f32 %v5099_v10, 0.0  ;;  %v8367_v23 = vld [vmem:[%s10504_s11 + $0x30] sm:$0xff]  }
 0x6dc   : > { %v5118_v29 = vmax.f32 %v5100_v26, 0.0  ;;  %7381 = vmatprep.subr.bf16.mxu0 %v8344_v6 }
 0x6dd   : > { %v5119_v3 = vmax.f32 %v5101_v28, 0.0 }
 0x6de   : > { %v5130_v37 = vpack.c.bf16 %v5118_v29, %v5116_v53 }
 0x6df   : > { %v5131_v39 = vpack.c.bf16 %v5119_v3, %v5117_v61  ;;  %v5043_v40 = vpop.f32.mrb[92].mxu1  ;;  %7382 = vmatpush3.bf16.msra.mxu0 %v8345_v7 }
 0x6e0   : > { %v5102_v30 = vadd.f32 %v10120_v9, %v5043_v40  ;;  %v5045_v48 = vpop.f32.mrb[93].mxu1  ;;  %7383 = vmatprep.subr.bf16.mxu0 %v8346_v32 }
 0x6e1   : > { %v5103_v2 = vadd.f32 %v10123_v59, %v5045_v48  ;;  %v5047_v57 = vpop.f32.mrb[94].mxu1  ;;  %5312 = vmatprep.mubr.bf16.mxu0 %v5131_v39 }
 0x6e2   : > { %v5104_v58 = vadd.f32 %v10120_v9, %v5047_v57  ;;  %v5049_v33 = vpop.f32.mrb[95].mxu1  ;;  %5313 = vmatmul.mubr.bf16.gmra.mrb[116].mxu0 %v5130_v37  ;;  %v5120_v41 = vmax.f32 %v5102_v30, 0.0 }
 0x6e3   : > { %v5105_v63 = vadd.f32 %v10123_v59, %v5049_v33  ;;  %7384 = vmatpush3.bf16.msra.mxu0 %v8347_v42  ;;  %v5121_v60 = vmax.f32 %v5103_v2, 0.0 }
 0x6e4   : > { %v5122_v38 = vmax.f32 %v5104_v58, 0.0  ;;  %7385 = vmatprep.subr.bf16.mxu0 %v8348_v54 }
 0x6e5   : > { %v5123_v0 = vmax.f32 %v5105_v63, 0.0 }
 0x6e6   : > { %v5132_v1 = vpack.c.bf16 %v5122_v38, %v5120_v41 }
 0x6e7   : > { %v5133_v5 = vpack.c.bf16 %v5123_v0, %v5121_v60  ;;  %v5053_v12 = vpop.f32.mrb[104].mxu1  ;;  %7386 = vmatpush3.bf16.msra.mxu0 %v8349_v25 }
 0x6e8   : > { %v5076_v45 = vadd.f32 %v5053_v12, %v10112_v55  ;;  %v5055_v19 = vpop.f32.mrb[105].mxu1  ;;  %7387 = vmatprep.subr.bf16.mxu0 %v8350_v31  ;;  %v8353_v55 = vld [vmem:[%s10503_s10 + $0xb8] sm:$0xff]  }
 0x6e9   : > { %v5077_v17 = vadd.f32 %v5055_v19, %v10114_v56  ;;  %v5057_v36 = vpop.f32.mrb[106].mxu1  ;;  %5320 = vmatprep.mubr.bf16.mxu0 %v5133_v5  ;;  %v8354_v56 = vld [vmem:[%s10504_s11 + $0x40] sm:$0xff]  }
 0x6ea   : > { %v5106_v51 = vadd.f32 %v10120_v9, %v5076_v45  ;;  %v5058_v11 = vpop.f32.mrb[107].mxu1  ;;  %5321 = vmatmul.mubr.bf16.gmra.mrb[120].mxu0 %v5132_v1  ;;  %v8355_v9 = vld [vmem:[%s10504_s11 + $0x48] sm:$0xff]  }
 0x6eb   : > { %v5107_v44 = vadd.f32 %v10123_v59, %v5077_v17  ;;  %7388 = vmatpush3.bf16.msra.mxu0 %v8351_v14  ;;  %v8356_v59 = vld [vmem:[%s10504_s11] sm:$0xff]  }
 0x6ec   : > { %v5124_v4 = vmax.f32 %v5106_v51, 0.0  ;;  %7389 = vmatprep.subr.bf16.mxu0 %v8352_v8  ;;  %7505 = vmatpush3.bf16.msra.mxu1 %v8356_v59 }
 0x6ed   : > { %v5125_v20 = vmax.f32 %v5107_v44, 0.0  ;;  %7506 = vmatprep.subr.bf16.mxu1 %v8475_v27 }
 0x6ee   : > { %v5134_v34 = vpack.c.bf16 %v5124_v4, %v5124_v4 }
 0x6ef   : > { %v5135_v35 = vpack.c.bf16 %v5125_v20, %v5125_v20  ;;  %7390 = vmatpush3.bf16.msra.mxu0 %v8353_v55 }
 0x6f0   : > { %7484 = vmatprep.subr.bf16.mxu0 %v8475_v27 }
 0x6f1   : > { %5328 = vmatprep.mubr.bf16.mxu0 %v5135_v35 }
 0x6f2   : > { %5329 = vmatmul.mubr.bf16.gmra.mrb[124].mxu0 %v5134_v34 }
 0x6f3   : > { %5497 = vmatprep.mubr.bf16.mxu0 %v10131_v49  ;;  %v8358_v49 = vld [vmem:[%s10504_s11 + $0x8] sm:$0xff]  }
 0x6f4   : > { %7507 = vmatpush3.bf16.msra.mxu1 %v8358_v49 }
 0x6f5   : > { %7508 = vmatprep.subr.bf16.mxu1 %v8475_v27 }
 0x6f8   : > { %7509 = vmatpush3.bf16.msra.mxu1 %v8360_v52 }
 0x6f9   : > { %7510 = vmatprep.subr.bf16.mxu1 %v8475_v27 }
 0x6fa   : > { %5498 = vmatmul.mubr.bf16.vlgmr.msra.gmra.mrb[128].mxu0 %v10129_v15  ;;  %v8357_v15 = vld [vmem:[%s10504_s11 + $0x50] sm:$0xff]  }
 0x6fb   : > { %5505 = vmatprep.mubr.bf16.mxu0 %v10153_v46  ;;  %7485 = vmatpush3.bf16.msra.mxu0 %v8354_v56  ;;  %v8365_v46 = vld [vmem:[%s10504_s11 + $0x28] sm:$0xff]  }
 0x6fc   : > { %7486 = vmatprep.subr.bf16.mxu0 %v8475_v27  ;;  %7511 = vmatpush3.bf16.msra.mxu1 %v8361_v13 }
 0x6fd   : > { %7512 = vmatprep.subr.bf16.mxu1 %v8475_v27 }
 0x6ff   : > { %7487 = vmatpush3.bf16.msra.mxu0 %v8355_v9 }
 0x700   : > { %7488 = vmatprep.subr.bf16.mxu0 %v8475_v27  ;;  %7513 = vmatpush3.bf16.msra.mxu1 %v8363_v43 }
 0x701   : > { %7514 = vmatprep.subr.bf16.mxu1 %v8475_v27 }
 0x702   : > { %5506 = vmatmul.mubr.bf16.gmra.mrb[132].mxu0 %v10151_v62  ;;  %v8364_v62 = vld [vmem:[%s10504_s11 + $0x68] sm:$0xff]  }
 0x703   : > { %5513 = vmatprep.mubr.bf16.mxu0 %v5131_v39  ;;  %7489 = vmatpush3.bf16.msra.mxu0 %v8357_v15 }
 0x704   : > { %7490 = vmatprep.subr.bf16.mxu0 %v8475_v27  ;;  %7515 = vmatpush3.bf16.msra.mxu1 %v8365_v46 }
 0x705   : > { %7516 = vmatprep.subr.bf16.mxu1 %v8475_v27 }
 0x707   : > { %7491 = vmatpush3.bf16.msra.mxu0 %v8359_v21 }
 0x708   : > { %7492 = vmatprep.subr.bf16.mxu0 %v8475_v27  ;;  %7517 = vmatpush3.bf16.msra.mxu1 %v8367_v23 }
 0x709   : > { %7518 = vmatprep.subr.bf16.mxu1 %v8475_v27 }
 0x70a   : > { %5514 = vmatmul.mubr.bf16.gmra.mrb[136].mxu0 %v5130_v37 }
 0x70b   : > { %5521 = vmatprep.mubr.bf16.mxu0 %v5133_v5  ;;  %7493 = vmatpush3.bf16.msra.mxu0 %v8362_v22 }
 0x70c   : > { %7494 = vmatprep.subr.bf16.mxu0 %v8475_v27  ;;  %7519 = vmatpush3.bf16.msra.mxu1 %v8369_v24 }
 0x70d   : > { %7544 = vmatprep.subr.bf16.mxu1 %v8475_v27 }
 0x70f   : > { %7495 = vmatpush3.bf16.msra.mxu0 %v8364_v62 }
 0x710   : > { %7496 = vmatprep.subr.bf16.mxu0 %v8475_v27 }
 0x712   : > { %5522 = vmatmul.mubr.bf16.gmra.mrb[140].mxu0 %v5132_v1 }
 0x713   : > { %5529 = vmatprep.mubr.bf16.mxu0 %v5135_v35  ;;  %7497 = vmatpush3.bf16.msra.mxu0 %v8366_v16 }
 0x714   : > { %7498 = vmatprep.subr.bf16.mxu0 %v8475_v27 }
 0x717   : > { %7499 = vmatpush3.bf16.msra.mxu0 %v8368_v18 }
 0x718   : > { %7524 = vmatprep.subr.bf16.mxu0 %v8475_v27 }
 0x71a   : > { %5530 = vmatmul.mubr.bf16.gmra.mrb[144].mxu0 %v5134_v34 }
 0x71b   : > { %7500 = vmatprep.mubr.msk.bf16.mxu0 %vm8476_vm4, %v8475_v27 }
 0x7a5   : > { %v7345_v6 = vpop.f32.mrb[108].mxu0 }
 0x7a6   : > { %v7346_v10 = vpop.f32.mrb[109].mxu0 }
 0x7a7   : > { %v7347_v47 = vadd.f32 %v7346_v10, %v7345_v6  ;;  %v7348_v26 = vpop.f32.mrb[110].mxu0 }
 0x7a8   : > { %v7349_v50 = vpop.f32.mrb[111].mxu0 }
 0x7a9   : > { %v7350_v28 = vadd.f32 %v7349_v50, %v7348_v26 }
 0x7ad   : > { %v7351_v7 = vpop.f32.mrb[112].mxu0 }
 0x7ae   : > { %v7352_v53 = vpop.f32.mrb[113].mxu0 }
 0x7af   : > { %v7353_v29 = vadd.f32 %v7352_v53, %v7351_v7  ;;  %v7354_v32 = vpop.f32.mrb[114].mxu0 }
 0x7b0   : > { %v7355_v61 = vpop.f32.mrb[115].mxu0 }
 0x7b1   : > { %v7356_v3 = vadd.f32 %v7355_v61, %v7354_v32 }
 0x7b5   : > { %v7357_v37 = vpop.f32.mrb[116].mxu0 }
 0x7b6   : > { %v7358_v39 = vpop.f32.mrb[117].mxu0 }
 0x7b7   : > { %v7359_v40 = vadd.f32 %v7358_v39, %v7357_v37  ;;  %v7360_v42 = vpop.f32.mrb[118].mxu0 }
 0x7b8   : > { %v7361_v30 = vpop.f32.mrb[119].mxu0 }
 0x7b9   : > { %v7362_v48 = vadd.f32 %v7361_v30, %v7360_v42  ;;  %v8370_v30 = vld [vmem:[%s10504_s11 + $0x80] sm:$0xff]  }
 0x7bd   : > { %v7363_v54 = vpop.f32.mrb[120].mxu0 }
 0x7be   : > { %v7364_v2 = vpop.f32.mrb[121].mxu0 }
 0x7bf   : > { %v7365_v57 = vadd.f32 %v7364_v2, %v7363_v54  ;;  %v7366_v58 = vpop.f32.mrb[122].mxu0 }
 0x7c0   : > { %v7367_v33 = vpop.f32.mrb[123].mxu0 }
 0x7c1   : > { %v7368_v63 = vadd.f32 %v7367_v33, %v7366_v58  ;;  %v8372_v33 = vld [vmem:[%s10504_s11 + $0x88] sm:$0xff]  }
 0x7c5   : > { %v7369_v25 = vpop.f32.mrb[124].mxu0 }
 0x7c6   : > { %v7370_v41 = vpop.f32.mrb[125].mxu0 }
 0x7c7   : > { %v7371_v38 = vadd.f32 %v7370_v41, %v7369_v25  ;;  %v7372_v31 = vpop.f32.mrb[126].mxu0  ;;  %v8374_v25 = vld [vmem:[%s10504_s11 + $0x90] sm:$0xff]  }
 0x7c8   : > { %v7373_v60 = vpop.f32.mrb[127].mxu0  ;;  %v8375_v41 = vld [vmem:[%s10504_s11 + $0xd0] sm:$0xff]   ;;  %v8377_v31 = vld [vmem:[%s10504_s11 + $0xd8] sm:$0xff]  }
 0x7c9   : > { %v8378_v60 = vld [vmem:[%s10504_s11 + $0xa0] sm:$0xff]  }
 0x7cd   : > { %v7391_v0 = vpop.f32.mrb[128].mxu0 }
 0x7ce   : > { %v7392_v1 = vpop.f32.mrb[129].mxu0 }
 0x7cf   : > { %v7393_v5 = vadd.f32 %v7392_v1, %v7391_v0  ;;  %v7394_v12 = vpop.f32.mrb[130].mxu0  ;;  %v8379_v0 = vld [vmem:[%s10504_s11 + $0xe0] sm:$0xff]   ;;  %v8380_v1 = vld [vmem:[%s10504_s11 + $0xa8] sm:$0xff]  }
 0x7d0   : > { %v7395_v14 = vpop.f32.mrb[131].mxu0 }
 0x7d1   : > { %v5537_v45 = vmax.f32 %v7347_v47, %v7393_v5  ;;  %v7396_v19 = vadd.f32 %v7395_v14, %v7394_v12  ;;  %v8381_v5 = vld [vmem:[%s10504_s11 + $0xe8] sm:$0xff]   ;;  %v8382_v12 = vld [vmem:[%s10504_s11 + $0xb0] sm:$0xff]  }
 0x7d2   : > { %v8383_v14 = vld [vmem:[%s10504_s11 + $0xf0] sm:$0xff]  }
 0x7d3   : > { %5546 = vst [vmem:[#allocation3] sm:$0xff] %v5537_v45  ;;  %v5538_v8 = vmax.f32 %v7350_v28, %v7396_v19  ;;  %v8384_v45 = vld [vmem:[%s10504_s11 + $0xb8] sm:$0xff]  }
 0x7d4   : > { %v8385_v19 = vld [vmem:[%s10504_s11 + $0xf8] sm:$0xff]  }
 0x7d5   : > { %5547 = vst [vmem:[#allocation3 + $0x8] sm:$0xff] %v5538_v8  ;;  %v7397_v17 = vpop.f32.mrb[132].mxu0 }
 0x7d6   : > { %v7398_v36 = vpop.f32.mrb[133].mxu0 }
 0x7d7   : > { %v7399_v51 = vadd.f32 %v7398_v36, %v7397_v17  ;;  %v7400_v11 = vpop.f32.mrb[134].mxu0  ;;  %v8386_v36 = vld [vmem:[%s10504_s11 + $0x100] sm:$0xff]  }
 0x7d8   : > { %v7401_v44 = vpop.f32.mrb[135].mxu0 }
 0x7d9   : > { %v5539_v55 = vmax.f32 %v7353_v29, %v7399_v51  ;;  %v7402_v4 = vadd.f32 %v7401_v44, %v7400_v11  ;;  %v8387_v51 = vld [vmem:[%s10504_s11 + $0x140] sm:$0xff]  }
 0x7db   : > { %5548 = vst [vmem:[#allocation3 + $0x10] sm:$0xff] %v5539_v55  ;;  %v5540_v20 = vmax.f32 %v7356_v3, %v7402_v4  ;;  %v8388_v55 = vld [vmem:[%s10504_s11 + $0x108] sm:$0xff]  }
 0x7dc   : > { %v5555_v35 = vld [vmem:[#allocation3] ss:$2 sm:$0x7f]  ;;  %v5556_v34 = vld [vmem:[#allocation3 + $0x1] ss:$2 sm:$0x7f] }
 0x7dd   : > { %v5557_v56 = vmax.f32 %v5555_v35, %v5556_v34  ;;  %5549 = vst [vmem:[#allocation3 + $0x18] sm:$0xff] %v5540_v20  ;;  %v7403_v9 = vpop.f32.mrb[136].mxu0  ;;  %v8389_v4 = vld [vmem:[%s10504_s11 + $0x148] sm:$0xff]   ;;  %v8390_v20 = vld [vmem:[%s10504_s11 + $0x110] sm:$0xff]   ;;  %v8392_v34 = vld [vmem:[%s10504_s11 + $0x118] sm:$0xff]  }
 0x7de   : > { %v7404_v59 = vpop.f32.mrb[137].mxu0  ;;  %v8391_v35 = vld [vmem:[%s10504_s11 + $0x150] sm:$0xff]  }
 0x7df   : > { %5558 = vst [vmem:[#allocation6] sm:$0x7f] %v5557_v56  ;;  %v7405_v15 = vadd.f32 %v7404_v59, %v7403_v9  ;;  %v7406_v49 = vpop.f32.mrb[138].mxu0  ;;  %v8393_v56 = vld [vmem:[%s10504_s11 + $0x158] sm:$0xff]   ;;  %v8394_v9 = vld [vmem:[%s10504_s11 + $0x120] sm:$0xff]  }
 0x7e0   : > { %v7407_v21 = vpop.f32.mrb[139].mxu0  ;;  %v8395_v59 = vld [vmem:[%s10504_s11 + $0x160] sm:$0xff]  }
 0x7e1   : > { %v5541_v52 = vmax.f32 %v7359_v40, %v7405_v15  ;;  %v7408_v13 = vadd.f32 %v7407_v21, %v7406_v49  ;;  %v8396_v15 = vld [vmem:[%s10504_s11 + $0x128] sm:$0xff]   ;;  %v8398_v21 = vld [vmem:[%s10504_s11 + $0x130] sm:$0xff]  }
 0x7e2   : > { %v8397_v49 = vld [vmem:[%s10504_s11 + $0x168] sm:$0xff]  }
 0x7e3   : > { %5550 = vst [vmem:[#allocation3 + $0x20] sm:$0xff] %v5541_v52  ;;  %v5542_v22 = vmax.f32 %v7362_v48, %v7408_v13  ;;  %v8371_v48 = vld [vmem:[%s10504_s11 + $0xc0] sm:$0xff]   ;;  %v8399_v52 = vld [vmem:[%s10504_s11 + $0x170] sm:$0xff]   ;;  %v8400_v13 = vld [vmem:[%s10504_s11 + $0x138] sm:$0xff]  }
 0x7e4   : > { %v5560_v43 = vld [vmem:[#allocation3 + $0x12] ss:$2 sm:$0x7f]  ;;  %v5562_v62 = vld [vmem:[#allocation3 + $0x13] ss:$2 sm:$0x7f] }
 0x7e5   : > { %v5563_v46 = vmax.f32 %v5560_v43, %v5562_v62  ;;  %5551 = vst [vmem:[#allocation3 + $0x28] sm:$0xff] %v5542_v22  ;;  %v7409_v16 = vpop.f32.mrb[140].mxu0  ;;  %v8401_v22 = vld [vmem:[%s10504_s11 + $0x178] sm:$0xff]  }
 0x7e6   : > { %v7410_v23 = vpop.f32.mrb[141].mxu0 }
 0x7e7   : > { %5564 = vst [vmem:[#allocation6 + $0x8] sm:$0x7f] %v5563_v46  ;;  %v7411_v18 = vadd.f32 %v7410_v23, %v7409_v16  ;;  %v7412_v24 = vpop.f32.mrb[142].mxu0  ;;  %v8402_v46 = vld [vmem:[%s10504_s11 + $0x180] sm:$0xff]  }
 0x7e8   : > { %v7413_v6 = vpop.f32.mrb[143].mxu0 }
 0x7e9   : > { %v5543_v10 = vmax.f32 %v7365_v57, %v7411_v18  ;;  %v7414_v47 = vadd.f32 %v7413_v6, %v7412_v24  ;;  %v8403_v18 = vld [vmem:[%s10504_s11 + $0x188] sm:$0xff]   ;;  %v8404_v24 = vld [vmem:[%s10504_s11 + $0x190] sm:$0xff]   ;;  %v8405_v6 = vld [vmem:[%s10504_s11 + $0x198] sm:$0xff]  }
 0x7eb   : > { %5552 = vst [vmem:[#allocation3 + $0x30] sm:$0xff] %v5543_v10  ;;  %v5544_v26 = vmax.f32 %v7368_v63, %v7414_v47  ;;  %v8373_v63 = vld [vmem:[%s10504_s11 + $0xc8] sm:$0xff]   ;;  %v8406_v10 = vld [vmem:[%s10504_s11 + $0x1a0] sm:$0xff]  }
 0x7ec   : > { %v8407_v47 = vld [vmem:[%s10504_s11 + $0x1a8] sm:$0xff]  }
 0x7ed   : > { %5553 = vst [vmem:[#allocation3 + $0x38] sm:$0xff] %v5544_v26  ;;  %v7415_v50 = vpop.f32.mrb[144].mxu0  ;;  %v8408_v26 = vld [vmem:[%s10504_s11 + $0x1b0] sm:$0xff]  }
 0x7ee   : > { %v7416_v28 = vpop.f32.mrb[145].mxu0 }
 0x7ef   : > { %v7417_v7 = vadd.f32 %v7416_v28, %v7415_v50  ;;  %v7418_v53 = vpop.f32.mrb[146].mxu0  ;;  %v8409_v50 = vld [vmem:[%s10504_s11 + $0x1b8] sm:$0xff]  }
 0x7f0   : > { %v7419_v29 = vpop.f32.mrb[147].mxu0 }
 0x7f1   : > { %v5545_v32 = vmax.f32 %v7371_v38, %v7417_v7  ;;  %v8376_v38 = vld [vmem:[%s10504_s11 + $0x98] sm:$0xff]  }
 0x7f2   : > { %v5566_v61 = vld [vmem:[#allocation3 + $0x24] ss:$2 sm:$0x7f]  ;;  %v5568_v3 = vld [vmem:[#allocation3 + $0x25] ss:$2 sm:$0x7f] }
 0x7f3   : > { %5554 = vst [vmem:[#allocation3 + $0x40] sm:$0xf] %v5545_v32  ;;  %v5569_v37 = vmax.f32 %v5566_v61, %v5568_v3 }
 0x7f5   : > { %5570 = vst [vmem:[#allocation6 + $0x10] sm:$0x7f] %v5569_v37 }
 0x7fa   : > { %v5572_v39 = vld [vmem:[#allocation3 + $0x36] ss:$2 sm:$0x7f]  ;;  %v5574_v40 = vld [vmem:[#allocation3 + $0x37] ss:$2 sm:$0x7f] }
 0x7fb   : > { %v5575_v42 = vmax.f32 %v5572_v39, %v5574_v40 }
 0x7fd   : > { %5576 = vst [vmem:[#allocation6 + $0x18] sm:$0x7f] %v5575_v42 }
 0x804   : > { %v5596_v54 = vld [vmem:[#allocation6 + $0x1] ss:$8 sm:$0xf]  ;;  %v5577_v2 = vld [vmem:[#allocation6] ss:$8 sm:$0xf] }
 0x805   : > { %v5597_v57 = vpack.c.bf16 %v5596_v54, %v5596_v54  ;;  %v5578_v58 = vpack.c.bf16 %v5577_v2, %v5577_v2  ;;  %v5792_v8 = vld [vmem:[#allocation6 + $0x2] ss:$8 sm:$0xf]  ;;  %v5901_v17 = vld [vmem:[#allocation6 + $0x3] ss:$8 sm:$0xf] }
 0x806   : > { %v5793_v11 = vpack.c.bf16 %v5792_v8, %v5792_v8  ;;  %v5902_v44 = vpack.c.bf16 %v5901_v17, %v5901_v17  ;;  %v6010_v43 = vld [vmem:[#allocation6 + $0x4] ss:$8 sm:$0xf]  ;;  %v6119_v62 = vld [vmem:[#allocation6 + $0x5] ss:$8 sm:$0xf] }
 0x807   : > { %7501 = vmatmul.mubr.bf16.vlgmr.msra.gmra.mrb[148].mxu0 %v5597_v57  ;;  %7521 = vmatmul.mubr.bf16.vlgmr.msra.gmra.mrb[108].mxu1 %v5578_v58  ;;  %v6011_v16 = vpack.c.bf16 %v6010_v43, %v6010_v43  ;;  %v6120_v23 = vpack.c.bf16 %v6119_v62, %v6119_v62  ;;  %v6228_v28 = vld [vmem:[#allocation6 + $0x6] ss:$8 sm:$0xf]  ;;  %v7184_v8 = vld [vmem:[%s10505_s12] ss:$0 sm:$0xff] }
 0x808   : > { %7525 = vmatpush3.bf16.msra.mxu0 %v8370_v30  ;;  %7545 = vmatpush3.bf16.msra.mxu1 %v8371_v48  ;;  %v6229_v7 = vpack.c.bf16 %v6228_v28, %v6228_v28 }
 0x809   : > { %7526 = vmatprep.subr.bf16.mxu0 %v8475_v27  ;;  %7546 = vmatprep.subr.bf16.mxu1 %v8475_v27 }
 0x80a   : > { %7540 = vmatprep.mubr.msk.bf16.mxu0 %vm8476_vm4, %v8475_v27  ;;  %7560 = vmatprep.mubr.msk.bf16.mxu1 %vm8476_vm4, %v8475_v27 }
 0x80c   : > { %7527 = vmatpush3.bf16.msra.mxu0 %v8372_v33  ;;  %7547 = vmatpush3.bf16.msra.mxu1 %v8373_v63 }
 0x80d   : > { %7528 = vmatprep.subr.bf16.mxu0 %v8475_v27  ;;  %7548 = vmatprep.subr.bf16.mxu1 %v8475_v27 }
 0x810   : > { %7529 = vmatpush3.bf16.msra.mxu0 %v8374_v25  ;;  %7549 = vmatpush3.bf16.msra.mxu1 %v8375_v41 }
 0x811   : > { %7530 = vmatprep.subr.bf16.mxu0 %v8475_v27  ;;  %7550 = vmatprep.subr.bf16.mxu1 %v8475_v27 }
 0x814   : > { %7531 = vmatpush3.bf16.msra.mxu0 %v8376_v38  ;;  %7551 = vmatpush3.bf16.msra.mxu1 %v8377_v31 }
 0x815   : > { %7532 = vmatprep.subr.bf16.mxu0 %v8475_v27  ;;  %7552 = vmatprep.subr.bf16.mxu1 %v8475_v27 }
 0x818   : > { %7533 = vmatpush3.bf16.msra.mxu0 %v8378_v60  ;;  %7553 = vmatpush3.bf16.msra.mxu1 %v8379_v0 }
 0x819   : > { %7534 = vmatprep.subr.bf16.mxu0 %v8475_v27  ;;  %7554 = vmatprep.subr.bf16.mxu1 %v8475_v27 }
 0x81c   : > { %7535 = vmatpush3.bf16.msra.mxu0 %v8380_v1  ;;  %7555 = vmatpush3.bf16.msra.mxu1 %v8381_v5 }
 0x81d   : > { %7536 = vmatprep.subr.bf16.mxu0 %v8475_v27  ;;  %7556 = vmatprep.subr.bf16.mxu1 %v8475_v27 }
 0x820   : > { %7537 = vmatpush3.bf16.msra.mxu0 %v8382_v12  ;;  %7557 = vmatpush3.bf16.msra.mxu1 %v8383_v14 }
 0x821   : > { %7538 = vmatprep.subr.bf16.mxu0 %v8475_v27  ;;  %7558 = vmatprep.subr.bf16.mxu1 %v8475_v27 }
 0x824   : > { %7539 = vmatpush3.bf16.msra.mxu0 %v8384_v45  ;;  %7559 = vmatpush3.bf16.msra.mxu1 %v8385_v19 }
 0x825   : > { %7564 = vmatprep.subr.bf16.mxu0 %v8475_v27  ;;  %7584 = vmatprep.subr.bf16.mxu1 %v8475_v27 }
 0x827   : > { %7541 = vmatmul.mubr.bf16.vlgmr.msra.gmra.mrb[152].mxu0 %v5793_v11  ;;  %7561 = vmatmul.mubr.bf16.vlgmr.msra.gmra.mrb[112].mxu1 %v5902_v44 }
 0x828   : > { %7565 = vmatpush3.bf16.msra.mxu0 %v8386_v36  ;;  %7585 = vmatpush3.bf16.msra.mxu1 %v8387_v51 }
 0x829   : > { %7566 = vmatprep.subr.bf16.mxu0 %v8475_v27  ;;  %7586 = vmatprep.subr.bf16.mxu1 %v8475_v27 }
 0x82a   : > { %7580 = vmatprep.mubr.msk.bf16.mxu0 %vm8476_vm4, %v8475_v27  ;;  %7600 = vmatprep.mubr.msk.bf16.mxu1 %vm8476_vm4, %v8475_v27 }
 0x82c   : > { %7567 = vmatpush3.bf16.msra.mxu0 %v8388_v55  ;;  %7587 = vmatpush3.bf16.msra.mxu1 %v8389_v4 }
 0x82d   : > { %7568 = vmatprep.subr.bf16.mxu0 %v8475_v27  ;;  %7588 = vmatprep.subr.bf16.mxu1 %v8475_v27 }
 0x830   : > { %7569 = vmatpush3.bf16.msra.mxu0 %v8390_v20  ;;  %7589 = vmatpush3.bf16.msra.mxu1 %v8391_v35 }
 0x831   : > { %7570 = vmatprep.subr.bf16.mxu0 %v8475_v27  ;;  %7590 = vmatprep.subr.bf16.mxu1 %v8475_v27 }
 0x834   : > { %7571 = vmatpush3.bf16.msra.mxu0 %v8392_v34  ;;  %7591 = vmatpush3.bf16.msra.mxu1 %v8393_v56 }
 0x835   : > { %7572 = vmatprep.subr.bf16.mxu0 %v8475_v27  ;;  %7592 = vmatprep.subr.bf16.mxu1 %v8475_v27 }
 0x838   : > { %7573 = vmatpush3.bf16.msra.mxu0 %v8394_v9  ;;  %7593 = vmatpush3.bf16.msra.mxu1 %v8395_v59 }
 0x839   : > { %7574 = vmatprep.subr.bf16.mxu0 %v8475_v27  ;;  %7594 = vmatprep.subr.bf16.mxu1 %v8475_v27 }
 0x83c   : > { %7575 = vmatpush3.bf16.msra.mxu0 %v8396_v15  ;;  %7595 = vmatpush3.bf16.msra.mxu1 %v8397_v49 }
 0x83d   : > { %7576 = vmatprep.subr.bf16.mxu0 %v8475_v27  ;;  %7596 = vmatprep.subr.bf16.mxu1 %v8475_v27 }
 0x840   : > { %7577 = vmatpush3.bf16.msra.mxu0 %v8398_v21  ;;  %7597 = vmatpush3.bf16.msra.mxu1 %v8399_v52 }
 0x841   : > { %7578 = vmatprep.subr.bf16.mxu0 %v8475_v27  ;;  %7598 = vmatprep.subr.bf16.mxu1 %v8475_v27 }
 0x844   : > { %7579 = vmatpush3.bf16.msra.mxu0 %v8400_v13  ;;  %7599 = vmatpush3.bf16.msra.mxu1 %v8401_v22 }
 0x845   : > { %7604 = vmatprep.subr.bf16.mxu0 %v8475_v27 }
 0x847   : > { %7581 = vmatmul.mubr.bf16.vlgmr.msra.gmra.mrb[156].mxu0 %v6011_v16  ;;  %7601 = vmatmul.mubr.bf16.vlgmr.msra.gmra.mrb[116].mxu1 %v6120_v23 }
 0x848   : > { %7605 = vmatpush3.bf16.msra.mxu0 %v8402_v46  ;;  %7620 = vmatprep.mubr.msk.bf16.mxu0 %vm8476_vm4, %v8475_v27 }
 0x849   : > { %7606 = vmatprep.subr.bf16.mxu0 %v8475_v27 }
 0x84c   : > { %7607 = vmatpush3.bf16.msra.mxu0 %v8403_v18 }
 0x84d   : > { %7608 = vmatprep.subr.bf16.mxu0 %v8475_v27 }
 0x850   : > { %7609 = vmatpush3.bf16.msra.mxu0 %v8404_v24 }
 0x851   : > { %7610 = vmatprep.subr.bf16.mxu0 %v8475_v27 }
 0x854   : > { %7611 = vmatpush3.bf16.msra.mxu0 %v8405_v6 }
 0x855   : > { %7612 = vmatprep.subr.bf16.mxu0 %v8475_v27 }
 0x858   : > { %7613 = vmatpush3.bf16.msra.mxu0 %v8406_v10 }
 0x859   : > { %7614 = vmatprep.subr.bf16.mxu0 %v8475_v27 }
 0x85c   : > { %7615 = vmatpush3.bf16.msra.mxu0 %v8407_v47 }
 0x85d   : > { %7616 = vmatprep.subr.bf16.mxu0 %v8475_v27 }
 0x860   : > { %7617 = vmatpush3.bf16.msra.mxu0 %v8408_v26 }
 0x861   : > { %7618 = vmatprep.subr.bf16.mxu0 %v8475_v27 }
 0x864   : > { %7619 = vmatpush3.bf16.msra.mxu0 %v8409_v50 }
 0x867   : > { %7621 = vmatmul.mubr.bf16.vlgmr.msra.gmra.mrb[160].mxu0 %v6229_v7 }
 0x8da   : > { %v5697_v53 = vpop.f32.mrb[148].mxu0  ;;  %v5785_v29 = vpop.f32.mrb[108].mxu1 }
 0x8db   : > { %v5786_v32 = vadd.f32 %v5785_v29, %v5697_v53  ;;  %v7502_v61 = vpop.f32.mrb[149].mxu0  ;;  %v7522_v3 = vpop.f32.mrb[109].mxu1 }
 0x8dc   : > { %v5700_v37 = vpop.f32.mrb[150].mxu0  ;;  %v5788_v39 = vpop.f32.mrb[110].mxu1 }
 0x8dd   : > { %v7503_v40 = vpop.f32.mrb[151].mxu0  ;;  %v7523_v42 = vpop.f32.mrb[111].mxu1 }
 0x8fa   : > { %v5893_v30 = vpop.f32.mrb[152].mxu0  ;;  %v6002_v48 = vpop.f32.mrb[112].mxu1 }
 0x8fb   : > { %v5899_v54 = vadd.f32 %v5893_v30, %v5786_v32  ;;  %v7542_v2 = vpop.f32.mrb[153].mxu0  ;;  %v7562_v57 = vpop.f32.mrb[113].mxu1 }
 0x8fc   : > { %v5896_v27 = vpop.f32.mrb[154].mxu0  ;;  %v6005_v58 = vpop.f32.mrb[114].mxu1 }
 0x8fd   : > { %v6008_v33 = vadd.f32 %v6002_v48, %v5899_v54  ;;  %v7543_v63 = vpop.f32.mrb[155].mxu0  ;;  %v7563_v25 = vpop.f32.mrb[115].mxu1 }
 0x91a   : > { %v6111_v41 = vpop.f32.mrb[156].mxu0  ;;  %v6220_v38 = vpop.f32.mrb[116].mxu1 }
 0x91b   : > { %v6117_v31 = vadd.f32 %v6111_v41, %v6008_v33  ;;  %v7582_v60 = vpop.f32.mrb[157].mxu0  ;;  %v7602_v0 = vpop.f32.mrb[117].mxu1 }
 0x91c   : > { %v6114_v1 = vpop.f32.mrb[158].mxu0  ;;  %v6223_v5 = vpop.f32.mrb[118].mxu1 }
 0x91d   : > { %v6226_v12 = vadd.f32 %v6220_v38, %v6117_v31  ;;  %v7583_v14 = vpop.f32.mrb[159].mxu0  ;;  %v7603_v45 = vpop.f32.mrb[119].mxu1 }
 0x93a   : > { %v6329_v19 = vpop.f32.mrb[160].mxu0 }
 0x93b   : > { %v6335_v17 = vadd.f32 %v6329_v19, %v6226_v12  ;;  %v7622_v36 = vpop.f32.mrb[161].mxu0 }
 0x93c   : > { %v6332_v51 = vpop.f32.mrb[162].mxu0 }
 0x93d   : > { %v6343_v11 = vadd.f32 %v7184_v8, %v6335_v17  ;;  %v7623_v44 = vpop.f32.mrb[163].mxu0 }
 0x93f   : > { %6344 = vst [vmem:[%s434_s17] sm:$0xf] %v6343_v11 }
 0x940   : > { %8423 = shalt.err (!%p8420_p3)
}
 0x941   : > { %s8424_s20 = scalar_lea.hbm %s10451_s14, 64  ;;  %s8428_s23 = scalar_lea.hbm %s10506_s13, 128 }
 0x942   : > { %p8425_p4 = scmp.ne.s32.totalorder %s10451_s14, %s8424_s20  ;;  %p8429_p9 = scmp.lt.u32.totalorder %s10451_s14, %s10506_s13 }
 0x943   : > { %p8430_p10 = scmp.lt.u32.totalorder %s8428_s23, %s8424_s20  ;;  %p8432_p12 = scmp.lt.u32.totalorder %s8424_s20, %s10451_s14 }
 0x944   : > { %p8426_p7 = pnand %p8425_p4, %p8586_p5 }
 0x945   : > { %p8431_p11 = por %p8430_p10, %p8429_p9 }
 0x946   : > { %p8427_p8 = pneg %p8426_p7 }
 0x947   : > { %p8433_p13 = por %p8432_p12, %p8431_p11 }
 0x949   : > { %p8434_p0 = pnand %p8433_p13, %p8427_p8 }
 0x94b   : > { %8437 = shalt.err (!%p8434_p0)
}
 0x94c   : > { %7816 = dma.vmem_to_hbm [thread:$0]  (%p8586_p5), %s10453_s30, 64, %s10451_s14, %s6346_s19  }
 0x94d PF: > { %s10521_s15 = sld [smem:[#allocation10_spill]]  ;;  %p7822_p1 = scmp.ge.s32.totalorder %s8472_s28, 2 }
 0x94f   : > { %p7819_p2 = pnand %p7822_p1, %p8590_p6 }
 0x953   : > { %s6371_s25 = sand.u32 1, %s10521_s15  }
 0x954   : > { %s6372_s16 = scalar_lea.sflag [#allocation8], %s6371_s25 }
 0x955   : > { %8455 = dma.done.wait (!%p7819_p2), %s6372_s16, 64  }
 0x956   : > { %8457 = vsyncadd (!%p7819_p2), %s6372_s16, 4294967232  ;;  %s10523_s28 = sld [smem:[#allocation12_spill]]  ;;  %s10524_s21 = sld [smem:[#allocation11_spill]] }
 0x957   : > { %s10525_s27 = sld [smem:[#allocation13_spill]]  ;;  %s10526_s25 = smov %s8464_s26 }
 0x95c   : > { %p23_p3 = scmp.ge.s32.totalorder %s10523_s28, 4   ;;  %s10527_s26 = smov %s10524_s21 }
 0x95e   :  { %25 = sbr.rel (!%p23_p3) target bundleno = 3 (0x3), region = 157 }
 0x965   :  { %6377 = vsyncpa [#allocation8], 1 }
 0x966   :  { %6379 = vsyncpa [#allocation8 + $0x1], 1 }

</bundles_post_ra>
